<compile_context>
chip_gen: v5e
topology: v5e:2x2
jax: 0.10.0
libtpu: 0.0.40
codegen_flags: <defaults>
</compile_context>

<pallas_src>
import numpy as np
import jax
import jax.numpy as jnp
from jax import lax
from jax.experimental import pallas as pl
from jax.experimental.pallas import tpu as pltpu


KSIZE = 4
STRIDE = 2
PAD = 1


# ----------------------------------------------------------------------------
# Static per-output-position source-index table (host-side numpy, done once).
# idx[row, tap] = flat (h*W + w) source position, or -1 for zero padding.
# ----------------------------------------------------------------------------
def _conv_gather_indices(h, w, k=KSIZE, stride=STRIDE, pad=PAD):
    oh = (h + 2 * pad - k) // stride + 1
    ow = (w + 2 * pad - k) // stride + 1
    idx = np.full((oh * ow, k * k), -1, dtype=np.int32)
    for r in range(oh):
        for c in range(ow):
            row = r * ow + c
            for kh in range(k):
                for kw in range(k):
                    ih = r * stride + kh - pad
                    iw = c * stride + kw - pad
                    if 0 <= ih < h and 0 <= iw < w:
                        idx[row, kh * k + kw] = ih * w + iw
    return idx, oh, ow


def _conv_as_matrix(w_oihw, h, w, k=KSIZE, stride=STRIDE, pad=PAD):
    """Fold a strided/padded conv into a dense matrix (exact, numpy, one-time).

    Returns A of shape (cout*OH*OW, cin*H*W) such that for a per-sample image
    flattened channel-major (cin, H, W), y = A @ x gives the conv output
    flattened channel-major (cout, OH, OW).
    """
    w_np = np.asarray(w_oihw, dtype=np.float32)          # (cout, cin, k, k)
    cout, cin = w_np.shape[0], w_np.shape[1]
    idx, oh, ow = _conv_gather_indices(h, w, k, stride, pad)
    m = oh * ow
    A = np.zeros((cout, m, cin, h * w), dtype=np.float32)
    for p in range(m):
        for t in range(k * k):
            q = idx[p, t]
            if q >= 0:
                A[:, p, :, q] += w_np[:, :, t // k, t % k]
    return A.reshape(cout * m, cin * h * w), oh, ow


# ----------------------------------------------------------------------------
# Fused Pallas kernel: 4 matmuls, batch on the lane axis.
#   x_ref   : (cin*H*W, NB)      input block (channel-major rows, batch lanes)
#   a1/a2   : dense conv matrices (resident)
#   wf1/wf2 : fc weights (resident)
#   b*      : biases as (rows, 1) columns (broadcast over lanes)
#   o_ref   : (10, NB)
# ----------------------------------------------------------------------------
def _fused_cnn_kernel(x_ref, a1_ref, b1_ref, a2_ref, b2_ref,
                      wf1_ref, bf1_ref, wf2_ref, bf2_ref,
                      o_ref, y1_ref, y2_ref):
    f32 = jnp.float32
    # conv1 + ReLU   (r1, K=cin*H*W) @ (K, NB)
    y1_ref[...] = jnp.maximum(
        jnp.dot(a1_ref[...], x_ref[...], preferred_element_type=f32)
        + b1_ref[...], 0.0)
    # conv2 + ReLU   (r2, r1) @ (r1, NB)
    y2_ref[...] = jnp.maximum(
        jnp.dot(a2_ref[...], y1_ref[...], preferred_element_type=f32)
        + b2_ref[...], 0.0)
    # fc1 + ReLU     (lsz, r2) @ (r2, NB)   -- row order of y2 == NCHW flatten
    h = jnp.maximum(
        jnp.dot(wf1_ref[...], y2_ref[...], preferred_element_type=f32)
        + bf1_ref[...], 0.0)
    # fc2            (10, lsz) @ (lsz, NB)
    o_ref[...] = (jnp.dot(wf2_ref[...], h, preferred_element_type=f32)
                  + bf2_ref[...]).astype(o_ref.dtype)


# ----------------------------------------------------------------------------
# One-time parameter re-layout (outside the hot path, exact numpy math).
# ----------------------------------------------------------------------------
def prepare_params(params, in_dim):
    c1 = params["conv1_w"].shape[0]
    c2 = params["conv2_w"].shape[0]
    lsz = params["fc1_w"].shape[0]
    ncls = params["fc2_w"].shape[0]

    a1_np, oh1, ow1 = _conv_as_matrix(params["conv1_w"], in_dim, in_dim)
    a2_np, oh2, ow2 = _conv_as_matrix(params["conv2_w"], oh1, ow1)
    m1, m2 = oh1 * ow1, oh2 * ow2

    b1 = np.repeat(np.asarray(params["conv1_b"], np.float32), m1).reshape(c1 * m1, 1)
    b2 = np.repeat(np.asarray(params["conv2_b"], np.float32), m2).reshape(c2 * m2, 1)

    return {
        "a1": jnp.asarray(a1_np),                                  # (c1*m1, cin*H*W)
        "b1": jnp.asarray(b1),                                     # (c1*m1, 1)
        "a2": jnp.asarray(a2_np),                                  # (c2*m2, c1*m1)
        "b2": jnp.asarray(b2),                                     # (c2*m2, 1)
        "wf1": params["fc1_w"].astype(jnp.float32),                # (lsz, c2*m2)
        "bf1": params["fc1_b"].reshape(lsz, 1).astype(jnp.float32),
        "wf2": params["fc2_w"].astype(jnp.float32),                # (10, lsz)
        "bf2": params["fc2_b"].reshape(ncls, 1).astype(jnp.float32),
    }


# ----------------------------------------------------------------------------
# Forward pass: one fused pallas_call, batch (lane-axis) tiled grid.
# ----------------------------------------------------------------------------
def cnn_4layer_forward(x_nchw, prep):
    n, cin, hh, ww = x_nchw.shape
    hw = hh * ww
    r1 = prep["a1"].shape[0]          # c1 * OH1 * OW1
    r2 = prep["a2"].shape[0]          # c2 * OH2 * OW2
    ncls = prep["wf2"].shape[0]

    # Lane tile: 128 keeps lanes dense; 256 for big batches (full v6e/v7x MXU
    # width) while still leaving >= 2 grid steps for v7x megacore sharding.
    NB = 256 if n >= 512 else 128
    n_pad = ((n + NB - 1) // NB) * NB

    # Only per-forward data movement outside the kernel: NCHW -> (rows, batch).
    x_cols = x_nchw.astype(jnp.float32).reshape(n, cin * hw).T      # (cin*hw, n)
    if n_pad != n:
        x_cols = jnp.pad(x_cols, ((0, 0), (0, n_pad - n)))

    grid = (n_pad // NB,)

    def resident(arr):
        return pl.BlockSpec(arr.shape, lambda b: (0, 0))

    out = pl.pallas_call(
        _fused_cnn_kernel,
        out_shape=jax.ShapeDtypeStruct((ncls, n_pad), jnp.float32),
        grid=grid,
        in_specs=[
            pl.BlockSpec((cin * hw, NB), lambda b: (0, b)),
            resident(prep["a1"]), resident(prep["b1"]),
            resident(prep["a2"]), resident(prep["b2"]),
            resident(prep["wf1"]), resident(prep["bf1"]),
            resident(prep["wf2"]), resident(prep["bf2"]),
        ],
        out_specs=pl.BlockSpec((ncls, NB), lambda b: (0, b)),
        scratch_shapes=[
            pltpu.VMEM((r1, NB), jnp.float32),    # conv1 activations
            pltpu.VMEM((r2, NB), jnp.float32),    # conv2 activations
        ],
        compiler_params=pltpu.CompilerParams(
            dimension_semantics=("parallel",),
            vmem_limit_bytes=32 * 1024 * 1024),
    )(x_cols, prep["a1"], prep["b1"], prep["a2"], prep["b2"],
      prep["wf1"], prep["bf1"], prep["wf2"], prep["bf2"])

    return jnp.transpose(out)[:n]     # lane-dense kernel store; tiny transpose here


# ----------------------------------------------------------------------------
# Parameter init + pure-JAX reference (correctness check)
# ----------------------------------------------------------------------------
def init_params(key, in_ch, in_dim, width=2, linear_size=256):
    ks = jax.random.split(key, 8)
    c1, c2 = 4 * width, 8 * width
    flat = c2 * (in_dim // 4) * (in_dim // 4)
    scale = 0.05
    return {
        "conv1_w": scale * jax.random.normal(ks[0], (c1, in_ch, 4, 4), jnp.float32),
        "conv1_b": scale * jax.random.normal(ks[1], (c1,), jnp.float32),
        "conv2_w": scale * jax.random.normal(ks[2], (c2, c1, 4, 4), jnp.float32),
        "conv2_b": scale * jax.random.normal(ks[3], (c2,), jnp.float32),
        "fc1_w": scale * jax.random.normal(ks[4], (linear_size, flat), jnp.float32),
        "fc1_b": scale * jax.random.normal(ks[5], (linear_size,), jnp.float32),
        "fc2_w": scale * jax.random.normal(ks[6], (10, linear_size), jnp.float32),
        "fc2_b": scale * jax.random.normal(ks[7], (10,), jnp.float32),
    }


def cnn_4layer_ref(x_nchw, params):
    hi = lax.Precision.HIGHEST
    y = lax.conv_general_dilated(
        x_nchw, params["conv1_w"], window_strides=(2, 2),
        padding=((1, 1), (1, 1)),
        dimension_numbers=("NCHW", "OIHW", "NCHW"), precision=hi)
    y = jnp.maximum(y + params["conv1_b"][None, :, None, None], 0.0)
    y = lax.conv_general_dilated(
        y, params["conv2_w"], window_strides=(2, 2),
        padding=((1, 1), (1, 1)),
        dimension_numbers=("NCHW", "OIHW", "NCHW"), precision=hi)
    y = jnp.maximum(y + params["conv2_b"][None, :, None, None], 0.0)
    y = y.reshape(y.shape[0], -1)
    y = jnp.maximum(jnp.dot(y, params["fc1_w"].T, precision=hi) + params["fc1_b"], 0.0)
    y = jnp.dot(y, params["fc2_w"].T, precision=hi) + params["fc2_b"]
    return y


if __name__ == "__main__":
    # batch=2, in_ch=4, in_dim=16, width=2, linear_size=32
    # => conv1: 4->8 @8x8, conv2: 8->16 @4x4, fc1: 256->32, fc2: 32->10
    key = jax.random.PRNGKey(0)
    k_x, k_p = jax.random.split(key)
    in_ch, in_dim, width, linear_size = 4, 16, 2, 32

    x = jax.random.normal(k_x, (2, in_ch, in_dim, in_dim), jnp.float32)
    params = init_params(k_p, in_ch, in_dim, width=width, linear_size=linear_size)
    prep = prepare_params(params, in_dim)

    fwd = jax.jit(cnn_4layer_forward)
    out = jax.block_until_ready(fwd(x, prep))
    assert out.shape == (2, 10), out.shape

    ref = jax.block_until_ready(cnn_4layer_ref(x, params))
    assert jnp.allclose(out, ref, rtol=2e-3, atol=2e-3), (
        float(jnp.max(jnp.abs(out - ref))))

    print("KERNEL_OK")
</pallas_src>

<mosaic_0001>
module attributes {stable_mosaic.version = 11 : i64} {
  func.func @_fused_cnn_kernel(%arg0: i32, %arg1: memref<1024x128xf32, #tpu.memory_space<vmem>>, %arg2: memref<512x1024xf32, #tpu.memory_space<vmem>>, %arg3: memref<512x1xf32, #tpu.memory_space<vmem>>, %arg4: memref<256x512xf32, #tpu.memory_space<vmem>>, %arg5: memref<256x1xf32, #tpu.memory_space<vmem>>, %arg6: memref<32x256xf32, #tpu.memory_space<vmem>>, %arg7: memref<32x1xf32, #tpu.memory_space<vmem>>, %arg8: memref<10x32xf32, #tpu.memory_space<vmem>>, %arg9: memref<10x1xf32, #tpu.memory_space<vmem>>, %arg10: memref<10x128xf32, #tpu.memory_space<vmem>>, %arg11: memref<512x128xf32, #tpu.memory_space<vmem>>, %arg12: memref<256x128xf32, #tpu.memory_space<vmem>>) attributes {dimension_semantics = [#tpu.dimension_semantics<parallel>], iteration_bounds = array<i64: 1>, scalar_prefetch = 0 : i64, scratch_operands = 2 : i64, tpu.core_type = #tpu.core_type<tc>, window_params = [{transform_indices = @transform_0, window_bounds = array<i64: 1024, 128>}, {pipeline_mode = #tpu.pipeline_mode<synchronous>, transform_indices = @transform_1, window_bounds = array<i64: 512, 1024>}, {pipeline_mode = #tpu.pipeline_mode<synchronous>, transform_indices = @transform_2, window_bounds = array<i64: 512, 1>}, {pipeline_mode = #tpu.pipeline_mode<synchronous>, transform_indices = @transform_3, window_bounds = array<i64: 256, 512>}, {pipeline_mode = #tpu.pipeline_mode<synchronous>, transform_indices = @transform_4, window_bounds = array<i64: 256, 1>}, {pipeline_mode = #tpu.pipeline_mode<synchronous>, transform_indices = @transform_5, window_bounds = array<i64: 32, 256>}, {pipeline_mode = #tpu.pipeline_mode<synchronous>, transform_indices = @transform_6, window_bounds = array<i64: 32, 1>}, {pipeline_mode = #tpu.pipeline_mode<synchronous>, transform_indices = @transform_7, window_bounds = array<i64: 10, 32>}, {pipeline_mode = #tpu.pipeline_mode<synchronous>, transform_indices = @transform_8, window_bounds = array<i64: 10, 1>}, {transform_indices = @transform_9, window_bounds = array<i64: 10, 128>}]} {
    %c0 = arith.constant 0 : index
    %c0_0 = arith.constant 0 : index
    %0 = vector.load %arg2[%c0, %c0_0] : memref<512x1024xf32, #tpu.memory_space<vmem>>, vector<512x1024xf32>
    %c0_1 = arith.constant 0 : index
    %c0_2 = arith.constant 0 : index
    %1 = vector.load %arg1[%c0_1, %c0_2] : memref<1024x128xf32, #tpu.memory_space<vmem>>, vector<1024x128xf32>
    %cst = arith.constant dense<0.000000e+00> : vector<512x128xf32>
    %2 = tpu.matmul %0, %1, %cst {dimension_numbers = #tpu.dot_dimension_numbers<[1], [0], [0], [1], [0, 0, 1, 1], [], []>} : vector<512x1024xf32>, vector<1024x128xf32>, vector<512x128xf32> -> vector<512x128xf32>
    %c0_3 = arith.constant 0 : index
    %c0_4 = arith.constant 0 : index
    %3 = vector.load %arg3[%c0_3, %c0_4] : memref<512x1xf32, #tpu.memory_space<vmem>>, vector<512x1xf32>
    %4 = vector.broadcast %3 : vector<512x1xf32> to vector<512x128xf32>
    %5 = arith.addf %2, %4 : vector<512x128xf32>
    %cst_5 = arith.constant 0.000000e+00 : f32
    %6 = vector.broadcast %cst_5 : f32 to vector<512x128xf32>
    %7 = arith.maximumf %5, %6 : vector<512x128xf32>
    %c0_6 = arith.constant 0 : index
    %c0_7 = arith.constant 0 : index
    %8 = vector.load %arg11[%c0_6, %c0_7] : memref<512x128xf32, #tpu.memory_space<vmem>>, vector<512x128xf32>
    tpu.vector_store %arg11[%c0_6, %c0_7], %7 {strides = array<i32>} : memref<512x128xf32, #tpu.memory_space<vmem>>, vector<512x128xf32>,
    %c0_8 = arith.constant 0 : index
    %c0_9 = arith.constant 0 : index
    %9 = vector.load %arg4[%c0_8, %c0_9] : memref<256x512xf32, #tpu.memory_space<vmem>>, vector<256x512xf32>
    %c0_10 = arith.constant 0 : index
    %c0_11 = arith.constant 0 : index
    %10 = vector.load %arg11[%c0_10, %c0_11] : memref<512x128xf32, #tpu.memory_space<vmem>>, vector<512x128xf32>
    %cst_12 = arith.constant dense<0.000000e+00> : vector<256x128xf32>
    %11 = tpu.matmul %9, %10, %cst_12 {dimension_numbers = #tpu.dot_dimension_numbers<[1], [0], [0], [1], [0, 0, 1, 1], [], []>} : vector<256x512xf32>, vector<512x128xf32>, vector<256x128xf32> -> vector<256x128xf32>
    %c0_13 = arith.constant 0 : index
    %c0_14 = arith.constant 0 : index
    %12 = vector.load %arg5[%c0_13, %c0_14] : memref<256x1xf32, #tpu.memory_space<vmem>>, vector<256x1xf32>
    %13 = vector.broadcast %12 : vector<256x1xf32> to vector<256x128xf32>
    %14 = arith.addf %11, %13 : vector<256x128xf32>
    %cst_15 = arith.constant 0.000000e+00 : f32
    %15 = vector.broadcast %cst_15 : f32 to vector<256x128xf32>
    %16 = arith.maximumf %14, %15 : vector<256x128xf32>
    %c0_16 = arith.constant 0 : index
    %c0_17 = arith.constant 0 : index
    %17 = vector.load %arg12[%c0_16, %c0_17] : memref<256x128xf32, #tpu.memory_space<vmem>>, vector<256x128xf32>
    tpu.vector_store %arg12[%c0_16, %c0_17], %16 {strides = array<i32>} : memref<256x128xf32, #tpu.memory_space<vmem>>, vector<256x128xf32>,
    %c0_18 = arith.constant 0 : index
    %c0_19 = arith.constant 0 : index
    %18 = vector.load %arg6[%c0_18, %c0_19] : memref<32x256xf32, #tpu.memory_space<vmem>>, vector<32x256xf32>
    %c0_20 = arith.constant 0 : index
    %c0_21 = arith.constant 0 : index
    %19 = vector.load %arg12[%c0_20, %c0_21] : memref<256x128xf32, #tpu.memory_space<vmem>>, vector<256x128xf32>
    %cst_22 = arith.constant dense<0.000000e+00> : vector<32x128xf32>
    %20 = tpu.matmul %18, %19, %cst_22 {dimension_numbers = #tpu.dot_dimension_numbers<[1], [0], [0], [1], [0, 0, 1, 1], [], []>} : vector<32x256xf32>, vector<256x128xf32>, vector<32x128xf32> -> vector<32x128xf32>
    %c0_23 = arith.constant 0 : index
    %c0_24 = arith.constant 0 : index
    %21 = vector.load %arg7[%c0_23, %c0_24] : memref<32x1xf32, #tpu.memory_space<vmem>>, vector<32x1xf32>
    %22 = vector.broadcast %21 : vector<32x1xf32> to vector<32x128xf32>
    %23 = arith.addf %20, %22 : vector<32x128xf32>
    %cst_25 = arith.constant 0.000000e+00 : f32
    %24 = vector.broadcast %cst_25 : f32 to vector<32x128xf32>
    %25 = arith.maximumf %23, %24 : vector<32x128xf32>
    %c0_26 = arith.constant 0 : index
    %c0_27 = arith.constant 0 : index
    %26 = vector.load %arg8[%c0_26, %c0_27] : memref<10x32xf32, #tpu.memory_space<vmem>>, vector<10x32xf32>
    %cst_28 = arith.constant dense<0.000000e+00> : vector<10x128xf32>
    %27 = tpu.matmul %26, %25, %cst_28 {dimension_numbers = #tpu.dot_dimension_numbers<[1], [0], [0], [1], [0, 0, 1, 1], [], []>} : vector<10x32xf32>, vector<32x128xf32>, vector<10x128xf32> -> vector<10x128xf32>
    %c0_29 = arith.constant 0 : index
    %c0_30 = arith.constant 0 : index
    %28 = vector.load %arg9[%c0_29, %c0_30] : memref<10x1xf32, #tpu.memory_space<vmem>>, vector<10x1xf32>
    %29 = vector.broadcast %28 : vector<10x1xf32> to vector<10x128xf32>
    %30 = arith.addf %27, %29 : vector<10x128xf32>
    %c0_31 = arith.constant 0 : index
    %c0_32 = arith.constant 0 : index
    %31 = vector.load %arg10[%c0_31, %c0_32] : memref<10x128xf32, #tpu.memory_space<vmem>>, vector<10x128xf32>
    tpu.vector_store %arg10[%c0_31, %c0_32], %30 {strides = array<i32>} : memref<10x128xf32, #tpu.memory_space<vmem>>, vector<10x128xf32>,
    return
  }
  func.func @transform_0(%arg0: i32) -> (i32, i32) {
    %c0_i32 = arith.constant 0 : i32
    %c0_i32_0 = arith.constant 0 : i32
    return %c0_i32, %arg0 : i32, i32
  }
  func.func @transform_1(%arg0: i32) -> (i32, i32) {
    %c0_i32 = arith.constant 0 : i32
    %c0_i32_0 = arith.constant 0 : i32
    %c0_i32_1 = arith.constant 0 : i32
    return %c0_i32, %c0_i32_0 : i32, i32
  }
  func.func @transform_2(%arg0: i32) -> (i32, i32) {
    %c0_i32 = arith.constant 0 : i32
    %c0_i32_0 = arith.constant 0 : i32
    %c0_i32_1 = arith.constant 0 : i32
    return %c0_i32, %c0_i32_0 : i32, i32
  }
  func.func @transform_3(%arg0: i32) -> (i32, i32) {
    %c0_i32 = arith.constant 0 : i32
    %c0_i32_0 = arith.constant 0 : i32
    %c0_i32_1 = arith.constant 0 : i32
    return %c0_i32, %c0_i32_0 : i32, i32
  }
  func.func @transform_4(%arg0: i32) -> (i32, i32) {
    %c0_i32 = arith.constant 0 : i32
    %c0_i32_0 = arith.constant 0 : i32
    %c0_i32_1 = arith.constant 0 : i32
    return %c0_i32, %c0_i32_0 : i32, i32
  }
  func.func @transform_5(%arg0: i32) -> (i32, i32) {
    %c0_i32 = arith.constant 0 : i32
    %c0_i32_0 = arith.constant 0 : i32
    %c0_i32_1 = arith.constant 0 : i32
    return %c0_i32, %c0_i32_0 : i32, i32
  }
  func.func @transform_6(%arg0: i32) -> (i32, i32) {
    %c0_i32 = arith.constant 0 : i32
    %c0_i32_0 = arith.constant 0 : i32
    %c0_i32_1 = arith.constant 0 : i32
    return %c0_i32, %c0_i32_0 : i32, i32
  }
  func.func @transform_7(%arg0: i32) -> (i32, i32) {
    %c0_i32 = arith.constant 0 : i32
    %c0_i32_0 = arith.constant 0 : i32
    %c0_i32_1 = arith.constant 0 : i32
    return %c0_i32, %c0_i32_0 : i32, i32
  }
  func.func @transform_8(%arg0: i32) -> (i32, i32) {
    %c0_i32 = arith.constant 0 : i32
    %c0_i32_0 = arith.constant 0 : i32
    %c0_i32_1 = arith.constant 0 : i32
    return %c0_i32, %c0_i32_0 : i32, i32
  }
  func.func @transform_9(%arg0: i32) -> (i32, i32) {
    %c0_i32 = arith.constant 0 : i32
    %c0_i32_0 = arith.constant 0 : i32
    return %c0_i32, %arg0 : i32, i32
  }
}

</mosaic_0001>

<bundles_post_ra>
// kernel: cnn_4layer_forward.1
= control target key start
LH: loop header
LB: loop body
LE: loop exit
PB: predicated region body
PF: predicated region fallthrough
CT: control target
= control target key end

     0   :  { %14 = vsyncpa [#allocation5], 0  ;;  %s5958_s0 = inlined_call_operand.vmem [shape: f32[1024,128], index: 0, kind: input, shape index: {}]   ;;  %s5959_s1 = inlined_call_operand.hbm [shape: f32[512,1024], index: 1, kind: input, shape index: {}]   ;;  %s5960_s2 = inlined_call_operand.vmem [shape: f32[512,1], index: 2, kind: input, shape index: {}]   ;;  %s5961_s3 = inlined_call_operand.hbm [shape: f32[256,512], index: 3, kind: input, shape index: {}]   ;;  %s5962_s4 = inlined_call_operand.vmem [shape: f32[256,1], index: 4, kind: input, shape index: {}]   ;;  %s5963_s5 = inlined_call_operand.hbm [shape: f32[32,256], index: 5, kind: input, shape index: {}]   ;;  %s5964_s6 = inlined_call_operand.vmem [shape: f32[32,1], index: 6, kind: input, shape index: {}]   ;;  %s5965_s7 = inlined_call_operand.hbm [shape: f32[10,32], index: 7, kind: input, shape index: {}]   ;;  %s5966_s8 = inlined_call_operand.vmem [shape: f32[10,1], index: 8, kind: input, shape index: {}]   ;;  %s5967_s9 = inlined_call_operand.vmem [shape: f32[10,128], index: 9, kind: output, shape index: {}]  }
   0x1   :  { %15 = vsyncpa [#allocation7], 0  ;;  %s38_s11 = sshll.u32 %s5961_s3, 4  ;;  %s39_s11 = int_to_ptr.hbm [resolvable:$true] %s38_s11 }
   0x2   :  { %16 = vsyncpa [#allocation10], 0  ;;  %s4134_s12 = smov [#allocation6]   ;;  %s23_s16 = sshll.u32 %s5959_s1, 4  ;;  %s24_s16 = int_to_ptr.hbm [resolvable:$true] %s23_s16 }
   0x3   :  { %s40_s13 = sshll.u32 %s4134_s12, 4  ;;  %s4135_s17 = smov 512   ;;  %s41_s13 = int_to_ptr.vmem [resolvable:$true] %s40_s13 }
   0x4   :  { %s4136_s18 = smov 32   ;;  %s4137_s19 = smov [#allocation4]  }
   0x5   :  { %46 = dma.hbm_to_vmem [thread:$0]  %s39_s11, 16384, %s41_s13, [#allocation7], %s4135_s17, %s4135_s17, %s4136_s18  }
   0x6   :  { %s25_s20 = sshll.u32 %s4137_s19, 4  ;;  %s4138_s21 = smov 1024   ;;  %s26_s20 = int_to_ptr.vmem [resolvable:$true] %s25_s20 }
   0x7   :  { %s4139_s22 = smov 64   ;;  %s53_s24 = sshll.u32 %s5963_s5, 4  ;;  %s54_s24 = int_to_ptr.hbm [resolvable:$true] %s53_s24 }
   0x8   :  { %31 = dma.hbm_to_vmem [thread:$0]  %s24_s16, 65536, %s26_s20, [#allocation5], %s4138_s21, %s4138_s21, %s4139_s22  }
   0x9   :  { %s4140_s25 = smov [#allocation8]   ;;  %s68_s28 = sshll.u32 %s5965_s7, 4  ;;  %s69_s28 = int_to_ptr.hbm [resolvable:$true] %s68_s28 }
   0xa   :  { %s55_s26 = sshll.u32 %s4140_s25, 4  ;;  %s4141_s29 = smov 256   ;;  %s56_s26 = int_to_ptr.vmem [resolvable:$true] %s55_s26 }
   0xb   :  { %s4142_s30 = smov 16   ;;  %s4143_s10 = smov [#allocation9]  }
   0xc   :  { %61 = dma.hbm_to_vmem [thread:$0]  %s54_s24, 1024, %s56_s26, [#allocation7], %s4141_s29, %s4141_s29, %s4142_s30  }
   0xd   :  { %s70_s11 = sshll.u32 %s4143_s10, 4  ;;  %s4144_s12 = smov 128   ;;  %s71_s11 = int_to_ptr.vmem [resolvable:$true] %s70_s11 }
   0xe   :  { %s4145_s13 = smov 8  }
   0xf   :  { %76 = dma.hbm_to_vmem [thread:$0]  %s69_s28, 256, %s71_s11, [#allocation10], %s4144_s12, %s4144_s12, %s4145_s13  }
  0x10   :  { %4128 = dma.done.wait [#allocation5], 65536  }
  0x11   :  { %4129 = vsyncadd [#allocation5], 4294901760 }
  0x12   :  { %4130 = dma.done.wait [#allocation7], 17408  }
  0x13   :  { %4131 = vsyncadd [#allocation7], 4294949888 }
  0x14   :  { %4132 = dma.done.wait [#allocation10], 256  }
  0x15   :  { %4133 = vsyncadd [#allocation10], 4294967040  ;;  %v4146_v0 = vmov 0   ;;  %v782_v1 = vld [vmem:[%s5960_s2 + $0x178] sm:$0xff]  ;;  %v781_v2 = vld [vmem:[%s5960_s2 + $0x170] sm:$0xff]  ;;  %vm3959_vm0 = vcmask 261120  }
  0x16   :  { %4031 = vset.pattern.permute.xlu2 %v4146_v0  ;;  %4030 = vset.pattern.permute.xlu1 %v4146_v0  ;;  %v749_v3 = vld [vmem:[%s5960_s2 + $0x70] sm:$0xff]  ;;  %v622_v4 = vld [vmem:[%s5958_s0 + $0x78] sm:$0xff]  ;;  %v620_v10 = vld [vmem:[%s5958_s0 + $0x68] sm:$0xff] }
  0x17   :  { %4029 = vset.pattern.permute.xlu0 %v4146_v0  ;;  %1031 = vperm.xlu1 %4030, %v781_v2   ;;  %v654_v5 = vld [vmem:[%s5958_s0 + $0x178] sm:$0xff]  ;;  %v621_v6 = vld [vmem:[%s5958_s0 + $0x70] sm:$0xff]  ;;  %v652_v12 = vld [vmem:[%s5958_s0 + $0x168] sm:$0xff] }
  0x18   :  { %1036 = vperm.xlu0 %4029, %v782_v1   ;;  %871 = vperm.xlu2 %4031, %v749_v3   ;;  %v638_v7 = vld [vmem:[%s5958_s0 + $0xf8] sm:$0xff]  ;;  %v653_v8 = vld [vmem:[%s5958_s0 + $0x170] sm:$0xff]  ;;  %v636_v14 = vld [vmem:[%s5958_s0 + $0xe8] sm:$0xff] }
  0x19   :  { %1119 = vmatpush.msra.mxu0 %v622_v4  ;;  %v670_v9 = vld [vmem:[%s5958_s0 + $0x1f8] sm:$0xff]  ;;  %1537 = vmatpush.msra.mxu2 %v654_v5  ;;  %v637_v11 = vld [vmem:[%s5958_s0 + $0xf0] sm:$0xff]  ;;  %v619_v15 = vld [vmem:[%s5958_s0 + $0x60] sm:$0xff] }
  0x1a   :  { %1328 = vmatpush.msra.mxu1 %v638_v7  ;;  %1746 = vmatpush.msra.mxu3 %v670_v9  ;;  %v669_v13 = vld [vmem:[%s5958_s0 + $0x1f0] sm:$0xff]  ;;  %v668_v16 = vld [vmem:[%s5958_s0 + $0x1e8] sm:$0xff]  ;;  %v651_v17 = vld [vmem:[%s5958_s0 + $0x160] sm:$0xff] }
  0x1b   :  { %1120 = vmatpush.msra.mxu0 %v621_v6  ;;  %1538 = vmatpush.msra.mxu2 %v653_v8  ;;  %v798_v18 = vld [vmem:[%s5960_s2 + $0x1f8] sm:$0xff]  ;;  %v635_v22 = vld [vmem:[%s5958_s0 + $0xe0] sm:$0xff]  ;;  %v617_v25 = vld [vmem:[%s5958_s0 + $0x50] sm:$0xff] }
  0x1c   :  { %1329 = vmatpush.msra.mxu1 %v637_v11  ;;  %1747 = vmatpush.msra.mxu3 %v669_v13  ;;  %v750_v19 = vld [vmem:[%s5960_s2 + $0x78] sm:$0xff]  ;;  %v667_v24 = vld [vmem:[%s5958_s0 + $0x1e0] sm:$0xff]  ;;  %v649_v27 = vld [vmem:[%s5958_s0 + $0x150] sm:$0xff] }
  0x1d   :  { %1121 = vmatpush.msra.mxu0 %v620_v10  ;;  %1539 = vmatpush.msra.mxu2 %v652_v12  ;;  %v766_v20 = vld [vmem:[%s5960_s2 + $0xf8] sm:$0xff]  ;;  %v616_v29 = vld [vmem:[%s5958_s0 + $0x48] sm:$0xff]  ;;  %v633_v30 = vld [vmem:[%s5958_s0 + $0xd0] sm:$0xff] }
  0x1e   :  { %1330 = vmatpush.msra.mxu1 %v636_v14  ;;  %1748 = vmatpush.msra.mxu3 %v668_v16  ;;  %v618_v21 = vld [vmem:[%s5958_s0 + $0x58] sm:$0xff]  ;;  %v648_v31 = vld [vmem:[%s5958_s0 + $0x148] sm:$0xff]  ;;  %v665_v32 = vld [vmem:[%s5958_s0 + $0x1d0] sm:$0xff] }
  0x1f   :  { %1122 = vmatpush.msra.mxu0 %v619_v15  ;;  %1540 = vmatpush.msra.mxu2 %v651_v17  ;;  %v650_v23 = vld [vmem:[%s5958_s0 + $0x158] sm:$0xff]  ;;  %v615_v33 = vld [vmem:[%s5958_s0 + $0x40] sm:$0xff]  ;;  %v632_v34 = vld [vmem:[%s5958_s0 + $0xc8] sm:$0xff] }
  0x20   :  { %1116 = vperm.xlu1 %4030, %v798_v18   ;;  %876 = vperm.xlu0 %4029, %v750_v19   ;;  %v634_v26 = vld [vmem:[%s5958_s0 + $0xd8] sm:$0xff]  ;;  %v647_v35 = vld [vmem:[%s5958_s0 + $0x140] sm:$0xff]  ;;  %v664_v36 = vld [vmem:[%s5958_s0 + $0x1c8] sm:$0xff] }
  0x21   :  { %956 = vperm.xlu2 %4031, %v766_v20   ;;  %1123 = vmatpush.msra.mxu0 %v618_v21  ;;  %v666_v28 = vld [vmem:[%s5958_s0 + $0x1d8] sm:$0xff]  ;;  %v797_v37 = vld [vmem:[%s5960_s2 + $0x1f0] sm:$0xff]  ;;  %v780_v38 = vld [vmem:[%s5960_s2 + $0x168] sm:$0xff] }
  0x22   :  { %1331 = vmatpush.msra.mxu1 %v635_v22  ;;  %1541 = vmatpush.msra.mxu2 %v650_v23  ;;  %v748_v39 = vld [vmem:[%s5960_s2 + $0x68] sm:$0xff]  ;;  %v614_v40 = vld [vmem:[%s5958_s0 + $0x38] sm:$0xff]  ;;  %v631_v41 = vld [vmem:[%s5958_s0 + $0xc0] sm:$0xff] }
  0x23   :  { %1749 = vmatpush.msra.mxu3 %v667_v24  ;;  %1124 = vmatpush.msra.mxu0 %v617_v25  ;;  %v646_v42 = vld [vmem:[%s5958_s0 + $0x138] sm:$0xff]  ;;  %v663_v43 = vld [vmem:[%s5958_s0 + $0x1c0] sm:$0xff]  ;;  %v613_v44 = vld [vmem:[%s5958_s0 + $0x30] sm:$0xff] }
  0x24   :  { %1332 = vmatpush.msra.mxu1 %v634_v26  ;;  %1542 = vmatpush.msra.mxu2 %v649_v27  ;;  %v630_v45 = vld [vmem:[%s5958_s0 + $0xb8] sm:$0xff]  ;;  %v645_v46 = vld [vmem:[%s5958_s0 + $0x130] sm:$0xff]  ;;  %v612_v48 = vld [vmem:[%s5958_s0 + $0x28] sm:$0xff] }
  0x25   :  { %1750 = vmatpush.msra.mxu3 %v666_v28  ;;  %1125 = vmatpush.msra.mxu0 %v616_v29  ;;  %v662_v47 = vld [vmem:[%s5958_s0 + $0x1b8] sm:$0xff]  ;;  %v629_v49 = vld [vmem:[%s5958_s0 + $0xb0] sm:$0xff]  ;;  %v644_v50 = vld [vmem:[%s5958_s0 + $0x128] sm:$0xff] }
  0x26   :  { %1333 = vmatpush.msra.mxu1 %v633_v30  ;;  %1543 = vmatpush.msra.mxu2 %v648_v31  ;;  %v661_v51 = vld [vmem:[%s5958_s0 + $0x1b0] sm:$0xff]  ;;  %v611_v52 = vld [vmem:[%s5958_s0 + $0x20] sm:$0xff]  ;;  %v628_v53 = vld [vmem:[%s5958_s0 + $0xa8] sm:$0xff] }
  0x27   :  { %1751 = vmatpush.msra.mxu3 %v665_v32  ;;  %1126 = vmatpush.msra.mxu0 %v615_v33  ;;  %v643_v54 = vld [vmem:[%s5958_s0 + $0x120] sm:$0xff]  ;;  %v660_v55 = vld [vmem:[%s5958_s0 + $0x1a8] sm:$0xff]  ;;  %v765_v57 = vld [vmem:[%s5960_s2 + $0xf0] sm:$0xff] }
  0x28   :  { %1334 = vmatpush.msra.mxu1 %v632_v34  ;;  %1544 = vmatpush.msra.mxu2 %v647_v35  ;;  %v779_v56 = vld [vmem:[%s5960_s2 + $0x160] sm:$0xff]  ;;  %v796_v58 = vld [vmem:[%s5960_s2 + $0x1e8] sm:$0xff]  ;;  %v610_v59 = vld [vmem:[%s5958_s0 + $0x18] sm:$0xff] }
  0x29   :  { %1752 = vmatpush.msra.mxu3 %v664_v36  ;;  %1111 = vperm.xlu1 %4030, %v797_v37   ;;  %v627_v60 = vld [vmem:[%s5958_s0 + $0xa0] sm:$0xff]  ;;  %v642_v61 = vld [vmem:[%s5958_s0 + $0x118] sm:$0xff]  ;;  %v609_v63 = vld [vmem:[%s5958_s0 + $0x10] sm:$0xff] }
  0x2a   :  { %1026 = vperm.xlu0 %4029, %v780_v38   ;;  %866 = vperm.xlu2 %4031, %v748_v39   ;;  %v659_v62 = vld [vmem:[%s5958_s0 + $0x1a0] sm:$0xff]  ;;  %v626_v0 = vld [vmem:[%s5958_s0 + $0x98] sm:$0xff]  ;;  %v641_v1 = vld [vmem:[%s5958_s0 + $0x110] sm:$0xff] }
  0x2b   :  { %1127 = vmatpush.msra.mxu0 %v614_v40  ;;  %1335 = vmatpush.msra.mxu1 %v631_v41  ;;  %v658_v2 = vld [vmem:[%s5958_s0 + $0x198] sm:$0xff]  ;;  %v608_v3 = vld [vmem:[%s5958_s0 + $0x8] sm:$0xff]  ;;  %v625_v4 = vld [vmem:[%s5958_s0 + $0x90] sm:$0xff] }
  0x2c   :  { %1545 = vmatpush.msra.mxu2 %v646_v42  ;;  %1753 = vmatpush.msra.mxu3 %v663_v43  ;;  %v640_v5 = vld [vmem:[%s5958_s0 + $0x108] sm:$0xff]  ;;  %v657_v6 = vld [vmem:[%s5958_s0 + $0x190] sm:$0xff]  ;;  %v607_v7 = vld [vmem:[%s5958_s0] sm:$0xff] }
  0x2d   :  { %1128 = vmatpush.msra.mxu0 %v613_v44  ;;  %1336 = vmatpush.msra.mxu1 %v630_v45  ;;  %v624_v8 = vld [vmem:[%s5958_s0 + $0x88] sm:$0xff]  ;;  %v639_v9 = vld [vmem:[%s5958_s0 + $0x100] sm:$0xff]  ;;  %v97_v12 = vld [vmem:[#allocation4 + $0x10] sm:$0xff] }
  0x2e   :  { %1546 = vmatpush.msra.mxu2 %v645_v46  ;;  %1754 = vmatpush.msra.mxu3 %v662_v47  ;;  %v656_v10 = vld [vmem:[%s5958_s0 + $0x188] sm:$0xff]  ;;  %v95_v11 = vld [vmem:[#allocation4] sm:$0xff]  ;;  %v778_v14 = vld [vmem:[%s5960_s2 + $0x158] sm:$0xff] }
  0x2f   :  { %1129 = vmatpush.msra.mxu0 %v612_v48  ;;  %1337 = vmatpush.msra.mxu1 %v629_v49  ;;  %v764_v13 = vld [vmem:[%s5960_s2 + $0xe8] sm:$0xff]  ;;  %v747_v15 = vld [vmem:[%s5960_s2 + $0x60] sm:$0xff]  ;;  %v98_v19 = vld [vmem:[#allocation4 + $0x18] sm:$0xff] }
  0x30   :  { %1547 = vmatpush.msra.mxu2 %v644_v50  ;;  %1755 = vmatpush.msra.mxu3 %v661_v51  ;;  %v623_v16 = vld [vmem:[%s5958_s0 + $0x80] sm:$0xff]  ;;  %v96_v18 = vld [vmem:[#allocation4 + $0x8] sm:$0xff]  ;;  %v105_v21 = vld [vmem:[#allocation4 + $0x50] sm:$0xff] }
  0x31   :  { %1130 = vmatpush.msra.mxu0 %v611_v52  ;;  %1338 = vmatpush.msra.mxu1 %v628_v53  ;;  %v655_v17 = vld [vmem:[%s5958_s0 + $0x180] sm:$0xff]  ;;  %v746_v23 = vld [vmem:[%s5960_s2 + $0x58] sm:$0xff]  ;;  %v104_v25 = vld [vmem:[#allocation4 + $0x48] sm:$0xff] }
  0x32   :  { %1548 = vmatpush.msra.mxu2 %v643_v54  ;;  %1756 = vmatpush.msra.mxu3 %v660_v55  ;;  %v103_v20 = vld [vmem:[#allocation4 + $0x40] sm:$0xff]  ;;  %v106_v26 = vld [vmem:[#allocation4 + $0x58] sm:$0xff]  ;;  %v113_v28 = vld [vmem:[#allocation4 + $0x90] sm:$0xff] }
  0x33   :  { %1021 = vperm.xlu1 %4030, %v779_v56   ;;  %951 = vperm.xlu0 %4029, %v765_v57   ;;  %v763_v22 = vld [vmem:[%s5960_s2 + $0xe0] sm:$0xff]  ;;  %v794_v29 = vld [vmem:[%s5960_s2 + $0x1d8] sm:$0xff]  ;;  %v745_v30 = vld [vmem:[%s5960_s2 + $0x50] sm:$0xff] }
  0x34   :  { %1106 = vperm.xlu2 %4031, %v796_v58   ;;  %1131 = vmatpush.msra.mxu0 %v610_v59  ;;  %v795_v24 = vld [vmem:[%s5960_s2 + $0x1e0] sm:$0xff]  ;;  %v777_v31 = vld [vmem:[%s5960_s2 + $0x150] sm:$0xff]  ;;  %v112_v32 = vld [vmem:[#allocation4 + $0x88] sm:$0xff] }
  0x35   :  { %1339 = vmatpush.msra.mxu1 %v627_v60  ;;  %1549 = vmatpush.msra.mxu2 %v642_v61  ;;  %v111_v27 = vld [vmem:[#allocation4 + $0x80] sm:$0xff]  ;;  %v114_v33 = vld [vmem:[#allocation4 + $0x98] sm:$0xff]  ;;  %v121_v35 = vld [vmem:[#allocation4 + $0xd0] sm:$0xff] }
  0x36   :  { %1757 = vmatpush.msra.mxu3 %v659_v62  ;;  %1132 = vmatpush.msra.mxu0 %v609_v63  ;;  %v119_v34 = vld [vmem:[#allocation4 + $0xc0] sm:$0xff]  ;;  %v776_v36 = vld [vmem:[%s5960_s2 + $0x148] sm:$0xff]  ;;  %v793_v37 = vld [vmem:[%s5960_s2 + $0x1d0] sm:$0xff] }
  0x37   :  { %1340 = vmatpush.msra.mxu1 %v626_v0  ;;  %1550 = vmatpush.msra.mxu2 %v641_v1  ;;  %v762_v38 = vld [vmem:[%s5960_s2 + $0xd8] sm:$0xff]  ;;  %v120_v39 = vld [vmem:[#allocation4 + $0xc8] sm:$0xff]  ;;  %v127_v41 = vld [vmem:[#allocation4 + $0x100] sm:$0xff] }
  0x38   :  { %1758 = vmatpush.msra.mxu3 %v658_v2  ;;  %1133 = vmatpush.msra.mxu0 %v608_v3  ;;  %v122_v40 = vld [vmem:[#allocation4 + $0xd8] sm:$0xff]  ;;  %v129_v42 = vld [vmem:[#allocation4 + $0x110] sm:$0xff]  ;;  %v775_v44 = vld [vmem:[%s5960_s2 + $0x140] sm:$0xff] }
  0x39   :  { %1341 = vmatpush.msra.mxu1 %v625_v4  ;;  %1551 = vmatpush.msra.mxu2 %v640_v5  ;;  %v761_v43 = vld [vmem:[%s5960_s2 + $0xd0] sm:$0xff]  ;;  %v744_v45 = vld [vmem:[%s5960_s2 + $0x48] sm:$0xff]  ;;  %v130_v47 = vld [vmem:[#allocation4 + $0x118] sm:$0xff] }
  0x3a   :  { %1759 = vmatpush.msra.mxu3 %v657_v6  ;;  %1134 = vmatpush.msra.mxu0 %v607_v7  ;;  %v128_v46 = vld [vmem:[#allocation4 + $0x108] sm:$0xff]  ;;  %v135_v48 = vld [vmem:[#allocation4 + $0x140] sm:$0xff]  ;;  %v137_v49 = vld [vmem:[#allocation4 + $0x150] sm:$0xff] }
  0x3b   :  { %1342 = vmatpush.msra.mxu1 %v624_v8  ;;  %1552 = vmatpush.msra.mxu2 %v639_v9  ;;  %v760_v50 = vld [vmem:[%s5960_s2 + $0xc8] sm:$0xff]  ;;  %v743_v51 = vld [vmem:[%s5960_s2 + $0x40] sm:$0xff]  ;;  %v138_v54 = vld [vmem:[#allocation4 + $0x158] sm:$0xff] }
  0x3c   :  { %1760 = vmatpush.msra.mxu3 %v656_v10  ;;  %1135 = vmatmul.f32.vlgmr.msra.gmra.mxu0 %v95_v11  ;;  %v792_v52 = vld [vmem:[%s5960_s2 + $0x1c8] sm:$0xff]  ;;  %v143_v55 = vld [vmem:[#allocation4 + $0x180] sm:$0xff]  ;;  %v145_v56 = vld [vmem:[#allocation4 + $0x190] sm:$0xff] }
  0x3d   :  { %1553 = vmatmul.f32.vlgmr.msra.gmra.mxu2 %v97_v12  ;;  %946 = vperm.xlu1 %4030, %v764_v13   ;;  %v136_v53 = vld [vmem:[#allocation4 + $0x148] sm:$0xff]  ;;  %v791_v57 = vld [vmem:[%s5960_s2 + $0x1c0] sm:$0xff]  ;;  %v742_v58 = vld [vmem:[%s5960_s2 + $0x38] sm:$0xff] }
  0x3e   :  { %1016 = vperm.xlu2 %4031, %v778_v14   ;;  %861 = vperm.xlu0 %4029, %v747_v15   ;;  %v774_v59 = vld [vmem:[%s5960_s2 + $0x138] sm:$0xff]  ;;  %v144_v60 = vld [vmem:[#allocation4 + $0x188] sm:$0xff]  ;;  %v151_v62 = vld [vmem:[#allocation4 + $0x1c0] sm:$0xff] }
  0x3f   :  { %1343 = vmatpush.msra.mxu1 %v623_v16  ;;  %1761 = vmatpush.msra.mxu3 %v655_v17  ;;  %v146_v61 = vld [vmem:[#allocation4 + $0x198] sm:$0xff]  ;;  %v153_v63 = vld [vmem:[#allocation4 + $0x1d0] sm:$0xff]  ;;  %v759_v3 = vld [vmem:[%s5960_s2 + $0xc0] sm:$0xff] }
  0x40   :  { %1344 = vmatmul.f32.vlgmr.msra.gmra.mxu1 %v96_v18  ;;  %1762 = vmatmul.f32.vlgmr.msra.gmra.mxu3 %v98_v19  ;;  %v773_v0 = vld [vmem:[%s5960_s2 + $0x130] sm:$0xff]  ;;  %v790_v1 = vld [vmem:[%s5960_s2 + $0x1b8] sm:$0xff]  ;;  %v152_v4 = vld [vmem:[#allocation4 + $0x1c8] sm:$0xff] }
  0x41   :  { %v154_v5 = vld [vmem:[#allocation4 + $0x1d8] sm:$0xff]  ;;  %v159_v6 = vld [vmem:[#allocation4 + $0x200] sm:$0xff]  ;;  %v161_v7 = vld [vmem:[#allocation4 + $0x210] sm:$0xff] }
  0x42   :  { %v758_v8 = vld [vmem:[%s5960_s2 + $0xb8] sm:$0xff]  ;;  %v772_v9 = vld [vmem:[%s5960_s2 + $0x128] sm:$0xff]  ;;  %v741_v11 = vld [vmem:[%s5960_s2 + $0x30] sm:$0xff] }
  0x43   :  { %v160_v12 = vld [vmem:[#allocation4 + $0x208] sm:$0xff]  ;;  %v162_v13 = vld [vmem:[#allocation4 + $0x218] sm:$0xff]  ;;  %v167_v14 = vld [vmem:[#allocation4 + $0x240] sm:$0xff] }
  0x44   :  { %1138 = vmatmul.f32.gmra.mxu0 %v103_v20  ;;  %v169_v15 = vld [vmem:[#allocation4 + $0x250] sm:$0xff]  ;;  %v740_v17 = vld [vmem:[%s5960_s2 + $0x28] sm:$0xff] }
  0x45   :  { %1556 = vmatmul.f32.gmra.mxu2 %v105_v21  ;;  %856 = vperm.xlu1 %4030, %v746_v23   ;;  %v757_v16 = vld [vmem:[%s5960_s2 + $0xb0] sm:$0xff]  ;;  %v168_v19 = vld [vmem:[#allocation4 + $0x248] sm:$0xff]  ;;  %v170_v21 = vld [vmem:[#allocation4 + $0x258] sm:$0xff] }
  0x46   :  { %941 = vperm.xlu2 %4031, %v763_v22   ;;  %1101 = vperm.xlu0 %4029, %v795_v24   ;;  %v789_v18 = vld [vmem:[%s5960_s2 + $0x1b0] sm:$0xff]  ;;  %v175_v22 = vld [vmem:[#allocation4 + $0x280] sm:$0xff] }
  0x47   :  { %v177_v23 = vld [vmem:[#allocation4 + $0x290] sm:$0xff] }
  0x48   :  { %1347 = vmatmul.f32.gmra.mxu1 %v104_v25  ;;  %1765 = vmatmul.f32.gmra.mxu3 %v106_v26  ;;  %v788_v26 = vld [vmem:[%s5960_s2 + $0x1a8] sm:$0xff] }
  0x4c   :  { %1141 = vmatmul.f32.gmra.mxu0 %v111_v27  ;;  %v739_v27 = vld [vmem:[%s5960_s2 + $0x20] sm:$0xff] }
  0x4d   :  { %1559 = vmatmul.f32.gmra.mxu2 %v113_v28  ;;  %1096 = vperm.xlu1 %4030, %v794_v29   ;;  %v771_v28 = vld [vmem:[%s5960_s2 + $0x120] sm:$0xff]  ;;  %v176_v29 = vld [vmem:[#allocation4 + $0x288] sm:$0xff] }
  0x4e   :  { %851 = vperm.xlu2 %4031, %v745_v30   ;;  %1011 = vperm.xlu0 %4029, %v777_v31   ;;  %v178_v30 = vld [vmem:[#allocation4 + $0x298] sm:$0xff] }
  0x50   :  { %1350 = vmatmul.f32.gmra.mxu1 %v112_v32  ;;  %1768 = vmatmul.f32.gmra.mxu3 %v114_v33  ;;  %v183_v32 = vld [vmem:[#allocation4 + $0x2c0] sm:$0xff]  ;;  %v185_v33 = vld [vmem:[#allocation4 + $0x2d0] sm:$0xff] }
  0x54   :  { %1144 = vmatmul.f32.gmra.mxu0 %v119_v34 }
  0x55   :  { %1562 = vmatmul.f32.gmra.mxu2 %v121_v35  ;;  %1006 = vperm.xlu1 %4030, %v776_v36   ;;  %v770_v35 = vld [vmem:[%s5960_s2 + $0x118] sm:$0xff]  ;;  %v787_v36 = vld [vmem:[%s5960_s2 + $0x1a0] sm:$0xff] }
  0x56   :  { %1091 = vperm.xlu2 %4031, %v793_v37   ;;  %936 = vperm.xlu0 %4029, %v762_v38   ;;  %v756_v38 = vld [vmem:[%s5960_s2 + $0xa8] sm:$0xff] }
  0x58   :  { %1353 = vmatmul.f32.gmra.mxu1 %v120_v39  ;;  %1771 = vmatmul.f32.gmra.mxu3 %v122_v40  ;;  %v184_v39 = vld [vmem:[#allocation4 + $0x2c8] sm:$0xff]  ;;  %v186_v40 = vld [vmem:[#allocation4 + $0x2d8] sm:$0xff] }
  0x5c   :  { %1147 = vmatmul.f32.gmra.mxu0 %v127_v41 }
  0x5d   :  { %1565 = vmatmul.f32.gmra.mxu2 %v129_v42  ;;  %931 = vperm.xlu1 %4030, %v761_v43   ;;  %v191_v42 = vld [vmem:[#allocation4 + $0x300] sm:$0xff]  ;;  %v193_v43 = vld [vmem:[#allocation4 + $0x310] sm:$0xff] }
  0x5e   :  { %1001 = vperm.xlu2 %4031, %v775_v44   ;;  %846 = vperm.xlu0 %4029, %v744_v45   ;;  %v755_v44 = vld [vmem:[%s5960_s2 + $0xa0] sm:$0xff]  ;;  %v769_v45 = vld [vmem:[%s5960_s2 + $0x110] sm:$0xff] }
  0x60   :  { %1356 = vmatmul.f32.gmra.mxu1 %v128_v46  ;;  %1774 = vmatmul.f32.gmra.mxu3 %v130_v47  ;;  %v738_v46 = vld [vmem:[%s5960_s2 + $0x18] sm:$0xff] }
  0x64   :  { %1150 = vmatmul.f32.gmra.mxu0 %v135_v48  ;;  %v192_v48 = vld [vmem:[#allocation4 + $0x308] sm:$0xff] }
  0x65   :  { %1568 = vmatmul.f32.gmra.mxu2 %v137_v49  ;;  %841 = vperm.xlu1 %4030, %v743_v51  }
  0x66   :  { %926 = vperm.xlu2 %4031, %v760_v50   ;;  %1086 = vperm.xlu0 %4029, %v792_v52   ;;  %v194_v50 = vld [vmem:[#allocation4 + $0x318] sm:$0xff]  ;;  %v199_v52 = vld [vmem:[#allocation4 + $0x340] sm:$0xff] }
  0x68   :  { %1359 = vmatmul.f32.gmra.mxu1 %v136_v53  ;;  %1777 = vmatmul.f32.gmra.mxu3 %v138_v54  ;;  %v201_v53 = vld [vmem:[#allocation4 + $0x350] sm:$0xff]  ;;  %v754_v54 = vld [vmem:[%s5960_s2 + $0x98] sm:$0xff] }
  0x6c   :  { %1153 = vmatmul.f32.gmra.mxu0 %v143_v55  ;;  %v737_v55 = vld [vmem:[%s5960_s2 + $0x10] sm:$0xff] }
  0x6d   :  { %1571 = vmatmul.f32.gmra.mxu2 %v145_v56  ;;  %1081 = vperm.xlu1 %4030, %v791_v57   ;;  %v786_v56 = vld [vmem:[%s5960_s2 + $0x198] sm:$0xff]  ;;  %v200_v57 = vld [vmem:[#allocation4 + $0x348] sm:$0xff] }
  0x6e   :  { %836 = vperm.xlu2 %4031, %v742_v58   ;;  %996 = vperm.xlu0 %4029, %v774_v59   ;;  %v202_v58 = vld [vmem:[#allocation4 + $0x358] sm:$0xff] }
  0x70   :  { %1362 = vmatmul.f32.gmra.mxu1 %v144_v60  ;;  %1780 = vmatmul.f32.gmra.mxu3 %v146_v61 }
  0x72   :  { %v4506_v2 = vpop.permute.xlu2 %871 }
  0x74   :  { %1156 = vmatmul.f32.gmra.mxu0 %v151_v62  ;;  %v207_v62 = vld [vmem:[#allocation4 + $0x380] sm:$0xff] }
  0x75   :  { %1574 = vmatmul.f32.gmra.mxu2 %v153_v63  ;;  %991 = vperm.xlu1 %4030, %v773_v0   ;;  %v209_v63 = vld [vmem:[#allocation4 + $0x390] sm:$0xff]  ;;  %v736_v0 = vld [vmem:[%s5960_s2 + $0x8] sm:$0xff] }
  0x76   :  { %1076 = vperm.xlu2 %4031, %v790_v1   ;;  %921 = vperm.xlu0 %4029, %v759_v3   ;;  %v785_v1 = vld [vmem:[%s5960_s2 + $0x190] sm:$0xff]  ;;  %v768_v3 = vld [vmem:[%s5960_s2 + $0x108] sm:$0xff] }
  0x78   :  { %1365 = vmatmul.f32.gmra.mxu1 %v152_v4  ;;  %1783 = vmatmul.f32.gmra.mxu3 %v154_v5  ;;  %v208_v4 = vld [vmem:[#allocation4 + $0x388] sm:$0xff]  ;;  %v210_v5 = vld [vmem:[#allocation4 + $0x398] sm:$0xff] }
  0x7b   :  { %v4517_v10 = vpop.permute.xlu2 %956 }
  0x7c   :  { %1159 = vmatmul.f32.gmra.mxu0 %v159_v6 }
  0x7d   :  { %1577 = vmatmul.f32.gmra.mxu2 %v161_v7  ;;  %916 = vperm.xlu1 %4030, %v758_v8  }
  0x7e   :  { %986 = vperm.xlu2 %4031, %v772_v9   ;;  %831 = vperm.xlu0 %4029, %v741_v11   ;;  %v215_v9 = vld [vmem:[#allocation4 + $0x3c0] sm:$0xff]  ;;  %v217_v11 = vld [vmem:[#allocation4 + $0x3d0] sm:$0xff] }
  0x80   :  { %1368 = vmatmul.f32.gmra.mxu1 %v160_v12  ;;  %1786 = vmatmul.f32.gmra.mxu3 %v162_v13  ;;  %v767_v12 = vld [vmem:[%s5960_s2 + $0x100] sm:$0xff]  ;;  %v753_v13 = vld [vmem:[%s5960_s2 + $0x90] sm:$0xff] }
  0x84   :  { %1162 = vmatmul.f32.gmra.mxu0 %v167_v14  ;;  %v4531_v20 = vpop.permute.xlu2 %866  ;;  %v216_v14 = vld [vmem:[#allocation4 + $0x3c8] sm:$0xff] }
  0x85   :  { %1580 = vmatmul.f32.gmra.mxu2 %v169_v15  ;;  %826 = vperm.xlu1 %4030, %v740_v17   ;;  %v218_v15 = vld [vmem:[#allocation4 + $0x3d8] sm:$0xff] }
  0x86   :  { %911 = vperm.xlu2 %4031, %v757_v16   ;;  %1071 = vperm.xlu0 %4029, %v789_v18  }
  0x88   :  { %1371 = vmatmul.f32.gmra.mxu1 %v168_v19  ;;  %1789 = vmatmul.f32.gmra.mxu3 %v170_v21  ;;  %v223_v21 = vld [vmem:[#allocation4 + $0x400] sm:$0xff] }
  0x89   :  { %v4535_v25 = vpop.permute.xlu1 %1031 }
  0x8a   :  { %v4533_v24 = vpop.permute.xlu0 %1036 }
  0x8c   :  { %1165 = vmatmul.f32.gmra.mxu0 %v175_v22  ;;  %v225_v22 = vld [vmem:[#allocation4 + $0x410] sm:$0xff] }
  0x8d   :  { %1583 = vmatmul.f32.gmra.mxu2 %v177_v23  ;;  %1066 = vperm.xlu1 %4030, %v788_v26   ;;  %v752_v23 = vld [vmem:[%s5960_s2 + $0x88] sm:$0xff]  ;;  %v735_v26 = vld [vmem:[%s5960_s2] sm:$0xff] }
  0x8e   :  { %821 = vperm.xlu2 %4031, %v739_v27   ;;  %v4546_v31 = vpop.permute.xlu2 %1106  ;;  %981 = vperm.xlu0 %4029, %v771_v28   ;;  %v224_v28 = vld [vmem:[#allocation4 + $0x408] sm:$0xff] }
  0x8f   :  { %5968 = vst [vmem:[#allocation14_spill] sm:$0xff] %v4546_v31 }
  0x90   :  { %1374 = vmatmul.f32.gmra.mxu1 %v176_v29  ;;  %1792 = vmatmul.f32.gmra.mxu3 %v178_v30  ;;  %v226_v29 = vld [vmem:[#allocation4 + $0x418] sm:$0xff] }
  0x92   :  { %v4548_v34 = vpop.permute.xlu1 %1116  ;;  %v4556_v37 = vpop.permute.xlu0 %876 }
  0x93   :  { %5969 = vst [vmem:[#allocation15_spill] sm:$0xff] %v4548_v34 }
  0x94   :  { %1168 = vmatmul.f32.gmra.mxu0 %v183_v32 }
  0x95   :  { %1586 = vmatmul.f32.gmra.mxu2 %v185_v33  ;;  %976 = vperm.xlu1 %4030, %v770_v35  }
  0x96   :  { %1061 = vperm.xlu2 %4031, %v787_v36   ;;  %906 = vperm.xlu0 %4029, %v756_v38   ;;  %v231_v38 = vld [vmem:[#allocation4 + $0x440] sm:$0xff] }
  0x98   :  { %1377 = vmatmul.f32.gmra.mxu1 %v184_v39  ;;  %v4561_v41 = vpop.permute.xlu2 %1016  ;;  %1795 = vmatmul.f32.gmra.mxu3 %v186_v40  ;;  %v233_v39 = vld [vmem:[#allocation4 + $0x450] sm:$0xff] }
  0x9b   :  { %v4572_v47 = vpop.permute.xlu1 %1111 }
  0x9c   :  { %5970 = vst [vmem:[#allocation16_spill] sm:$0xff] %v4572_v47  ;;  %1171 = vmatmul.f32.gmra.mxu0 %v191_v42  ;;  %v4574_v49 = vpop.permute.xlu0 %1026  ;;  %v751_v42 = vld [vmem:[%s5960_s2 + $0x80] sm:$0xff] }
  0x9d   :  { %1589 = vmatmul.f32.gmra.mxu2 %v193_v43  ;;  %901 = vperm.xlu1 %4030, %v755_v44   ;;  %v232_v44 = vld [vmem:[#allocation4 + $0x448] sm:$0xff] }
  0x9e   :  { %971 = vperm.xlu2 %4031, %v769_v45   ;;  %816 = vperm.xlu0 %4029, %v738_v46   ;;  %v234_v45 = vld [vmem:[#allocation4 + $0x458] sm:$0xff] }
  0xa0   :  { %1380 = vmatmul.f32.gmra.mxu1 %v192_v48  ;;  %v4576_v51 = vpop.permute.xlu2 %941  ;;  %1798 = vmatmul.f32.gmra.mxu3 %v194_v50 }
  0xa4   :  { %1174 = vmatmul.f32.gmra.mxu0 %v199_v52 }
  0xa5   :  { %1592 = vmatmul.f32.gmra.mxu2 %v201_v53  ;;  %811 = vperm.xlu1 %4030, %v737_v55   ;;  %v4587_v59 = vpop.permute.xlu1 %1021  ;;  %v4589_v60 = vpop.permute.xlu0 %951  ;;  %v241_v55 = vld [vmem:[#allocation4 + $0x490] sm:$0xff] }
  0xa6   :  { %896 = vperm.xlu2 %4031, %v754_v54   ;;  %1056 = vperm.xlu0 %4029, %v786_v56   ;;  %v239_v54 = vld [vmem:[#allocation4 + $0x480] sm:$0xff] }
  0xa8   :  { %1383 = vmatmul.f32.gmra.mxu1 %v200_v57  ;;  %v4591_v61 = vpop.permute.xlu2 %851  ;;  %1801 = vmatmul.f32.gmra.mxu3 %v202_v58  ;;  %v240_v58 = vld [vmem:[#allocation4 + $0x488] sm:$0xff] }
  0xac   :  { %1177 = vmatmul.f32.gmra.mxu0 %v207_v62  ;;  %v242_v62 = vld [vmem:[#allocation4 + $0x498] sm:$0xff] }
  0xad   :  { %1595 = vmatmul.f32.gmra.mxu2 %v209_v63  ;;  %1051 = vperm.xlu1 %4030, %v785_v1  }
  0xae   :  { %806 = vperm.xlu2 %4031, %v736_v0   ;;  %966 = vperm.xlu0 %4029, %v768_v3  }
  0xaf   :  { %v4602_v6 = vpop.permute.xlu1 %946 }
  0xb0   :  { %1386 = vmatmul.f32.gmra.mxu1 %v208_v4  ;;  %v4604_v7 = vpop.permute.xlu2 %1091  ;;  %1804 = vmatmul.f32.gmra.mxu3 %v210_v5  ;;  %v4606_v8 = vpop.permute.xlu0 %861  ;;  %v247_v5 = vld [vmem:[#allocation4 + $0x4c0] sm:$0xff] }
  0xb1   :  { %5971 = vst [vmem:[#allocation17_spill] sm:$0xff] %v4604_v7 }
  0xb4   :  { %1180 = vmatmul.f32.gmra.mxu0 %v215_v9  ;;  %v249_v9 = vld [vmem:[#allocation4 + $0x4d0] sm:$0xff] }
  0xb5   :  { %1598 = vmatmul.f32.gmra.mxu2 %v217_v11  ;;  %961 = vperm.xlu1 %4030, %v767_v12  }
  0xb6   :  { %891 = vperm.xlu0 %4029, %v753_v13   ;;  %v248_v13 = vld [vmem:[#allocation4 + $0x4c8] sm:$0xff] }
  0xb7   :  { %v4614_v16 = vpop.permute.xlu1 %856 }
  0xb8   :  { %1389 = vmatmul.f32.gmra.mxu1 %v216_v14  ;;  %v4616_v17 = vpop.permute.xlu2 %1001  ;;  %1807 = vmatmul.f32.gmra.mxu3 %v218_v15  ;;  %v4618_v18 = vpop.permute.xlu0 %1101  ;;  %v250_v14 = vld [vmem:[#allocation4 + $0x4d8] sm:$0xff] }
  0xb9   :  { %5972 = vst [vmem:[#allocation18_spill] sm:$0xff] %v4618_v18  ;;  %v4620_v19 = vpop.f32.mrf.mxu0 }
  0xba   :  { %5973 = vst [vmem:[#allocation19_spill] sm:$0xff] %v4620_v19 }
  0xbc   :  { %1183 = vmatmul.f32.gmra.mxu0 %v223_v21 }
  0xbd   :  { %v4628_v27 = vpop.f32.mrf.mxu1  ;;  %1601 = vmatmul.f32.gmra.mxu2 %v225_v22  ;;  %886 = vperm.xlu1 %4030, %v752_v23  }
  0xbe   :  { %5974 = vst [vmem:[#allocation20_spill] sm:$0xff] %v4628_v27  ;;  %801 = vperm.xlu0 %4029, %v735_v26  }
  0xbf   :  { %v4630_v30 = vpop.permute.xlu1 %1096 }
  0xc0   :  { %1392 = vmatmul.f32.gmra.mxu1 %v224_v28  ;;  %5975 = vst [vmem:[#allocation21_spill] sm:$0xff] %v4630_v30  ;;  %v4632_v32 = vpop.permute.xlu2 %926  ;;  %1810 = vmatmul.f32.gmra.mxu3 %v226_v29  ;;  %v4634_v33 = vpop.permute.xlu0 %1011  ;;  %v255_v28 = vld [vmem:[#allocation4 + $0x500] sm:$0xff]  ;;  %v257_v29 = vld [vmem:[#allocation4 + $0x510] sm:$0xff] }
  0xc1   :  { %v4636_v35 = vpop.f32.mrf.mxu2  ;;  %v4638_v36 = vpop.f32.mrf.mxu0 }
  0xc2   :  { %5976 = vst [vmem:[#allocation22_spill] sm:$0xff] %v4636_v35  ;;  %v273_v35 = vld [vmem:[#allocation4 + $0x590] sm:$0xff] }
  0xc3   :  { %v4640_v40 = vpop.f32.mrf.mxu3 }
  0xc4   :  { %5977 = vst [vmem:[#allocation23_spill] sm:$0xff] %v4640_v40  ;;  %1186 = vmatmul.f32.gmra.mxu0 %v231_v38  ;;  %v271_v40 = vld [vmem:[#allocation4 + $0x580] sm:$0xff] }
  0xc5   :  { %v4645_v43 = vpop.f32.mrf.mxu1  ;;  %1604 = vmatmul.f32.gmra.mxu2 %v233_v39 }
  0xc6   :  { %881 = vperm.xlu0 %4029, %v751_v42   ;;  %v256_v42 = vld [vmem:[#allocation4 + $0x508] sm:$0xff] }
  0xc7   :  { %v4647_v46 = vpop.permute.xlu1 %1006 }
  0xc8   :  { %1395 = vmatmul.f32.gmra.mxu1 %v232_v44  ;;  %v4649_v48 = vpop.permute.xlu2 %836  ;;  %1813 = vmatmul.f32.gmra.mxu3 %v234_v45  ;;  %v4651_v50 = vpop.permute.xlu0 %936  ;;  %v258_v44 = vld [vmem:[#allocation4 + $0x518] sm:$0xff] }
  0xc9   :  { %v4653_v52 = vpop.f32.mrf.mxu2  ;;  %v4655_v53 = vpop.f32.mrf.mxu0 }
  0xca   :  { %5978 = vst [vmem:[#allocation24_spill] sm:$0xff] %v4655_v53 }
  0xcb   :  { %v4657_v56 = vpop.f32.mrf.mxu3 }
  0xcc   :  { %1189 = vmatmul.f32.gmra.mxu0 %v239_v54 }
  0xcd   :  { %v4659_v57 = vpop.f32.mrf.mxu1  ;;  %1607 = vmatmul.f32.gmra.mxu2 %v241_v55 }
  0xce   :  { %5979 = vst [vmem:[#allocation25_spill] sm:$0xff] %v4659_v57 }
  0xcf   :  { %v4661_v63 = vpop.permute.xlu1 %931 }
  0xd0   :  { %1398 = vmatmul.f32.gmra.mxu1 %v240_v58  ;;  %v4663_v0 = vpop.permute.xlu2 %1076  ;;  %1816 = vmatmul.f32.gmra.mxu3 %v242_v62  ;;  %v4665_v1 = vpop.permute.xlu0 %846 }
  0xd1   :  { %v4667_v3 = vpop.f32.mrf.mxu2  ;;  %v4669_v4 = vpop.f32.mrf.mxu0 }
  0xd2   :  { %5980 = vst [vmem:[#allocation26_spill] sm:$0xff] %v4667_v3 }
  0xd3   :  { %v4671_v11 = vpop.f32.mrf.mxu3 }
  0xd4   :  { %5981 = vst [vmem:[#allocation27_spill] sm:$0xff] %v4671_v11  ;;  %1192 = vmatmul.f32.gmra.mxu0 %v247_v5  ;;  %v263_v5 = vld [vmem:[#allocation4 + $0x540] sm:$0xff] }
  0xd5   :  { %v4673_v12 = vpop.f32.mrf.mxu1  ;;  %1610 = vmatmul.f32.gmra.mxu2 %v249_v9  ;;  %v265_v9 = vld [vmem:[#allocation4 + $0x550] sm:$0xff] }
  0xd7   :  { %v4675_v15 = vpop.permute.xlu1 %841 }
  0xd8   :  { %1401 = vmatmul.f32.gmra.mxu1 %v248_v13  ;;  %v4677_v21 = vpop.permute.xlu2 %986  ;;  %1819 = vmatmul.f32.gmra.mxu3 %v250_v14  ;;  %v4679_v22 = vpop.permute.xlu0 %1086 }
  0xd9   :  { %5982 = vst [vmem:[#allocation28_spill] sm:$0xff] %v4679_v22  ;;  %v4681_v23 = vpop.f32.mrf.mxu2  ;;  %v1148_v26 = vpop.f32.mrf.mxu0 }
  0xdb   :  { %v4683_v38 = vpop.f32.mrf.mxu3 }
  0xdc   :  { %1195 = vmatmul.f32.gmra.mxu0 %v255_v28  ;;  %v264_v28 = vld [vmem:[#allocation4 + $0x548] sm:$0xff] }
  0xdd   :  { %v1357_v39 = vpop.f32.mrf.mxu1  ;;  %1613 = vmatmul.f32.gmra.mxu2 %v257_v29  ;;  %v266_v29 = vld [vmem:[#allocation4 + $0x558] sm:$0xff] }
  0xdf   :  { %v4685_v45 = vpop.permute.xlu1 %1081 }
  0xe0   :  { %1404 = vmatmul.f32.gmra.mxu1 %v256_v42  ;;  %v4687_v54 = vpop.permute.xlu2 %911  ;;  %1822 = vmatmul.f32.gmra.mxu3 %v258_v44  ;;  %v4689_v55 = vpop.permute.xlu0 %996 }
  0xe1   :  { %v1566_v58 = vpop.f32.mrf.mxu2  ;;  %v1151_v62 = vpop.f32.mrf.mxu0 }
  0xe3   :  { %v1775_v13 = vpop.f32.mrf.mxu3 }
  0xe4   :  { %1198 = vmatmul.f32.gmra.mxu0 %v263_v5  ;;  %v272_v5 = vld [vmem:[#allocation4 + $0x588] sm:$0xff] }
  0xe5   :  { %v1360_v14 = vpop.f32.mrf.mxu1  ;;  %1616 = vmatmul.f32.gmra.mxu2 %v265_v9  ;;  %v274_v9 = vld [vmem:[#allocation4 + $0x598] sm:$0xff] }
  0xe7   :  { %v4691_v11 = vpop.permute.xlu1 %991 }
  0xe8   :  { %1407 = vmatmul.f32.gmra.mxu1 %v264_v28  ;;  %v822_v42 = vpop.permute.xlu2 %821  ;;  %1825 = vmatmul.f32.gmra.mxu3 %v266_v29  ;;  %v4693_v3 = vpop.permute.xlu0 %921 }
  0xe9   :  { %v1149_v44 = vadd.f32 %v1148_v26, %v822_v42  ;;  %v1569_v57 = vpop.f32.mrf.mxu2  ;;  %v1154_v53 = vpop.f32.mrf.mxu0 }
  0xeb   :  { %v1358_v34 = vadd.f32 %v1357_v39, %v1149_v44  ;;  %v1778_v27 = vpop.f32.mrf.mxu3  ;;  %v279_v39 = vld [vmem:[#allocation4 + $0x5c0] sm:$0xff]  ;;  %v281_v44 = vld [vmem:[#allocation4 + $0x5d0] sm:$0xff] }
  0xec   :  { %1201 = vmatmul.f32.gmra.mxu0 %v271_v40 }
  0xed   :  { %v1567_v19 = vadd.f32 %v1566_v58, %v1358_v34  ;;  %v1363_v47 = vpop.f32.mrf.mxu1  ;;  %1619 = vmatmul.f32.gmra.mxu2 %v273_v35 }
  0xef   :  { %v4695_v28 = vadd.f32 %v1775_v13, %v1567_v19  ;;  %v4697_v31 = vpop.permute.xlu1 %916  ;;  %v280_v19 = vld [vmem:[#allocation4 + $0x5c8] sm:$0xff] }
  0xf0   :  { %1410 = vmatmul.f32.gmra.mxu1 %v272_v5  ;;  %v4699_v29 = vpop.permute.xlu2 %1061  ;;  %1828 = vmatmul.f32.gmra.mxu3 %v274_v9  ;;  %v832_v26 = vpop.permute.xlu0 %831 }
  0xf1   :  { %5983 = vst [vmem:[#allocation29_spill] sm:$0xff] %v4695_v28  ;;  %v1572_v42 = vpop.f32.mrf.mxu2  ;;  %v1155_v18 = vadd.f32 %v1154_v53, %v832_v26  ;;  %v1157_v30 = vpop.f32.mrf.mxu0  ;;  %v282_v28 = vld [vmem:[#allocation4 + $0x5d8] sm:$0xff] }
  0xf2   :  { %v1158_v34 = vadd.f32 %v1157_v30, %v4649_v48  ;;  %v287_v48 = vld [vmem:[#allocation4 + $0x600] sm:$0xff] }
  0xf3   :  { %v1364_v40 = vadd.f32 %v1363_v47, %v1155_v18  ;;  %v1781_v35 = vpop.f32.mrf.mxu3 }
  0xf4   :  { %1204 = vmatmul.f32.gmra.mxu0 %v279_v39  ;;  %v289_v39 = vld [vmem:[#allocation4 + $0x610] sm:$0xff] }
  0xf5   :  { %v1366_v58 = vpop.f32.mrf.mxu1  ;;  %1622 = vmatmul.f32.gmra.mxu2 %v281_v44  ;;  %v1573_v13 = vadd.f32 %v1572_v42, %v1364_v40 }
  0xf6   :  { %v1367_v5 = vadd.f32 %v1366_v58, %v1158_v34 }
  0xf7   :  { %v4702_v7 = vadd.f32 %v1781_v35, %v1573_v13  ;;  %v827_v9 = vpop.permute.xlu1 %826  ;;  %v290_v13 = vld [vmem:[#allocation4 + $0x618] sm:$0xff] }
  0xf8   :  { %1413 = vmatmul.f32.gmra.mxu1 %v280_v19  ;;  %v4704_v22 = vpop.permute.xlu2 %971  ;;  %1831 = vmatmul.f32.gmra.mxu3 %v282_v28  ;;  %v4706_v53 = vpop.permute.xlu0 %1071  ;;  %v1152_v26 = vadd.f32 %v1151_v62, %v827_v9  ;;  %v288_v19 = vld [vmem:[#allocation4 + $0x608] sm:$0xff] }
  0xf9   :  { %5984 = vst [vmem:[#allocation30_spill] sm:$0xff] %v4702_v7  ;;  %v1575_v30 = vpop.f32.mrf.mxu2  ;;  %v1160_v18 = vpop.f32.mrf.mxu0 }
  0xfa   :  { %v1576_v47 = vadd.f32 %v1575_v30, %v1367_v5  ;;  %v1361_v44 = vadd.f32 %v1360_v14, %v1152_v26  ;;  %v1161_v42 = vadd.f32 %v1160_v18, %v4675_v15  ;;  %v297_v26 = vld [vmem:[#allocation4 + $0x650] sm:$0xff] }
  0xfb   :  { %v1784_v34 = vpop.f32.mrf.mxu3 }
  0xfc   :  { %v1570_v40 = vadd.f32 %v1569_v57, %v1361_v44  ;;  %v4709_v35 = vadd.f32 %v1784_v34, %v1576_v47  ;;  %1207 = vmatmul.f32.gmra.mxu0 %v287_v48  ;;  %v295_v57 = vld [vmem:[#allocation4 + $0x640] sm:$0xff] }
  0xfd   :  { %v1369_v58 = vpop.f32.mrf.mxu1  ;;  %1625 = vmatmul.f32.gmra.mxu2 %v289_v39 }
  0xfe   :  { %v1370_v28 = vadd.f32 %v1369_v58, %v1161_v42  ;;  %v4711_v7 = vadd.f32 %v1778_v27, %v1570_v40  ;;  %v296_v27 = vld [vmem:[#allocation4 + $0x648] sm:$0xff]  ;;  %v298_v42 = vld [vmem:[#allocation4 + $0x658] sm:$0xff] }
  0xff   :  { %v4720_v39 = vpop.permute.xlu1 %1066 }
 0x100   :  { %1416 = vmatmul.f32.gmra.mxu1 %v288_v19  ;;  %v4713_v62 = vpop.permute.xlu2 %896  ;;  %1834 = vmatmul.f32.gmra.mxu3 %v290_v13  ;;  %v4715_v5 = vpop.permute.xlu0 %981  ;;  %v303_v13 = vld [vmem:[#allocation4 + $0x680] sm:$0xff] }
 0x101   :  { %v1578_v14 = vpop.f32.mrf.mxu2  ;;  %v1163_v9 = vpop.f32.mrf.mxu0 }
 0x102   :  { %v1579_v15 = vadd.f32 %v1578_v14, %v1370_v28  ;;  %v1164_v30 = vadd.f32 %v1163_v9, %v4665_v1  ;;  %v305_v14 = vld [vmem:[#allocation4 + $0x690] sm:$0xff] }
 0x103   :  { %v1787_v47 = vpop.f32.mrf.mxu3 }
 0x104   :  { %v4718_v18 = vadd.f32 %v1787_v47, %v1579_v15  ;;  %1210 = vmatmul.f32.gmra.mxu0 %v295_v57 }
 0x105   :  { %v1372_v48 = vpop.f32.mrf.mxu1  ;;  %1628 = vmatmul.f32.gmra.mxu2 %v297_v26 }
 0x106   :  { %v1373_v44 = vadd.f32 %v1372_v48, %v1164_v30  ;;  %v304_v48 = vld [vmem:[#allocation4 + $0x688] sm:$0xff] }
 0x108   :  { %1419 = vmatmul.f32.gmra.mxu1 %v296_v27  ;;  %v807_v34 = vpop.permute.xlu2 %806  ;;  %1837 = vmatmul.f32.gmra.mxu3 %v298_v42  ;;  %v4722_v40 = vpop.permute.xlu0 %906 }
 0x109   :  { %v1140_v58 = vadd.f32 %v4638_v36, %v807_v34  ;;  %v1581_v19 = vpop.f32.mrf.mxu2  ;;  %v1166_v28 = vpop.f32.mrf.mxu0  ;;  %v306_v36 = vld [vmem:[#allocation4 + $0x698] sm:$0xff] }
 0x10a   :  { %v1582_v1 = vadd.f32 %v1581_v19, %v1373_v44  ;;  %v1167_v9 = vadd.f32 %v1166_v28, %v4591_v61  ;;  %v4733_v42 = vpop.permute.xlu1 %976  ;;  %v311_v19 = vld [vmem:[#allocation4 + $0x6c0] sm:$0xff] }
 0x10b   :  { %v1349_v15 = vadd.f32 %v4645_v43, %v1140_v58  ;;  %v1790_v57 = vpop.f32.mrf.mxu3 }
 0x10c   :  { %v4728_v30 = vadd.f32 %v1790_v57, %v1582_v1  ;;  %1213 = vmatmul.f32.gmra.mxu0 %v303_v13  ;;  %v313_v1 = vld [vmem:[#allocation4 + $0x6d0] sm:$0xff] }
 0x10d   :  { %v1558_v26 = vadd.f32 %v4653_v52, %v1349_v15  ;;  %v1375_v47 = vpop.f32.mrf.mxu1  ;;  %1631 = vmatmul.f32.gmra.mxu2 %v305_v14 }
 0x10e   :  { %5985 = vst [vmem:[#allocation31_spill] sm:$0xff] %v4728_v30  ;;  %v1376_v27 = vadd.f32 %v1375_v47, %v1167_v9  ;;  %v312_v9 = vld [vmem:[#allocation4 + $0x6c8] sm:$0xff]  ;;  %v314_v47 = vld [vmem:[#allocation4 + $0x6d8] sm:$0xff] }
 0x10f   :  { %v4731_v44 = vadd.f32 %v4657_v56, %v1558_v26 }
 0x110   :  { %1422 = vmatmul.f32.gmra.mxu1 %v304_v48  ;;  %1840 = vmatmul.f32.gmra.mxu3 %v306_v36  ;;  %v817_v43 = vpop.permute.xlu0 %816 }
 0x111   :  { %v1584_v61 = vpop.f32.mrf.mxu2  ;;  %v1146_v34 = vadd.f32 %v4669_v4, %v817_v43  ;;  %v1169_v58 = vpop.f32.mrf.mxu0  ;;  %v319_v43 = vld [vmem:[#allocation4 + $0x700] sm:$0xff] }
 0x112   :  { %v1585_v52 = vadd.f32 %v1584_v61, %v1376_v27  ;;  %v1170_v28 = vadd.f32 %v1169_v58, %v4614_v16  ;;  %v321_v61 = vld [vmem:[#allocation4 + $0x710] sm:$0xff] }
 0x113   :  { %v1355_v13 = vadd.f32 %v4673_v12, %v1146_v34  ;;  %v1793_v14 = vpop.f32.mrf.mxu3  ;;  %v4746_v12 = vpop.permute.xlu1 %901 }
 0x114   :  { %v4738_v15 = vadd.f32 %v1793_v14, %v1585_v52  ;;  %1216 = vmatmul.f32.gmra.mxu0 %v311_v19 }
 0x115   :  { %v1378_v56 = vpop.f32.mrf.mxu1  ;;  %1634 = vmatmul.f32.gmra.mxu2 %v313_v1  ;;  %v1564_v57 = vadd.f32 %v4681_v23, %v1355_v13  ;;  %v322_v1 = vld [vmem:[#allocation4 + $0x718] sm:$0xff] }
 0x116   :  { %5986 = vst [vmem:[#allocation32_spill] sm:$0xff] %v4738_v15  ;;  %v1379_v26 = vadd.f32 %v1378_v56, %v1170_v28  ;;  %v351_v15 = vld [vmem:[#allocation4 + $0x800] sm:$0xff] }
 0x117   :  { %v4742_v4 = vadd.f32 %v4683_v38, %v1564_v57  ;;  %v320_v38 = vld [vmem:[#allocation4 + $0x708] sm:$0xff]  ;;  %v329_v57 = vld [vmem:[#allocation4 + $0x750] sm:$0xff] }
 0x118   :  { %1425 = vmatmul.f32.gmra.mxu1 %v312_v9  ;;  %1843 = vmatmul.f32.gmra.mxu3 %v314_v47  ;;  %v4744_v48 = vpop.permute.xlu0 %1056  ;;  %v327_v9 = vld [vmem:[#allocation4 + $0x740] sm:$0xff] }
 0x119   :  { %v1587_v16 = vpop.f32.mrf.mxu2  ;;  %v1172_v36 = vpop.f32.mrf.mxu0 }
 0x11a   :  { %v1588_v27 = vadd.f32 %v1587_v16, %v1379_v26  ;;  %v1173_v34 = vadd.f32 %v1172_v36, %v4606_v8  ;;  %v328_v36 = vld [vmem:[#allocation4 + $0x748] sm:$0xff] }
 0x11b   :  { %v1796_v52 = vpop.f32.mrf.mxu3  ;;  %v4754_v26 = vpop.permute.xlu1 %811 }
 0x11c   :  { %v4749_v23 = vadd.f32 %v1796_v52, %v1588_v27  ;;  %1219 = vmatmul.f32.gmra.mxu0 %v319_v43 }
 0x11d   :  { %v1381_v58 = vpop.f32.mrf.mxu1  ;;  %1637 = vmatmul.f32.gmra.mxu2 %v321_v61  ;;  %v330_v61 = vld [vmem:[#allocation4 + $0x758] sm:$0xff] }
 0x11e   :  { %5987 = vst [vmem:[#allocation33_spill] sm:$0xff] %v4749_v23  ;;  %v1382_v19 = vadd.f32 %v1381_v58, %v1173_v34  ;;  %v353_v23 = vld [vmem:[#allocation4 + $0x810] sm:$0xff] }
 0x120   :  { %1428 = vmatmul.f32.gmra.mxu1 %v320_v38  ;;  %1846 = vmatmul.f32.gmra.mxu3 %v322_v1  ;;  %v4751_v28 = vpop.permute.xlu0 %966 }
 0x121   :  { %v1590_v13 = vpop.f32.mrf.mxu2  ;;  %v1175_v56 = vpop.f32.mrf.mxu0 }
 0x122   :  { %v1591_v14 = vadd.f32 %v1590_v13, %v1382_v19  ;;  %v1176_v8 = vadd.f32 %v1175_v56, %v4531_v20  ;;  %v335_v19 = vld [vmem:[#allocation4 + $0x780] sm:$0xff]  ;;  %v337_v20 = vld [vmem:[#allocation4 + $0x790] sm:$0xff] }
 0x123   :  { %v1799_v47 = vpop.f32.mrf.mxu3 }
 0x124   :  { %v4756_v16 = vadd.f32 %v1799_v47, %v1591_v14  ;;  %1222 = vmatmul.f32.gmra.mxu0 %v327_v9  ;;  %v4761_v14 = vpop.permute.xlu1 %1051  ;;  %v338_v47 = vld [vmem:[#allocation4 + $0x798] sm:$0xff] }
 0x125   :  { %v1384_v27 = vpop.f32.mrf.mxu1  ;;  %1640 = vmatmul.f32.gmra.mxu2 %v329_v57  ;;  %v336_v57 = vld [vmem:[#allocation4 + $0x788] sm:$0xff] }
 0x126   :  { %5988 = vst [vmem:[#allocation34_spill] sm:$0xff] %v4756_v16  ;;  %v1385_v43 = vadd.f32 %v1384_v27, %v1176_v8 }
 0x128   :  { %1431 = vmatmul.f32.gmra.mxu1 %v328_v36  ;;  %1849 = vmatmul.f32.gmra.mxu3 %v330_v61  ;;  %v4758_v34 = vpop.permute.xlu0 %891 }
 0x129   :  { %v1593_v52 = vpop.f32.mrf.mxu2  ;;  %v1178_v38 = vpop.f32.mrf.mxu0 }
 0x12a   :  { %v1594_v58 = vadd.f32 %v1593_v52, %v1385_v43  ;;  %v1179_v1 = vadd.f32 %v1178_v38, %v4506_v2  ;;  %v343_v52 = vld [vmem:[#allocation4 + $0x7c0] sm:$0xff]  ;;  %v345_v2 = vld [vmem:[#allocation4 + $0x7d0] sm:$0xff] }
 0x12b   :  { %v1802_v13 = vpop.f32.mrf.mxu3 }
 0x12c   :  { %v4763_v56 = vadd.f32 %v1802_v13, %v1594_v58  ;;  %1225 = vmatmul.f32.gmra.mxu0 %v335_v19  ;;  %v344_v19 = vld [vmem:[#allocation4 + $0x7c8] sm:$0xff] }
 0x12d   :  { %v1387_v9 = vpop.f32.mrf.mxu1  ;;  %1643 = vmatmul.f32.gmra.mxu2 %v337_v20 }
 0x12e   :  { %5989 = vst [vmem:[#allocation35_spill] sm:$0xff] %v4763_v56  ;;  %v1388_v8 = vadd.f32 %v1387_v9, %v1179_v1  ;;  %v346_v1 = vld [vmem:[#allocation4 + $0x7d8] sm:$0xff]  ;;  %v4770_v9 = vpop.permute.xlu1 %961 }
 0x130   :  { %1434 = vmatmul.f32.gmra.mxu1 %v336_v57  ;;  %1852 = vmatmul.f32.gmra.mxu3 %v338_v47  ;;  %v4765_v27 = vpop.permute.xlu0 %801 }
 0x131   :  { %v1596_v36 = vpop.f32.mrf.mxu2  ;;  %v1181_v61 = vpop.f32.mrf.mxu0 }
 0x132   :  { %v1597_v43 = vadd.f32 %v1596_v36, %v1388_v8  ;;  %v1182_v38 = vadd.f32 %v1181_v61, %v4556_v37 }
 0x133   :  { %v1805_v30 = vpop.f32.mrf.mxu3 }
 0x134   :  { %v4768_v58 = vadd.f32 %v1805_v30, %v1597_v43  ;;  %1228 = vmatmul.f32.gmra.mxu0 %v343_v52  ;;  %v352_v52 = vld [vmem:[#allocation4 + $0x808] sm:$0xff] }
 0x135   :  { %v1390_v13 = vpop.f32.mrf.mxu1  ;;  %1646 = vmatmul.f32.gmra.mxu2 %v345_v2 }
 0x136   :  { %5990 = vst [vmem:[#allocation36_spill] sm:$0xff] %v4768_v58  ;;  %v1391_v20 = vadd.f32 %v1390_v13, %v1182_v38  ;;  %v354_v38 = vld [vmem:[#allocation4 + $0x818] sm:$0xff]  ;;  %v887_v13 = vpop.permute.xlu1 %886 }
 0x138   :  { %1437 = vmatmul.f32.gmra.mxu1 %v344_v19  ;;  %1855 = vmatmul.f32.gmra.mxu3 %v346_v1  ;;  %v882_v8 = vpop.permute.xlu0 %881 }
 0x139   :  { %v1599_v57 = vpop.f32.mrf.mxu2  ;;  %v1184_v36 = vpop.f32.mrf.mxu0 }
 0x13a   :  { %v1600_v47 = vadd.f32 %v1599_v57, %v1391_v20  ;;  %v1185_v37 = vadd.f32 %v1184_v36, %v882_v8  ;;  %v359_v20 = vld [vmem:[#allocation4 + $0x840] sm:$0xff]  ;;  %v361_v57 = vld [vmem:[#allocation4 + $0x850] sm:$0xff]  ;;  %v362_v36 = vld [vmem:[#allocation4 + $0x858] sm:$0xff] }
 0x13b   :  { %v1808_v61 = vpop.f32.mrf.mxu3 }
 0x13c   :  { %v4772_v30 = vadd.f32 %v1808_v61, %v1600_v47  ;;  %1231 = vmatmul.f32.gmra.mxu0 %v351_v15  ;;  %v360_v15 = vld [vmem:[#allocation4 + $0x848] sm:$0xff] }
 0x13d   :  { %v1393_v43 = vpop.f32.mrf.mxu1  ;;  %1649 = vmatmul.f32.gmra.mxu2 %v353_v23 }
 0x13e   :  { %v1394_v2 = vadd.f32 %v1393_v43, %v1185_v37 }
 0x140   :  { %1440 = vmatmul.f32.gmra.mxu1 %v352_v52  ;;  %1858 = vmatmul.f32.gmra.mxu3 %v354_v38  ;;  %v367_v52 = vld [vmem:[#allocation4 + $0x880] sm:$0xff] }
 0x141   :  { %v1602_v19 = vpop.f32.mrf.mxu2  ;;  %v1187_v16 = vpop.f32.mrf.mxu0 }
 0x142   :  { %v1603_v1 = vadd.f32 %v1602_v19, %v1394_v2  ;;  %v1188_v56 = vadd.f32 %v1187_v16, %v887_v13  ;;  %v369_v2 = vld [vmem:[#allocation4 + $0x890] sm:$0xff]  ;;  %v368_v13 = vld [vmem:[#allocation4 + $0x888] sm:$0xff] }
 0x143   :  { %v1811_v58 = vpop.f32.mrf.mxu3 }
 0x144   :  { %v4774_v8 = vadd.f32 %v1811_v58, %v1603_v1  ;;  %1234 = vmatmul.f32.gmra.mxu0 %v359_v20  ;;  %v370_v20 = vld [vmem:[#allocation4 + $0x898] sm:$0xff] }
 0x145   :  { %v1396_v47 = vpop.f32.mrf.mxu1  ;;  %1652 = vmatmul.f32.gmra.mxu2 %v361_v57 }
 0x146   :  { %v1397_v23 = vadd.f32 %v1396_v47, %v1188_v56 }
 0x148   :  { %1443 = vmatmul.f32.gmra.mxu1 %v360_v15  ;;  %1861 = vmatmul.f32.gmra.mxu3 %v362_v36  ;;  %v375_v15 = vld [vmem:[#allocation4 + $0x8c0] sm:$0xff] }
 0x149   :  { %v1605_v37 = vpop.f32.mrf.mxu2  ;;  %v1190_v43 = vpop.f32.mrf.mxu0 }
 0x14a   :  { %v1606_v61 = vadd.f32 %v1605_v37, %v1397_v23  ;;  %v1191_v38 = vadd.f32 %v1190_v43, %v4758_v34  ;;  %v377_v23 = vld [vmem:[#allocation4 + $0x8d0] sm:$0xff]  ;;  %v376_v43 = vld [vmem:[#allocation4 + $0x8c8] sm:$0xff] }
 0x14b   :  { %v1814_v19 = vpop.f32.mrf.mxu3 }
 0x14c   :  { %v4777_v16 = vadd.f32 %v1814_v19, %v1606_v61  ;;  %1237 = vmatmul.f32.gmra.mxu0 %v367_v52 }
 0x14d   :  { %v1399_v58 = vpop.f32.mrf.mxu1  ;;  %1655 = vmatmul.f32.gmra.mxu2 %v369_v2  ;;  %v378_v2 = vld [vmem:[#allocation4 + $0x8d8] sm:$0xff] }
 0x14e   :  { %v1400_v1 = vadd.f32 %v1399_v58, %v1191_v38 }
 0x150   :  { %1446 = vmatmul.f32.gmra.mxu1 %v368_v13  ;;  %1864 = vmatmul.f32.gmra.mxu3 %v370_v20  ;;  %v383_v13 = vld [vmem:[#allocation4 + $0x900] sm:$0xff] }
 0x151   :  { %v1608_v56 = vpop.f32.mrf.mxu2  ;;  %v1193_v47 = vpop.f32.mrf.mxu0 }
 0x152   :  { %v1609_v57 = vadd.f32 %v1608_v56, %v1400_v1  ;;  %v1194_v36 = vadd.f32 %v1193_v47, %v4713_v62  ;;  %v385_v1 = vld [vmem:[#allocation4 + $0x910] sm:$0xff]  ;;  %v384_v47 = vld [vmem:[#allocation4 + $0x908] sm:$0xff] }
 0x153   :  { %v1817_v37 = vpop.f32.mrf.mxu3 }
 0x154   :  { %v4780_v34 = vadd.f32 %v1817_v37, %v1609_v57  ;;  %1240 = vmatmul.f32.gmra.mxu0 %v375_v15 }
 0x155   :  { %v1402_v61 = vpop.f32.mrf.mxu1  ;;  %1658 = vmatmul.f32.gmra.mxu2 %v377_v23  ;;  %v386_v23 = vld [vmem:[#allocation4 + $0x918] sm:$0xff] }
 0x156   :  { %v1403_v52 = vadd.f32 %v1402_v61, %v1194_v36 }
 0x158   :  { %1449 = vmatmul.f32.gmra.mxu1 %v376_v43  ;;  %1867 = vmatmul.f32.gmra.mxu3 %v378_v2  ;;  %v391_v43 = vld [vmem:[#allocation4 + $0x940] sm:$0xff] }
 0x159   :  { %v1611_v38 = vpop.f32.mrf.mxu2  ;;  %v1196_v58 = vpop.f32.mrf.mxu0 }
 0x15a   :  { %v1612_v19 = vadd.f32 %v1611_v38, %v1403_v52  ;;  %v1197_v20 = vadd.f32 %v1196_v58, %v4746_v12  ;;  %v393_v52 = vld [vmem:[#allocation4 + $0x950] sm:$0xff]  ;;  %v392_v58 = vld [vmem:[#allocation4 + $0x948] sm:$0xff] }
 0x15b   :  { %v1820_v56 = vpop.f32.mrf.mxu3 }
 0x15c   :  { %v4783_v62 = vadd.f32 %v1820_v56, %v1612_v19  ;;  %1243 = vmatmul.f32.gmra.mxu0 %v383_v13 }
 0x15d   :  { %v1405_v57 = vpop.f32.mrf.mxu1  ;;  %1661 = vmatmul.f32.gmra.mxu2 %v385_v1  ;;  %v394_v1 = vld [vmem:[#allocation4 + $0x958] sm:$0xff] }
 0x15e   :  { %v1406_v15 = vadd.f32 %v1405_v57, %v1197_v20 }
 0x160   :  { %1452 = vmatmul.f32.gmra.mxu1 %v384_v47  ;;  %1870 = vmatmul.f32.gmra.mxu3 %v386_v23  ;;  %v399_v47 = vld [vmem:[#allocation4 + $0x980] sm:$0xff] }
 0x161   :  { %v1614_v36 = vpop.f32.mrf.mxu2  ;;  %v1199_v61 = vpop.f32.mrf.mxu0 }
 0x162   :  { %v1615_v37 = vadd.f32 %v1614_v36, %v1406_v15  ;;  %v1200_v2 = vadd.f32 %v1199_v61, %v4722_v40  ;;  %v401_v15 = vld [vmem:[#allocation4 + $0x990] sm:$0xff]  ;;  %v400_v61 = vld [vmem:[#allocation4 + $0x988] sm:$0xff] }
 0x163   :  { %v1823_v38 = vpop.f32.mrf.mxu3 }
 0x164   :  { %v4786_v12 = vadd.f32 %v1823_v38, %v1615_v37  ;;  %1246 = vmatmul.f32.gmra.mxu0 %v391_v43 }
 0x165   :  { %v1408_v19 = vpop.f32.mrf.mxu1  ;;  %1664 = vmatmul.f32.gmra.mxu2 %v393_v52  ;;  %v402_v52 = vld [vmem:[#allocation4 + $0x998] sm:$0xff] }
 0x166   :  { %v1409_v13 = vadd.f32 %v1408_v19, %v1200_v2 }
 0x168   :  { %1455 = vmatmul.f32.gmra.mxu1 %v392_v58  ;;  %1873 = vmatmul.f32.gmra.mxu3 %v394_v1  ;;  %v407_v58 = vld [vmem:[#allocation4 + $0x9c0] sm:$0xff] }
 0x169   :  { %v1617_v20 = vpop.f32.mrf.mxu2  ;;  %v1202_v57 = vpop.f32.mrf.mxu0 }
 0x16a   :  { %v1618_v56 = vadd.f32 %v1617_v20, %v1409_v13  ;;  %v1203_v23 = vadd.f32 %v1202_v57, %v4687_v54  ;;  %v409_v13 = vld [vmem:[#allocation4 + $0x9d0] sm:$0xff]  ;;  %v408_v57 = vld [vmem:[#allocation4 + $0x9c8] sm:$0xff] }
 0x16b   :  { %v1826_v36 = vpop.f32.mrf.mxu3 }
 0x16c   :  { %v4789_v40 = vadd.f32 %v1826_v36, %v1618_v56  ;;  %1249 = vmatmul.f32.gmra.mxu0 %v399_v47 }
 0x16d   :  { %v1411_v37 = vpop.f32.mrf.mxu1  ;;  %1667 = vmatmul.f32.gmra.mxu2 %v401_v15  ;;  %v410_v15 = vld [vmem:[#allocation4 + $0x9d8] sm:$0xff] }
 0x16e   :  { %v1412_v43 = vadd.f32 %v1411_v37, %v1203_v23 }
 0x170   :  { %1458 = vmatmul.f32.gmra.mxu1 %v400_v61  ;;  %1876 = vmatmul.f32.gmra.mxu3 %v402_v52  ;;  %v415_v61 = vld [vmem:[#allocation4 + $0xa00] sm:$0xff] }
 0x171   :  { %v1620_v2 = vpop.f32.mrf.mxu2  ;;  %v1205_v19 = vpop.f32.mrf.mxu0 }
 0x172   :  { %v1621_v38 = vadd.f32 %v1620_v2, %v1412_v43  ;;  %v1206_v1 = vadd.f32 %v1205_v19, %v4697_v31  ;;  %v417_v43 = vld [vmem:[#allocation4 + $0xa10] sm:$0xff]  ;;  %v416_v19 = vld [vmem:[#allocation4 + $0xa08] sm:$0xff] }
 0x173   :  { %v1829_v20 = vpop.f32.mrf.mxu3 }
 0x174   :  { %v4792_v54 = vadd.f32 %v1829_v20, %v1621_v38  ;;  %1252 = vmatmul.f32.gmra.mxu0 %v407_v58 }
 0x175   :  { %v1414_v56 = vpop.f32.mrf.mxu1  ;;  %1670 = vmatmul.f32.gmra.mxu2 %v409_v13  ;;  %v418_v13 = vld [vmem:[#allocation4 + $0xa18] sm:$0xff] }
 0x176   :  { %v1415_v47 = vadd.f32 %v1414_v56, %v1206_v1 }
 0x178   :  { %1461 = vmatmul.f32.gmra.mxu1 %v408_v57  ;;  %1879 = vmatmul.f32.gmra.mxu3 %v410_v15  ;;  %v423_v57 = vld [vmem:[#allocation4 + $0xa40] sm:$0xff] }
 0x179   :  { %v1623_v23 = vpop.f32.mrf.mxu2  ;;  %v1208_v37 = vpop.f32.mrf.mxu0 }
 0x17a   :  { %v1624_v36 = vadd.f32 %v1623_v23, %v1415_v47  ;;  %v1209_v52 = vadd.f32 %v1208_v37, %v4693_v3  ;;  %v425_v47 = vld [vmem:[#allocation4 + $0xa50] sm:$0xff]  ;;  %v424_v37 = vld [vmem:[#allocation4 + $0xa48] sm:$0xff] }
 0x17b   :  { %v1832_v2 = vpop.f32.mrf.mxu3 }
 0x17c   :  { %v4795_v31 = vadd.f32 %v1832_v2, %v1624_v36  ;;  %1255 = vmatmul.f32.gmra.mxu0 %v415_v61 }
 0x17d   :  { %v1417_v38 = vpop.f32.mrf.mxu1  ;;  %1673 = vmatmul.f32.gmra.mxu2 %v417_v43  ;;  %v426_v43 = vld [vmem:[#allocation4 + $0xa58] sm:$0xff] }
 0x17e   :  { %v1418_v58 = vadd.f32 %v1417_v38, %v1209_v52 }
 0x180   :  { %1464 = vmatmul.f32.gmra.mxu1 %v416_v19  ;;  %1882 = vmatmul.f32.gmra.mxu3 %v418_v13  ;;  %v431_v19 = vld [vmem:[#allocation4 + $0xa80] sm:$0xff] }
 0x181   :  { %v1626_v1 = vpop.f32.mrf.mxu2  ;;  %v1211_v56 = vpop.f32.mrf.mxu0 }
 0x182   :  { %v1627_v20 = vadd.f32 %v1626_v1, %v1418_v58  ;;  %v1212_v15 = vadd.f32 %v1211_v56, %v4632_v32  ;;  %v433_v58 = vld [vmem:[#allocation4 + $0xa90] sm:$0xff]  ;;  %v432_v56 = vld [vmem:[#allocation4 + $0xa88] sm:$0xff] }
 0x183   :  { %v1835_v23 = vpop.f32.mrf.mxu3 }
 0x184   :  { %v4798_v3 = vadd.f32 %v1835_v23, %v1627_v20  ;;  %1258 = vmatmul.f32.gmra.mxu0 %v423_v57 }
 0x185   :  { %v1420_v36 = vpop.f32.mrf.mxu1  ;;  %1676 = vmatmul.f32.gmra.mxu2 %v425_v47  ;;  %v434_v47 = vld [vmem:[#allocation4 + $0xa98] sm:$0xff] }
 0x186   :  { %v1421_v61 = vadd.f32 %v1420_v36, %v1212_v15 }
 0x188   :  { %1467 = vmatmul.f32.gmra.mxu1 %v424_v37  ;;  %1885 = vmatmul.f32.gmra.mxu3 %v426_v43  ;;  %v439_v37 = vld [vmem:[#allocation4 + $0xac0] sm:$0xff] }
 0x189   :  { %v1629_v52 = vpop.f32.mrf.mxu2  ;;  %v1214_v38 = vpop.f32.mrf.mxu0 }
 0x18a   :  { %v1630_v2 = vadd.f32 %v1629_v52, %v1421_v61  ;;  %v1215_v13 = vadd.f32 %v1214_v38, %v4661_v63  ;;  %v441_v61 = vld [vmem:[#allocation4 + $0xad0] sm:$0xff]  ;;  %v440_v38 = vld [vmem:[#allocation4 + $0xac8] sm:$0xff] }
 0x18b   :  { %v1838_v1 = vpop.f32.mrf.mxu3 }
 0x18c   :  { %v4801_v32 = vadd.f32 %v1838_v1, %v1630_v2  ;;  %1261 = vmatmul.f32.gmra.mxu0 %v431_v19 }
 0x18d   :  { %v1423_v20 = vpop.f32.mrf.mxu1  ;;  %1679 = vmatmul.f32.gmra.mxu2 %v433_v58  ;;  %v442_v58 = vld [vmem:[#allocation4 + $0xad8] sm:$0xff] }
 0x18e   :  { %5991 = vst [vmem:[#allocation37_spill] sm:$0xff] %v4801_v32  ;;  %v1424_v57 = vadd.f32 %v1423_v20, %v1215_v13 }
 0x190   :  { %1470 = vmatmul.f32.gmra.mxu1 %v432_v56  ;;  %1888 = vmatmul.f32.gmra.mxu3 %v434_v47  ;;  %v447_v56 = vld [vmem:[#allocation4 + $0xb00] sm:$0xff] }
 0x191   :  { %v1632_v15 = vpop.f32.mrf.mxu2  ;;  %v1217_v36 = vpop.f32.mrf.mxu0 }
 0x192   :  { %v1633_v23 = vadd.f32 %v1632_v15, %v1424_v57  ;;  %v1218_v43 = vadd.f32 %v1217_v36, %v4651_v50  ;;  %v449_v57 = vld [vmem:[#allocation4 + $0xb10] sm:$0xff]  ;;  %v448_v36 = vld [vmem:[#allocation4 + $0xb08] sm:$0xff] }
 0x193   :  { %v1841_v52 = vpop.f32.mrf.mxu3 }
 0x194   :  { %v4804_v63 = vadd.f32 %v1841_v52, %v1633_v23  ;;  %1264 = vmatmul.f32.gmra.mxu0 %v439_v37 }
 0x195   :  { %v1426_v2 = vpop.f32.mrf.mxu1  ;;  %1682 = vmatmul.f32.gmra.mxu2 %v441_v61  ;;  %v450_v61 = vld [vmem:[#allocation4 + $0xb18] sm:$0xff] }
 0x196   :  { %5992 = vst [vmem:[#allocation38_spill] sm:$0xff] %v4804_v63  ;;  %v1427_v19 = vadd.f32 %v1426_v2, %v1218_v43 }
 0x198   :  { %1473 = vmatmul.f32.gmra.mxu1 %v440_v38  ;;  %1891 = vmatmul.f32.gmra.mxu3 %v442_v58  ;;  %v455_v38 = vld [vmem:[#allocation4 + $0xb40] sm:$0xff] }
 0x199   :  { %v1635_v13 = vpop.f32.mrf.mxu2  ;;  %v1220_v20 = vpop.f32.mrf.mxu0 }
 0x19a   :  { %v1636_v1 = vadd.f32 %v1635_v13, %v1427_v19  ;;  %v1221_v47 = vadd.f32 %v1220_v20, %v4576_v51  ;;  %v457_v19 = vld [vmem:[#allocation4 + $0xb50] sm:$0xff]  ;;  %v456_v20 = vld [vmem:[#allocation4 + $0xb48] sm:$0xff] }
 0x19b   :  { %v1844_v15 = vpop.f32.mrf.mxu3 }
 0x19c   :  { %v4807_v50 = vadd.f32 %v1844_v15, %v1636_v1  ;;  %1267 = vmatmul.f32.gmra.mxu0 %v447_v56 }
 0x19d   :  { %v1429_v23 = vpop.f32.mrf.mxu1  ;;  %1685 = vmatmul.f32.gmra.mxu2 %v449_v57  ;;  %v458_v57 = vld [vmem:[#allocation4 + $0xb58] sm:$0xff] }
 0x19e   :  { %5993 = vst [vmem:[#allocation39_spill] sm:$0xff] %v4807_v50  ;;  %v1430_v37 = vadd.f32 %v1429_v23, %v1221_v47 }
 0x1a0   :  { %1476 = vmatmul.f32.gmra.mxu1 %v448_v36  ;;  %1894 = vmatmul.f32.gmra.mxu3 %v450_v61  ;;  %v463_v36 = vld [vmem:[#allocation4 + $0xb80] sm:$0xff] }
 0x1a1   :  { %v1638_v43 = vpop.f32.mrf.mxu2  ;;  %v1223_v2 = vpop.f32.mrf.mxu0 }
 0x1a2   :  { %v1639_v52 = vadd.f32 %v1638_v43, %v1430_v37  ;;  %v1224_v58 = vadd.f32 %v1223_v2, %v4602_v6  ;;  %v465_v37 = vld [vmem:[#allocation4 + $0xb90] sm:$0xff]  ;;  %v464_v2 = vld [vmem:[#allocation4 + $0xb88] sm:$0xff] }
 0x1a3   :  { %v1847_v13 = vpop.f32.mrf.mxu3 }
 0x1a4   :  { %v4810_v51 = vadd.f32 %v1847_v13, %v1639_v52  ;;  %1270 = vmatmul.f32.gmra.mxu0 %v455_v38 }
 0x1a5   :  { %v1432_v1 = vpop.f32.mrf.mxu1  ;;  %1688 = vmatmul.f32.gmra.mxu2 %v457_v19  ;;  %v466_v19 = vld [vmem:[#allocation4 + $0xb98] sm:$0xff] }
 0x1a6   :  { %5994 = vst [vmem:[#allocation40_spill] sm:$0xff] %v4810_v51  ;;  %v1433_v56 = vadd.f32 %v1432_v1, %v1224_v58 }
 0x1a8   :  { %1479 = vmatmul.f32.gmra.mxu1 %v456_v20  ;;  %1897 = vmatmul.f32.gmra.mxu3 %v458_v57  ;;  %v471_v20 = vld [vmem:[#allocation4 + $0xbc0] sm:$0xff] }
 0x1a9   :  { %v1641_v47 = vpop.f32.mrf.mxu2  ;;  %v1226_v23 = vpop.f32.mrf.mxu0 }
 0x1aa   :  { %v1642_v15 = vadd.f32 %v1641_v47, %v1433_v56  ;;  %v1227_v61 = vadd.f32 %v1226_v23, %v4589_v60  ;;  %v473_v56 = vld [vmem:[#allocation4 + $0xbd0] sm:$0xff]  ;;  %v472_v23 = vld [vmem:[#allocation4 + $0xbc8] sm:$0xff] }
 0x1ab   :  { %v1850_v43 = vpop.f32.mrf.mxu3 }
 0x1ac   :  { %v4813_v6 = vadd.f32 %v1850_v43, %v1642_v15  ;;  %1273 = vmatmul.f32.gmra.mxu0 %v463_v36 }
 0x1ad   :  { %v1435_v52 = vpop.f32.mrf.mxu1  ;;  %1691 = vmatmul.f32.gmra.mxu2 %v465_v37  ;;  %v474_v37 = vld [vmem:[#allocation4 + $0xbd8] sm:$0xff] }
 0x1ae   :  { %5995 = vst [vmem:[#allocation41_spill] sm:$0xff] %v4813_v6  ;;  %v1436_v38 = vadd.f32 %v1435_v52, %v1227_v61 }
 0x1b0   :  { %1482 = vmatmul.f32.gmra.mxu1 %v464_v2  ;;  %1900 = vmatmul.f32.gmra.mxu3 %v466_v19  ;;  %v479_v2 = vld [vmem:[#allocation4 + $0xc00] sm:$0xff] }
 0x1b1   :  { %v1644_v58 = vpop.f32.mrf.mxu2  ;;  %v1229_v1 = vpop.f32.mrf.mxu0 }
 0x1b2   :  { %v1645_v13 = vadd.f32 %v1644_v58, %v1436_v38  ;;  %v1230_v57 = vadd.f32 %v1229_v1, %v4517_v10  ;;  %v481_v38 = vld [vmem:[#allocation4 + $0xc10] sm:$0xff]  ;;  %v784_v10 = vld [vmem:[%s5960_s2 + $0x188] sm:$0xff] }
 0x1b3   :  { %v1853_v47 = vpop.f32.mrf.mxu3  ;;  %1046 = vperm.xlu2 %4031, %v784_v10  }
 0x1b4   :  { %v4816_v60 = vadd.f32 %v1853_v47, %v1645_v13  ;;  %1276 = vmatmul.f32.gmra.mxu0 %v471_v20  ;;  %v480_v20 = vld [vmem:[#allocation4 + $0xc08] sm:$0xff] }
 0x1b5   :  { %v1438_v15 = vpop.f32.mrf.mxu1  ;;  %1694 = vmatmul.f32.gmra.mxu2 %v473_v56 }
 0x1b6   :  { %v1439_v36 = vadd.f32 %v1438_v15, %v1230_v57  ;;  %v482_v57 = vld [vmem:[#allocation4 + $0xc18] sm:$0xff] }
 0x1b8   :  { %1485 = vmatmul.f32.gmra.mxu1 %v472_v23  ;;  %1903 = vmatmul.f32.gmra.mxu3 %v474_v37  ;;  %v489_v37 = vld [vmem:[#allocation4 + $0xc50] sm:$0xff] }
 0x1b9   :  { %v1647_v61 = vpop.f32.mrf.mxu2  ;;  %v1232_v52 = vpop.f32.mrf.mxu0 }
 0x1ba   :  { %v1648_v43 = vadd.f32 %v1647_v61, %v1439_v36  ;;  %v1233_v19 = vadd.f32 %v1232_v52, %v4770_v9  ;;  %v487_v36 = vld [vmem:[#allocation4 + $0xc40] sm:$0xff] }
 0x1bb   :  { %v1856_v58 = vpop.f32.mrf.mxu3  ;;  %v783_v9 = vld [vmem:[%s5960_s2 + $0x180] sm:$0xff] }
 0x1bc   :  { %v4822_v13 = vadd.f32 %v1856_v58, %v1648_v43  ;;  %1279 = vmatmul.f32.gmra.mxu0 %v479_v2  ;;  %1041 = vperm.xlu2 %4031, %v783_v9   ;;  %v498_v9 = vld [vmem:[#allocation4 + $0xc98] sm:$0xff] }
 0x1bd   :  { %v1441_v1 = vpop.f32.mrf.mxu1  ;;  %1697 = vmatmul.f32.gmra.mxu2 %v481_v38  ;;  %v488_v38 = vld [vmem:[#allocation4 + $0xc48] sm:$0xff] }
 0x1be   :  { %v1442_v56 = vadd.f32 %v1441_v1, %v1233_v19  ;;  %v490_v19 = vld [vmem:[#allocation4 + $0xc58] sm:$0xff] }
 0x1c0   :  { %1488 = vmatmul.f32.gmra.mxu1 %v480_v20  ;;  %1906 = vmatmul.f32.gmra.mxu3 %v482_v57  ;;  %v497_v57 = vld [vmem:[#allocation4 + $0xc90] sm:$0xff] }
 0x1c1   :  { %v1650_v47 = vpop.f32.mrf.mxu2  ;;  %v1235_v23 = vpop.f32.mrf.mxu0 }
 0x1c2   :  { %v1651_v15 = vadd.f32 %v1650_v47, %v1442_v56  ;;  %v1236_v61 = vadd.f32 %v1235_v23, %v4751_v28  ;;  %v495_v56 = vld [vmem:[#allocation4 + $0xc80] sm:$0xff] }
 0x1c3   :  { %v1859_v43 = vpop.f32.mrf.mxu3 }
 0x1c4   :  { %v4828_v52 = vadd.f32 %v1859_v43, %v1651_v15  ;;  %1282 = vmatmul.f32.gmra.mxu0 %v487_v36  ;;  %v496_v36 = vld [vmem:[#allocation4 + $0xc88] sm:$0xff] }
 0x1c5   :  { %v1444_v2 = vpop.f32.mrf.mxu1  ;;  %1700 = vmatmul.f32.gmra.mxu2 %v489_v37 }
 0x1c6   :  { %5996 = vst [vmem:[#allocation42_spill] sm:$0xff] %v4828_v52  ;;  %v1445_v10 = vadd.f32 %v1444_v2, %v1236_v61  ;;  %v6047_v52 = vld [vmem:[#allocation34_spill] sm:$0xff] }
 0x1c8   :  { %1491 = vmatmul.f32.gmra.mxu1 %v488_v38  ;;  %1909 = vmatmul.f32.gmra.mxu3 %v490_v19  ;;  %v503_v38 = vld [vmem:[#allocation4 + $0xcc0] sm:$0xff] }
 0x1c9   :  { %v1653_v58 = vpop.f32.mrf.mxu2  ;;  %v1238_v20 = vpop.f32.mrf.mxu0 }
 0x1ca   :  { %v1654_v1 = vadd.f32 %v1653_v58, %v1445_v10  ;;  %v1239_v47 = vadd.f32 %v1238_v20, %v4704_v22  ;;  %v505_v10 = vld [vmem:[#allocation4 + $0xcd0] sm:$0xff]  ;;  %v504_v20 = vld [vmem:[#allocation4 + $0xcc8] sm:$0xff] }
 0x1cb   :  { %v1862_v28 = vpop.f32.mrf.mxu3 }
 0x1cc   :  { %v4831_v23 = vadd.f32 %v1862_v28, %v1654_v1  ;;  %1285 = vmatmul.f32.gmra.mxu0 %v495_v56 }
 0x1cd   :  { %v1447_v15 = vpop.f32.mrf.mxu1  ;;  %1703 = vmatmul.f32.gmra.mxu2 %v497_v57  ;;  %v506_v57 = vld [vmem:[#allocation4 + $0xcd8] sm:$0xff] }
 0x1ce   :  { %5997 = vst [vmem:[#allocation43_spill] sm:$0xff] %v4831_v23  ;;  %v1448_v37 = vadd.f32 %v1447_v15, %v1239_v47 }
 0x1d0   :  { %1494 = vmatmul.f32.gmra.mxu1 %v496_v36  ;;  %1912 = vmatmul.f32.gmra.mxu3 %v498_v9  ;;  %v511_v36 = vld [vmem:[#allocation4 + $0xd00] sm:$0xff] }
 0x1d1   :  { %v1656_v61 = vpop.f32.mrf.mxu2  ;;  %v1241_v2 = vpop.f32.mrf.mxu0 }
 0x1d2   :  { %v1657_v43 = vadd.f32 %v1656_v61, %v1448_v37  ;;  %v1242_v19 = vadd.f32 %v1241_v2, %v4733_v42  ;;  %v513_v37 = vld [vmem:[#allocation4 + $0xd10] sm:$0xff]  ;;  %v512_v2 = vld [vmem:[#allocation4 + $0xd08] sm:$0xff] }
 0x1d3   :  { %v1865_v58 = vpop.f32.mrf.mxu3 }
 0x1d4   :  { %v4834_v22 = vadd.f32 %v1865_v58, %v1657_v43  ;;  %1288 = vmatmul.f32.gmra.mxu0 %v503_v38 }
 0x1d5   :  { %v1450_v1 = vpop.f32.mrf.mxu1  ;;  %1706 = vmatmul.f32.gmra.mxu2 %v505_v10  ;;  %v514_v10 = vld [vmem:[#allocation4 + $0xd18] sm:$0xff] }
 0x1d6   :  { %5998 = vst [vmem:[#allocation44_spill] sm:$0xff] %v4834_v22  ;;  %v1451_v56 = vadd.f32 %v1450_v1, %v1242_v19 }
 0x1d8   :  { %1497 = vmatmul.f32.gmra.mxu1 %v504_v20  ;;  %1915 = vmatmul.f32.gmra.mxu3 %v506_v57  ;;  %v519_v20 = vld [vmem:[#allocation4 + $0xd40] sm:$0xff] }
 0x1d9   :  { %v1659_v47 = vpop.f32.mrf.mxu2  ;;  %v1244_v15 = vpop.f32.mrf.mxu0 }
 0x1da   :  { %v1660_v28 = vadd.f32 %v1659_v47, %v1451_v56  ;;  %v1245_v9 = vadd.f32 %v1244_v15, %v4715_v5  ;;  %v521_v56 = vld [vmem:[#allocation4 + $0xd50] sm:$0xff]  ;;  %v520_v15 = vld [vmem:[#allocation4 + $0xd48] sm:$0xff] }
 0x1db   :  { %v1868_v61 = vpop.f32.mrf.mxu3 }
 0x1dc   :  { %v4837_v42 = vadd.f32 %v1868_v61, %v1660_v28  ;;  %1291 = vmatmul.f32.gmra.mxu0 %v511_v36 }
 0x1dd   :  { %v1453_v43 = vpop.f32.mrf.mxu1  ;;  %1709 = vmatmul.f32.gmra.mxu2 %v513_v37  ;;  %v522_v37 = vld [vmem:[#allocation4 + $0xd58] sm:$0xff] }
 0x1de   :  { %5999 = vst [vmem:[#allocation45_spill] sm:$0xff] %v4837_v42  ;;  %v1454_v38 = vadd.f32 %v1453_v43, %v1245_v9  ;;  %v6046_v42 = vld [vmem:[#allocation35_spill] sm:$0xff] }
 0x1e0   :  { %1500 = vmatmul.f32.gmra.mxu1 %v512_v2  ;;  %1918 = vmatmul.f32.gmra.mxu3 %v514_v10  ;;  %v527_v2 = vld [vmem:[#allocation4 + $0xd80] sm:$0xff] }
 0x1e1   :  { %v1662_v19 = vpop.f32.mrf.mxu2  ;;  %v1247_v1 = vpop.f32.mrf.mxu0 }
 0x1e2   :  { %v1663_v58 = vadd.f32 %v1662_v19, %v1454_v38  ;;  %v1248_v57 = vadd.f32 %v1247_v1, %v4677_v21  ;;  %v529_v38 = vld [vmem:[#allocation4 + $0xd90] sm:$0xff]  ;;  %v528_v1 = vld [vmem:[#allocation4 + $0xd88] sm:$0xff] }
 0x1e3   :  { %v1871_v47 = vpop.f32.mrf.mxu3 }
 0x1e4   :  { %v4840_v5 = vadd.f32 %v1871_v47, %v1663_v58  ;;  %1294 = vmatmul.f32.gmra.mxu0 %v519_v20 }
 0x1e5   :  { %v1456_v28 = vpop.f32.mrf.mxu1  ;;  %1712 = vmatmul.f32.gmra.mxu2 %v521_v56  ;;  %v530_v56 = vld [vmem:[#allocation4 + $0xd98] sm:$0xff] }
 0x1e6   :  { %6000 = vst [vmem:[#allocation46_spill] sm:$0xff] %v4840_v5  ;;  %v1457_v36 = vadd.f32 %v1456_v28, %v1248_v57 }
 0x1e8   :  { %1503 = vmatmul.f32.gmra.mxu1 %v520_v15  ;;  %1921 = vmatmul.f32.gmra.mxu3 %v522_v37  ;;  %v535_v15 = vld [vmem:[#allocation4 + $0xdc0] sm:$0xff] }
 0x1e9   :  { %v1665_v9 = vpop.f32.mrf.mxu2  ;;  %v1250_v43 = vpop.f32.mrf.mxu0 }
 0x1ea   :  { %v1666_v61 = vadd.f32 %v1665_v9, %v1457_v36  ;;  %v1251_v10 = vadd.f32 %v1250_v43, %v4691_v11  ;;  %v537_v36 = vld [vmem:[#allocation4 + $0xdd0] sm:$0xff]  ;;  %v536_v43 = vld [vmem:[#allocation4 + $0xdc8] sm:$0xff] }
 0x1eb   :  { %v1874_v19 = vpop.f32.mrf.mxu3 }
 0x1ec   :  { %v4843_v21 = vadd.f32 %v1874_v19, %v1666_v61  ;;  %1297 = vmatmul.f32.gmra.mxu0 %v527_v2 }
 0x1ed   :  { %v1459_v58 = vpop.f32.mrf.mxu1  ;;  %1715 = vmatmul.f32.gmra.mxu2 %v529_v38  ;;  %v538_v38 = vld [vmem:[#allocation4 + $0xdd8] sm:$0xff] }
 0x1ee   :  { %6001 = vst [vmem:[#allocation47_spill] sm:$0xff] %v4843_v21  ;;  %v1460_v20 = vadd.f32 %v1459_v58, %v1251_v10  ;;  %v6045_v21 = vld [vmem:[#allocation36_spill] sm:$0xff] }
 0x1f0   :  { %1506 = vmatmul.f32.gmra.mxu1 %v528_v1  ;;  %1924 = vmatmul.f32.gmra.mxu3 %v530_v56  ;;  %v543_v1 = vld [vmem:[#allocation4 + $0xe00] sm:$0xff] }
 0x1f1   :  { %v1668_v57 = vpop.f32.mrf.mxu2  ;;  %v1253_v28 = vpop.f32.mrf.mxu0 }
 0x1f2   :  { %v1669_v47 = vadd.f32 %v1668_v57, %v1460_v20  ;;  %v1254_v37 = vadd.f32 %v1253_v28, %v4689_v55  ;;  %v545_v20 = vld [vmem:[#allocation4 + $0xe10] sm:$0xff]  ;;  %v544_v28 = vld [vmem:[#allocation4 + $0xe08] sm:$0xff] }
 0x1f3   :  { %v1877_v9 = vpop.f32.mrf.mxu3 }
 0x1f4   :  { %v4846_v11 = vadd.f32 %v1877_v9, %v1669_v47  ;;  %1300 = vmatmul.f32.gmra.mxu0 %v535_v15  ;;  %v718_v9 = vld [vmem:[%s5958_s0 + $0x378] sm:$0xff] }
 0x1f5   :  { %v1462_v61 = vpop.f32.mrf.mxu1  ;;  %1718 = vmatmul.f32.gmra.mxu2 %v537_v36  ;;  %v546_v36 = vld [vmem:[#allocation4 + $0xe18] sm:$0xff] }
 0x1f6   :  { %6002 = vst [vmem:[#allocation48_spill] sm:$0xff] %v4846_v11  ;;  %v1463_v2 = vadd.f32 %v1462_v61, %v1254_v37  ;;  %v686_v37 = vld [vmem:[%s5958_s0 + $0x278] sm:$0xff]  ;;  %2373 = vmatpush.msrb.mxu2 %v718_v9  ;;  %v685_v61 = vld [vmem:[%s5958_s0 + $0x270] sm:$0xff]  ;;  %v683_v9 = vld [vmem:[%s5958_s0 + $0x260] sm:$0xff] }
 0x1f7   :  { %1955 = vmatpush.msrb.mxu0 %v686_v37 }
 0x1f8   :  { %1509 = vmatmul.f32.gmra.mxu1 %v536_v43  ;;  %1927 = vmatmul.f32.gmra.mxu3 %v538_v38  ;;  %v702_v43 = vld [vmem:[%s5958_s0 + $0x2f8] sm:$0xff] }
 0x1f9   :  { %v1671_v10 = vpop.f32.mrf.mxu2  ;;  %v1256_v58 = vpop.f32.mrf.mxu0  ;;  %1956 = vmatpush.msrb.mxu0 %v685_v61  ;;  %2164 = vmatpush.msrb.mxu1 %v702_v43  ;;  %v715_v61 = vld [vmem:[%s5958_s0 + $0x360] sm:$0xff] }
 0x1fa   :  { %v1672_v19 = vadd.f32 %v1671_v10, %v1463_v2  ;;  %v1257_v56 = vadd.f32 %v1256_v58, %v4616_v17  ;;  %v717_v2 = vld [vmem:[%s5958_s0 + $0x370] sm:$0xff] }
 0x1fb   :  { %v1880_v57 = vpop.f32.mrf.mxu3  ;;  %v553_v58 = vld [vmem:[#allocation4 + $0xe50] sm:$0xff]  ;;  %2374 = vmatpush.msrb.mxu2 %v717_v2  ;;  %v554_v2 = vld [vmem:[#allocation4 + $0xe58] sm:$0xff] }
 0x1fc   :  { %v4849_v55 = vadd.f32 %v1880_v57, %v1672_v19  ;;  %1303 = vmatmul.f32.gmra.mxu0 %v543_v1  ;;  %v551_v19 = vld [vmem:[#allocation4 + $0xe40] sm:$0xff]  ;;  %v734_v1 = vld [vmem:[%s5958_s0 + $0x3f8] sm:$0xff]  ;;  %v701_v57 = vld [vmem:[%s5958_s0 + $0x2f0] sm:$0xff] }
 0x1fd   :  { %v1465_v47 = vpop.f32.mrf.mxu1  ;;  %1721 = vmatmul.f32.gmra.mxu2 %v545_v20  ;;  %2582 = vmatpush.msrb.mxu3 %v734_v1 }
 0x1fe   :  { %6003 = vst [vmem:[#allocation49_spill] sm:$0xff] %v4849_v55  ;;  %v1466_v15 = vadd.f32 %v1465_v47, %v1257_v56  ;;  %v684_v56 = vld [vmem:[%s5958_s0 + $0x268] sm:$0xff]  ;;  %2165 = vmatpush.msrb.mxu1 %v701_v57  ;;  %v698_v57 = vld [vmem:[%s5958_s0 + $0x2d8] sm:$0xff] }
 0x1ff   :  { %v716_v47 = vld [vmem:[%s5958_s0 + $0x368] sm:$0xff]  ;;  %1957 = vmatpush.msrb.mxu0 %v684_v56  ;;  %v681_v56 = vld [vmem:[%s5958_s0 + $0x250] sm:$0xff] }
 0x200   :  { %1512 = vmatmul.f32.gmra.mxu1 %v544_v28  ;;  %1930 = vmatmul.f32.gmra.mxu3 %v546_v36 }
 0x201   :  { %v1674_v17 = vpop.f32.mrf.mxu2  ;;  %v1259_v10 = vpop.f32.mrf.mxu0  ;;  %2375 = vmatpush.msrb.mxu2 %v716_v47  ;;  %1958 = vmatpush.msrb.mxu0 %v683_v9  ;;  %v713_v9 = vld [vmem:[%s5958_s0 + $0x350] sm:$0xff] }
 0x202   :  { %v1675_v38 = vadd.f32 %v1674_v17, %v1466_v15  ;;  %v1260_v20 = vadd.f32 %v1259_v10, %v4647_v46  ;;  %v552_v15 = vld [vmem:[#allocation4 + $0xe48] sm:$0xff]  ;;  %v733_v46 = vld [vmem:[%s5958_s0 + $0x3f0] sm:$0xff]  ;;  %v682_v10 = vld [vmem:[%s5958_s0 + $0x258] sm:$0xff] }
 0x203   :  { %v1883_v28 = vpop.f32.mrf.mxu3  ;;  %v700_v17 = vld [vmem:[%s5958_s0 + $0x2e8] sm:$0xff]  ;;  %2583 = vmatpush.msrb.mxu3 %v733_v46  ;;  %2376 = vmatpush.msrb.mxu2 %v715_v61  ;;  %v561_v46 = vld [vmem:[#allocation4 + $0xe90] sm:$0xff] }
 0x204   :  { %v4882_v36 = vadd.f32 %v1883_v28, %v1675_v38  ;;  %1306 = vmatmul.f32.gmra.mxu0 %v551_v19  ;;  %2166 = vmatpush.msrb.mxu1 %v700_v17  ;;  %v732_v38 = vld [vmem:[%s5958_s0 + $0x3e8] sm:$0xff]  ;;  %v699_v19 = vld [vmem:[%s5958_s0 + $0x2e0] sm:$0xff]  ;;  %v730_v17 = vld [vmem:[%s5958_s0 + $0x3d8] sm:$0xff] }
 0x205   :  { %v1468_v37 = vpop.f32.mrf.mxu1  ;;  %1724 = vmatmul.f32.gmra.mxu2 %v553_v58  ;;  %v714_v58 = vld [vmem:[%s5958_s0 + $0x358] sm:$0xff]  ;;  %1959 = vmatpush.msrb.mxu0 %v682_v10  ;;  %v560_v10 = vld [vmem:[#allocation4 + $0xe88] sm:$0xff] }
 0x206   :  { %6004 = vst [vmem:[#allocation50_spill] sm:$0xff] %v4882_v36  ;;  %v1469_v43 = vadd.f32 %v1468_v37, %v1260_v20  ;;  %v731_v20 = vld [vmem:[%s5958_s0 + $0x3e0] sm:$0xff]  ;;  %2584 = vmatpush.msrb.mxu3 %v732_v38  ;;  %2167 = vmatpush.msrb.mxu1 %v699_v19  ;;  %v712_v19 = vld [vmem:[%s5958_s0 + $0x348] sm:$0xff]  ;;  %v342_v36 = vld [vmem:[#allocation4 + $0x7b8] sm:$0xff] }
 0x207   :  { %2377 = vmatpush.msrb.mxu2 %v714_v58  ;;  %1960 = vmatpush.msrb.mxu0 %v681_v56  ;;  %v729_v56 = vld [vmem:[%s5958_s0 + $0x3d0] sm:$0xff] }
 0x208   :  { %1515 = vmatmul.f32.gmra.mxu1 %v552_v15  ;;  %1933 = vmatmul.f32.gmra.mxu3 %v554_v2  ;;  %v559_v15 = vld [vmem:[#allocation4 + $0xe80] sm:$0xff] }
 0x209   :  { %v1677_v1 = vpop.f32.mrf.mxu2  ;;  %v1262_v28 = vpop.f32.mrf.mxu0  ;;  %2585 = vmatpush.msrb.mxu3 %v731_v20  ;;  %2168 = vmatpush.msrb.mxu1 %v698_v57  ;;  %v679_v20 = vld [vmem:[%s5958_s0 + $0x240] sm:$0xff]  ;;  %v696_v57 = vld [vmem:[%s5958_s0 + $0x2c8] sm:$0xff] }
 0x20a   :  { %v1678_v47 = vadd.f32 %v1677_v1, %v1469_v43  ;;  %v1263_v37 = vadd.f32 %v1262_v28, %v4634_v33  ;;  %v680_v43 = vld [vmem:[%s5958_s0 + $0x248] sm:$0xff]  ;;  %v697_v33 = vld [vmem:[%s5958_s0 + $0x2d0] sm:$0xff]  ;;  %v562_v1 = vld [vmem:[#allocation4 + $0xe98] sm:$0xff]  ;;  %2378 = vmatpush.msrb.mxu2 %v713_v9 }
 0x20b   :  { %v1886_v61 = vpop.f32.mrf.mxu3  ;;  %2586 = vmatpush.msrb.mxu3 %v730_v17  ;;  %1961 = vmatpush.msrb.mxu0 %v680_v43  ;;  %v678_v28 = vld [vmem:[%s5958_s0 + $0x238] sm:$0xff]  ;;  %v569_v43 = vld [vmem:[#allocation4 + $0xed0] sm:$0xff] }
 0x20c   :  { %v4927_v2 = vadd.f32 %v1886_v61, %v1678_v47  ;;  %1309 = vmatmul.f32.gmra.mxu0 %v559_v15  ;;  %2169 = vmatpush.msrb.mxu1 %v697_v33  ;;  %v711_v47 = vld [vmem:[%s5958_s0 + $0x340] sm:$0xff] }
 0x20d   :  { %v1471_v38 = vpop.f32.mrf.mxu1  ;;  %1727 = vmatmul.f32.gmra.mxu2 %v561_v46  ;;  %1962 = vmatpush.msrb.mxu0 %v679_v20  ;;  %v728_v46 = vld [vmem:[%s5958_s0 + $0x3c8] sm:$0xff]  ;;  %v567_v61 = vld [vmem:[#allocation4 + $0xec0] sm:$0xff] }
 0x20e   :  { %6005 = vst [vmem:[#allocation51_spill] sm:$0xff] %v4927_v2  ;;  %v1472_v58 = vadd.f32 %v1471_v38, %v1263_v37  ;;  %2379 = vmatpush.msrb.mxu2 %v712_v19  ;;  %v695_v37 = vld [vmem:[%s5958_s0 + $0x2c0] sm:$0xff]  ;;  %2587 = vmatpush.msrb.mxu3 %v729_v56  ;;  %v710_v38 = vld [vmem:[%s5958_s0 + $0x338] sm:$0xff]  ;;  %v568_v56 = vld [vmem:[#allocation4 + $0xec8] sm:$0xff] }
 0x20f   :  { %2170 = vmatpush.msrb.mxu1 %v696_v57  ;;  %1963 = vmatpush.msrb.mxu0 %v678_v28  ;;  %v709_v57 = vld [vmem:[%s5958_s0 + $0x330] sm:$0xff]  ;;  %v570_v28 = vld [vmem:[#allocation4 + $0xed8] sm:$0xff] }
 0x210   :  { %1518 = vmatmul.f32.gmra.mxu1 %v560_v10  ;;  %1936 = vmatmul.f32.gmra.mxu3 %v562_v1  ;;  %v727_v10 = vld [vmem:[%s5958_s0 + $0x3c0] sm:$0xff] }
 0x211   :  { %v1680_v15 = vpop.f32.mrf.mxu2  ;;  %v1265_v17 = vpop.f32.mrf.mxu0  ;;  %2380 = vmatpush.msrb.mxu2 %v711_v47  ;;  %2588 = vmatpush.msrb.mxu3 %v728_v46  ;;  %v726_v46 = vld [vmem:[%s5958_s0 + $0x3b8] sm:$0xff] }
 0x212   :  { %v1681_v9 = vadd.f32 %v1680_v15, %v1472_v58  ;;  %v1266_v33 = vadd.f32 %v1265_v17, %v4561_v41  ;;  %2171 = vmatpush.msrb.mxu1 %v695_v37  ;;  %v677_v58 = vld [vmem:[%s5958_s0 + $0x230] sm:$0xff]  ;;  %v694_v41 = vld [vmem:[%s5958_s0 + $0x2b8] sm:$0xff]  ;;  %v676_v15 = vld [vmem:[%s5958_s0 + $0x228] sm:$0xff] }
 0x213   :  { %v1889_v19 = vpop.f32.mrf.mxu3  ;;  %2381 = vmatpush.msrb.mxu2 %v710_v38  ;;  %2589 = vmatpush.msrb.mxu3 %v727_v10  ;;  %v693_v37 = vld [vmem:[%s5958_s0 + $0x2b0] sm:$0xff]  ;;  %v675_v17 = vld [vmem:[%s5958_s0 + $0x220] sm:$0xff] }
 0x214   :  { %v4966_v1 = vadd.f32 %v1889_v19, %v1681_v9  ;;  %1312 = vmatmul.f32.gmra.mxu0 %v567_v61  ;;  %2172 = vmatpush.msrb.mxu1 %v694_v41  ;;  %v708_v9 = vld [vmem:[%s5958_s0 + $0x328] sm:$0xff]  ;;  %v575_v19 = vld [vmem:[#allocation4 + $0xf00] sm:$0xff] }
 0x215   :  { %v1474_v20 = vpop.f32.mrf.mxu1  ;;  %1730 = vmatmul.f32.gmra.mxu2 %v569_v43  ;;  %1964 = vmatpush.msrb.mxu0 %v677_v58  ;;  %v725_v43 = vld [vmem:[%s5958_s0 + $0x3b0] sm:$0xff] }
 0x216   :  { %6006 = vst [vmem:[#allocation52_spill] sm:$0xff] %v4966_v1  ;;  %v1475_v47 = vadd.f32 %v1474_v20, %v1266_v33  ;;  %2382 = vmatpush.msrb.mxu2 %v709_v57  ;;  %v692_v33 = vld [vmem:[%s5958_s0 + $0x2a8] sm:$0xff]  ;;  %v577_v58 = vld [vmem:[#allocation4 + $0xf10] sm:$0xff]  ;;  %2590 = vmatpush.msrb.mxu3 %v726_v46  ;;  %v707_v20 = vld [vmem:[%s5958_s0 + $0x320] sm:$0xff] }
 0x217   :  { %1965 = vmatpush.msrb.mxu0 %v676_v15  ;;  %2173 = vmatpush.msrb.mxu1 %v693_v37  ;;  %v576_v46 = vld [vmem:[#allocation4 + $0xf08] sm:$0xff]  ;;  %v706_v37 = vld [vmem:[%s5958_s0 + $0x318] sm:$0xff] }
 0x218   :  { %1521 = vmatmul.f32.gmra.mxu1 %v568_v56  ;;  %1939 = vmatmul.f32.gmra.mxu3 %v570_v28  ;;  %v724_v56 = vld [vmem:[%s5958_s0 + $0x3a8] sm:$0xff] }
 0x219   :  { %v1683_v61 = vpop.f32.mrf.mxu2  ;;  %v1268_v10 = vpop.f32.mrf.mxu0  ;;  %2383 = vmatpush.msrb.mxu2 %v708_v9  ;;  %1966 = vmatpush.msrb.mxu0 %v675_v17  ;;  %v578_v17 = vld [vmem:[#allocation4 + $0xf18] sm:$0xff] }
 0x21a   :  { %v1684_v38 = vadd.f32 %v1683_v61, %v1475_v47  ;;  %v1269_v41 = vadd.f32 %v1268_v10, %v4587_v59  ;;  %2591 = vmatpush.msrb.mxu3 %v725_v43  ;;  %2174 = vmatpush.msrb.mxu1 %v692_v33  ;;  %v674_v47 = vld [vmem:[%s5958_s0 + $0x218] sm:$0xff]  ;;  %v691_v59 = vld [vmem:[%s5958_s0 + $0x2a0] sm:$0xff]  ;;  %v673_v61 = vld [vmem:[%s5958_s0 + $0x210] sm:$0xff] }
 0x21b   :  { %v1892_v57 = vpop.f32.mrf.mxu3  ;;  %2384 = vmatpush.msrb.mxu2 %v707_v20  ;;  %1967 = vmatpush.msrb.mxu0 %v674_v47  ;;  %v723_v43 = vld [vmem:[%s5958_s0 + $0x3a0] sm:$0xff]  ;;  %v690_v33 = vld [vmem:[%s5958_s0 + $0x298] sm:$0xff]  ;;  %v672_v10 = vld [vmem:[%s5958_s0 + $0x208] sm:$0xff] }
 0x21c   :  { %v5005_v28 = vadd.f32 %v1892_v57, %v1684_v38  ;;  %1315 = vmatmul.f32.gmra.mxu0 %v575_v19  ;;  %2592 = vmatpush.msrb.mxu3 %v724_v56  ;;  %v705_v38 = vld [vmem:[%s5958_s0 + $0x310] sm:$0xff]  ;;  %v583_v57 = vld [vmem:[#allocation4 + $0xf40] sm:$0xff] }
 0x21d   :  { %v1477_v15 = vpop.f32.mrf.mxu1  ;;  %1733 = vmatmul.f32.gmra.mxu2 %v577_v58  ;;  %2175 = vmatpush.msrb.mxu1 %v691_v59  ;;  %v722_v58 = vld [vmem:[%s5958_s0 + $0x398] sm:$0xff]  ;;  %v585_v47 = vld [vmem:[#allocation4 + $0xf50] sm:$0xff] }
 0x21e   :  { %6007 = vst [vmem:[#allocation53_spill] sm:$0xff] %v5005_v28  ;;  %v1478_v9 = vadd.f32 %v1477_v15, %v1269_v41  ;;  %2385 = vmatpush.msrb.mxu2 %v706_v37  ;;  %1968 = vmatpush.msrb.mxu0 %v673_v61  ;;  %v689_v41 = vld [vmem:[%s5958_s0 + $0x290] sm:$0xff]  ;;  %v704_v15 = vld [vmem:[%s5958_s0 + $0x308] sm:$0xff] }
 0x21f   :  { %2593 = vmatpush.msrb.mxu3 %v723_v43  ;;  %2176 = vmatpush.msrb.mxu1 %v690_v33  ;;  %v584_v43 = vld [vmem:[#allocation4 + $0xf48] sm:$0xff]  ;;  %v703_v33 = vld [vmem:[%s5958_s0 + $0x300] sm:$0xff] }
 0x220   :  { %1524 = vmatmul.f32.gmra.mxu1 %v576_v46  ;;  %1942 = vmatmul.f32.gmra.mxu3 %v578_v17  ;;  %v721_v46 = vld [vmem:[%s5958_s0 + $0x390] sm:$0xff] }
 0x221   :  { %v1686_v19 = vpop.f32.mrf.mxu2  ;;  %v1271_v56 = vpop.f32.mrf.mxu0  ;;  %2386 = vmatpush.msrb.mxu2 %v705_v38  ;;  %1969 = vmatpush.msrb.mxu0 %v672_v10  ;;  %v586_v10 = vld [vmem:[#allocation4 + $0xf58] sm:$0xff] }
 0x222   :  { %v1687_v20 = vadd.f32 %v1686_v19, %v1478_v9  ;;  %v1272_v59 = vadd.f32 %v1271_v56, %v4574_v49  ;;  %2594 = vmatpush.msrb.mxu3 %v722_v58  ;;  %2177 = vmatpush.msrb.mxu1 %v689_v41  ;;  %v671_v9 = vld [vmem:[%s5958_s0 + $0x200] sm:$0xff]  ;;  %v688_v49 = vld [vmem:[%s5958_s0 + $0x288] sm:$0xff] }
 0x223   :  { %v1895_v37 = vpop.f32.mrf.mxu3  ;;  %2387 = vmatpush.msrb.mxu2 %v704_v15  ;;  %v687_v19 = vld [vmem:[%s5958_s0 + $0x280] sm:$0xff]  ;;  %1970 = vmatpush.msrb.mxu0 %v671_v9  ;;  %v720_v58 = vld [vmem:[%s5958_s0 + $0x388] sm:$0xff] }
 0x224   :  { %v5044_v17 = vadd.f32 %v1895_v37, %v1687_v20  ;;  %1318 = vmatmul.f32.gmra.mxu0 %v583_v57  ;;  %2595 = vmatpush.msrb.mxu3 %v721_v46  ;;  %v719_v20 = vld [vmem:[%s5958_s0 + $0x380] sm:$0xff] }
 0x225   :  { %v1480_v61 = vpop.f32.mrf.mxu1  ;;  %1736 = vmatmul.f32.gmra.mxu2 %v585_v47  ;;  %2178 = vmatpush.msrb.mxu1 %v688_v49  ;;  %v591_v47 = vld [vmem:[#allocation4 + $0xf80] sm:$0xff]  ;;  %v592_v49 = vld [vmem:[#allocation4 + $0xf88] sm:$0xff] }
 0x226   :  { %6008 = vst [vmem:[#allocation54_spill] sm:$0xff] %v5044_v17  ;;  %v1481_v38 = vadd.f32 %v1480_v61, %v1272_v59  ;;  %2388 = vmatpush.msrb.mxu2 %v703_v33  ;;  %v593_v59 = vld [vmem:[#allocation4 + $0xf90] sm:$0xff]  ;;  %2596 = vmatpush.msrb.mxu3 %v720_v58  ;;  %v1047_v33 = vpop.permute.xlu2 %1046  ;;  %v334_v17 = vld [vmem:[#allocation4 + $0x778] sm:$0xff] }
 0x227   :  { %2179 = vmatpush.msrb.mxu1 %v687_v19  ;;  %v601_v58 = vld [vmem:[#allocation4 + $0xfd0] sm:$0xff] }
 0x228   :  { %1527 = vmatmul.f32.gmra.mxu1 %v584_v43  ;;  %1945 = vmatmul.f32.gmra.mxu3 %v586_v10  ;;  %v594_v43 = vld [vmem:[#allocation4 + $0xf98] sm:$0xff] }
 0x229   :  { %v1689_v41 = vpop.f32.mrf.mxu2  ;;  %v1274_v57 = vpop.f32.mrf.mxu0  ;;  %2597 = vmatpush.msrb.mxu3 %v719_v20 }
 0x22a   :  { %v1690_v56 = vadd.f32 %v1689_v41, %v1481_v38  ;;  %v1275_v15 = vadd.f32 %v1274_v57, %v4535_v25  ;;  %v599_v41 = vld [vmem:[#allocation4 + $0xfc0] sm:$0xff] }
 0x22b   :  { %v1898_v46 = vpop.f32.mrf.mxu3 }
 0x22c   :  { %v5059_v37 = vadd.f32 %v1898_v46, %v1690_v56  ;;  %1321 = vmatmul.f32.gmra.mxu0 %v591_v47  ;;  %v600_v47 = vld [vmem:[#allocation4 + $0xfc8] sm:$0xff] }
 0x22d   :  { %v1483_v9 = vpop.f32.mrf.mxu1  ;;  %1739 = vmatmul.f32.gmra.mxu2 %v593_v59 }
 0x22e   :  { %6009 = vst [vmem:[#allocation55_spill] sm:$0xff] %v5059_v37  ;;  %v1484_v61 = vadd.f32 %v1483_v9, %v1275_v15  ;;  %v602_v15 = vld [vmem:[#allocation4 + $0xfd8] sm:$0xff]  ;;  %v1042_v46 = vpop.permute.xlu2 %1041 }
 0x230   :  { %1530 = vmatmul.f32.gmra.mxu1 %v592_v49  ;;  %1948 = vmatmul.f32.gmra.mxu3 %v594_v43  ;;  %v99_v43 = vld [vmem:[#allocation4 + $0x20] sm:$0xff] }
 0x231   :  { %v1692_v38 = vpop.f32.mrf.mxu2  ;;  %v1277_v19 = vpop.f32.mrf.mxu0 }
 0x232   :  { %v1693_v10 = vadd.f32 %v1692_v38, %v1484_v61  ;;  %v1278_v25 = vadd.f32 %v1277_v19, %v4533_v24  ;;  %v101_v38 = vld [vmem:[#allocation4 + $0x30] sm:$0xff]  ;;  %v100_v19 = vld [vmem:[#allocation4 + $0x28] sm:$0xff] }
 0x233   :  { %v1901_v57 = vpop.f32.mrf.mxu3 }
 0x234   :  { %v5062_v20 = vadd.f32 %v1901_v57, %v1693_v10  ;;  %1324 = vmatmul.f32.gmra.mxu0 %v599_v41 }
 0x235   :  { %v1486_v56 = vpop.f32.mrf.mxu1  ;;  %1742 = vmatmul.f32.gmra.mxu2 %v601_v58  ;;  %v102_v58 = vld [vmem:[#allocation4 + $0x38] sm:$0xff] }
 0x236   :  { %6010 = vst [vmem:[#allocation56_spill] sm:$0xff] %v5062_v20  ;;  %v1487_v59 = vadd.f32 %v1486_v56, %v1278_v25 }
 0x238   :  { %1533 = vmatmul.f32.gmra.mxu1 %v600_v47  ;;  %1951 = vmatmul.f32.gmra.mxu3 %v602_v15  ;;  %v107_v47 = vld [vmem:[#allocation4 + $0x60] sm:$0xff] }
 0x239   :  { %v1695_v9 = vpop.f32.mrf.mxu2  ;;  %v1280_v61 = vpop.f32.mrf.mxu0 }
 0x23a   :  { %v1696_v49 = vadd.f32 %v1695_v9, %v1487_v59  ;;  %v1281_v2 = vadd.f32 %v1280_v61, %v1042_v46  ;;  %v109_v59 = vld [vmem:[#allocation4 + $0x70] sm:$0xff]  ;;  %v110_v61 = vld [vmem:[#allocation4 + $0x78] sm:$0xff] }
 0x23b   :  { %v1904_v1 = vpop.f32.mrf.mxu3 }
 0x23c   :  { %v5064_v24 = vadd.f32 %v1904_v1, %v1696_v49  ;;  %1971 = vmatmul.f32.vlgmr.msrb.gmra.mxu0 %v99_v43  ;;  %v108_v1 = vld [vmem:[#allocation4 + $0x68] sm:$0xff] }
 0x23d   :  { %v1489_v10 = vpop.f32.mrf.mxu1  ;;  %2389 = vmatmul.f32.vlgmr.msrb.gmra.mxu2 %v101_v38 }
 0x23e   :  { %6011 = vst [vmem:[#allocation57_spill] sm:$0xff] %v5064_v24  ;;  %v1490_v41 = vadd.f32 %v1489_v10, %v1281_v2  ;;  %v115_v10 = vld [vmem:[#allocation4 + $0xa0] sm:$0xff]  ;;  %v341_v24 = vld [vmem:[#allocation4 + $0x7b0] sm:$0xff] }
 0x240   :  { %2180 = vmatmul.f32.vlgmr.msrb.gmra.mxu1 %v100_v19  ;;  %2598 = vmatmul.f32.vlgmr.msrb.gmra.mxu3 %v102_v58  ;;  %v117_v19 = vld [vmem:[#allocation4 + $0xb0] sm:$0xff] }
 0x241   :  { %v1698_v25 = vpop.f32.mrf.mxu2  ;;  %v1283_v56 = vpop.f32.mrf.mxu0 }
 0x242   :  { %v1699_v57 = vadd.f32 %v1698_v25, %v1490_v41  ;;  %v1284_v15 = vadd.f32 %v1283_v56, %v1047_v33 }
 0x243   :  { %v1907_v9 = vpop.f32.mrf.mxu3 }
 0x244   :  { %v5066_v28 = vadd.f32 %v1907_v9, %v1699_v57  ;;  %1974 = vmatmul.f32.gmra.mxu0 %v107_v47  ;;  %v116_v57 = vld [vmem:[#allocation4 + $0xa8] sm:$0xff]  ;;  %v118_v47 = vld [vmem:[#allocation4 + $0xb8] sm:$0xff] }
 0x245   :  { %v1492_v46 = vpop.f32.mrf.mxu1  ;;  %2392 = vmatmul.f32.gmra.mxu2 %v109_v59 }
 0x246   :  { %6012 = vst [vmem:[#allocation58_spill] sm:$0xff] %v5066_v28  ;;  %v1493_v49 = vadd.f32 %v1492_v46, %v1284_v15  ;;  %v123_v46 = vld [vmem:[#allocation4 + $0xe0] sm:$0xff] }
 0x248   :  { %2183 = vmatmul.f32.gmra.mxu1 %v108_v1  ;;  %2601 = vmatmul.f32.gmra.mxu3 %v110_v61  ;;  %v125_v1 = vld [vmem:[#allocation4 + $0xf0] sm:$0xff] }
 0x249   :  { %v1701_v2 = vpop.f32.mrf.mxu2  ;;  %v1286_v38 = vpop.f32.mrf.mxu0 }
 0x24a   :  { %v1702_v43 = vadd.f32 %v1701_v2, %v1493_v49  ;;  %v1287_v41 = vadd.f32 %v1286_v38, %v4761_v14 }
 0x24b   :  { %v1910_v58 = vpop.f32.mrf.mxu3 }
 0x24c   :  { %v5069_v33 = vadd.f32 %v1910_v58, %v1702_v43  ;;  %1977 = vmatmul.f32.gmra.mxu0 %v115_v10  ;;  %v124_v43 = vld [vmem:[#allocation4 + $0xe8] sm:$0xff]  ;;  %v126_v10 = vld [vmem:[#allocation4 + $0xf8] sm:$0xff] }
 0x24d   :  { %v1495_v25 = vpop.f32.mrf.mxu1  ;;  %2395 = vmatmul.f32.gmra.mxu2 %v117_v19 }
 0x24e   :  { %6013 = vst [vmem:[#allocation59_spill] sm:$0xff] %v5069_v33  ;;  %v1496_v56 = vadd.f32 %v1495_v25, %v1287_v41  ;;  %v131_v25 = vld [vmem:[#allocation4 + $0x120] sm:$0xff] }
 0x250   :  { %2186 = vmatmul.f32.gmra.mxu1 %v116_v57  ;;  %2604 = vmatmul.f32.gmra.mxu3 %v118_v47  ;;  %v133_v57 = vld [vmem:[#allocation4 + $0x130] sm:$0xff] }
 0x251   :  { %v1704_v59 = vpop.f32.mrf.mxu2  ;;  %v1289_v9 = vpop.f32.mrf.mxu0 }
 0x252   :  { %v1705_v15 = vadd.f32 %v1704_v59, %v1496_v56  ;;  %v1290_v49 = vadd.f32 %v1289_v9, %v4744_v48 }
 0x253   :  { %v1913_v61 = vpop.f32.mrf.mxu3 }
 0x254   :  { %v5072_v14 = vadd.f32 %v1913_v61, %v1705_v15  ;;  %1980 = vmatmul.f32.gmra.mxu0 %v123_v46  ;;  %v132_v15 = vld [vmem:[#allocation4 + $0x128] sm:$0xff]  ;;  %v134_v46 = vld [vmem:[#allocation4 + $0x138] sm:$0xff] }
 0x255   :  { %v1498_v2 = vpop.f32.mrf.mxu1  ;;  %2398 = vmatmul.f32.gmra.mxu2 %v125_v1 }
 0x256   :  { %6014 = vst [vmem:[#allocation60_spill] sm:$0xff] %v5072_v14  ;;  %v1499_v38 = vadd.f32 %v1498_v2, %v1290_v49  ;;  %v139_v2 = vld [vmem:[#allocation4 + $0x160] sm:$0xff] }
 0x258   :  { %2189 = vmatmul.f32.gmra.mxu1 %v124_v43  ;;  %2607 = vmatmul.f32.gmra.mxu3 %v126_v10  ;;  %v141_v43 = vld [vmem:[#allocation4 + $0x170] sm:$0xff] }
 0x259   :  { %v1707_v19 = vpop.f32.mrf.mxu2  ;;  %v1292_v58 = vpop.f32.mrf.mxu0 }
 0x25a   :  { %v1708_v41 = vadd.f32 %v1707_v19, %v1499_v38  ;;  %v1293_v56 = vadd.f32 %v1292_v58, %v4699_v29 }
 0x25b   :  { %v1916_v47 = vpop.f32.mrf.mxu3 }
 0x25c   :  { %v5075_v48 = vadd.f32 %v1916_v47, %v1708_v41  ;;  %1983 = vmatmul.f32.gmra.mxu0 %v131_v25  ;;  %v140_v41 = vld [vmem:[#allocation4 + $0x168] sm:$0xff]  ;;  %v142_v25 = vld [vmem:[#allocation4 + $0x178] sm:$0xff] }
 0x25d   :  { %v1501_v59 = vpop.f32.mrf.mxu1  ;;  %2401 = vmatmul.f32.gmra.mxu2 %v133_v57 }
 0x25e   :  { %6015 = vst [vmem:[#allocation61_spill] sm:$0xff] %v5075_v48  ;;  %v1502_v9 = vadd.f32 %v1501_v59, %v1293_v56  ;;  %v147_v59 = vld [vmem:[#allocation4 + $0x1a0] sm:$0xff] }
 0x260   :  { %2192 = vmatmul.f32.gmra.mxu1 %v132_v15  ;;  %2610 = vmatmul.f32.gmra.mxu3 %v134_v46  ;;  %v149_v15 = vld [vmem:[#allocation4 + $0x1b0] sm:$0xff] }
 0x261   :  { %v1710_v1 = vpop.f32.mrf.mxu2  ;;  %v1295_v61 = vpop.f32.mrf.mxu0 }
 0x262   :  { %v1711_v49 = vadd.f32 %v1710_v1, %v1502_v9  ;;  %v1296_v38 = vadd.f32 %v1295_v61, %v4720_v39 }
 0x263   :  { %v1919_v10 = vpop.f32.mrf.mxu3 }
 0x264   :  { %v5078_v29 = vadd.f32 %v1919_v10, %v1711_v49  ;;  %1986 = vmatmul.f32.gmra.mxu0 %v139_v2  ;;  %v148_v49 = vld [vmem:[#allocation4 + $0x1a8] sm:$0xff]  ;;  %v150_v2 = vld [vmem:[#allocation4 + $0x1b8] sm:$0xff] }
 0x265   :  { %v1504_v19 = vpop.f32.mrf.mxu1  ;;  %2404 = vmatmul.f32.gmra.mxu2 %v141_v43 }
 0x266   :  { %6016 = vst [vmem:[#allocation62_spill] sm:$0xff] %v5078_v29  ;;  %v1505_v58 = vadd.f32 %v1504_v19, %v1296_v38  ;;  %v155_v19 = vld [vmem:[#allocation4 + $0x1e0] sm:$0xff] }
 0x268   :  { %2195 = vmatmul.f32.gmra.mxu1 %v140_v41  ;;  %2613 = vmatmul.f32.gmra.mxu3 %v142_v25  ;;  %v157_v41 = vld [vmem:[#allocation4 + $0x1f0] sm:$0xff] }
 0x269   :  { %v1713_v57 = vpop.f32.mrf.mxu2  ;;  %v1298_v47 = vpop.f32.mrf.mxu0 }
 0x26a   :  { %v1714_v56 = vadd.f32 %v1713_v57, %v1505_v58  ;;  %v1299_v9 = vadd.f32 %v1298_v47, %v4706_v53 }
 0x26b   :  { %v1922_v46 = vpop.f32.mrf.mxu3 }
 0x26c   :  { %v5081_v39 = vadd.f32 %v1922_v46, %v1714_v56  ;;  %1989 = vmatmul.f32.gmra.mxu0 %v147_v59  ;;  %v156_v56 = vld [vmem:[#allocation4 + $0x1e8] sm:$0xff]  ;;  %v158_v59 = vld [vmem:[#allocation4 + $0x1f8] sm:$0xff] }
 0x26d   :  { %v1507_v1 = vpop.f32.mrf.mxu1  ;;  %2407 = vmatmul.f32.gmra.mxu2 %v149_v15 }
 0x26e   :  { %6017 = vst [vmem:[#allocation63_spill] sm:$0xff] %v5081_v39  ;;  %v1508_v61 = vadd.f32 %v1507_v1, %v1299_v9  ;;  %v163_v1 = vld [vmem:[#allocation4 + $0x220] sm:$0xff] }
 0x270   :  { %2198 = vmatmul.f32.gmra.mxu1 %v148_v49  ;;  %2616 = vmatmul.f32.gmra.mxu3 %v150_v2  ;;  %v165_v49 = vld [vmem:[#allocation4 + $0x230] sm:$0xff] }
 0x271   :  { %v1716_v43 = vpop.f32.mrf.mxu2  ;;  %v1301_v10 = vpop.f32.mrf.mxu0 }
 0x272   :  { %v1717_v38 = vadd.f32 %v1716_v43, %v1508_v61  ;;  %v1302_v58 = vadd.f32 %v1301_v10, %v4663_v0 }
 0x273   :  { %v1925_v25 = vpop.f32.mrf.mxu3 }
 0x274   :  { %v5084_v53 = vadd.f32 %v1925_v25, %v1717_v38  ;;  %1992 = vmatmul.f32.gmra.mxu0 %v155_v19  ;;  %v164_v38 = vld [vmem:[#allocation4 + $0x228] sm:$0xff]  ;;  %v166_v19 = vld [vmem:[#allocation4 + $0x238] sm:$0xff] }
 0x275   :  { %v1510_v57 = vpop.f32.mrf.mxu1  ;;  %2410 = vmatmul.f32.gmra.mxu2 %v157_v41 }
 0x276   :  { %6018 = vst [vmem:[#allocation64_spill] sm:$0xff] %v5084_v53  ;;  %v1511_v47 = vadd.f32 %v1510_v57, %v1302_v58  ;;  %v171_v57 = vld [vmem:[#allocation4 + $0x260] sm:$0xff] }
 0x277   :  { %v227_v53 = vld [vmem:[#allocation4 + $0x420] sm:$0xff] }
 0x278   :  { %2201 = vmatmul.f32.gmra.mxu1 %v156_v56  ;;  %2619 = vmatmul.f32.gmra.mxu3 %v158_v59  ;;  %v173_v56 = vld [vmem:[#allocation4 + $0x270] sm:$0xff] }
 0x279   :  { %v1719_v15 = vpop.f32.mrf.mxu2  ;;  %v1304_v46 = vpop.f32.mrf.mxu0 }
 0x27a   :  { %v1720_v9 = vadd.f32 %v1719_v15, %v1511_v47  ;;  %v1305_v61 = vadd.f32 %v1304_v46, %v4685_v45  ;;  %v6020_v47 = vld [vmem:[#allocation28_spill] sm:$0xff]  ;;  %v172_v46 = vld [vmem:[#allocation4 + $0x268] sm:$0xff] }
 0x27b   :  { %v1928_v2 = vpop.f32.mrf.mxu3 }
 0x27c   :  { %v5087_v0 = vadd.f32 %v1928_v2, %v1720_v9  ;;  %1995 = vmatmul.f32.gmra.mxu0 %v163_v1 }
 0x27d   :  { %v1513_v43 = vpop.f32.mrf.mxu1  ;;  %2413 = vmatmul.f32.gmra.mxu2 %v165_v49  ;;  %v174_v49 = vld [vmem:[#allocation4 + $0x278] sm:$0xff] }
 0x27e   :  { %6019 = vst [vmem:[#allocation65_spill] sm:$0xff] %v5087_v0  ;;  %v1514_v10 = vadd.f32 %v1513_v43, %v1305_v61 }
 0x280   :  { %2204 = vmatmul.f32.gmra.mxu1 %v164_v38  ;;  %2622 = vmatmul.f32.gmra.mxu3 %v166_v19  ;;  %v179_v38 = vld [vmem:[#allocation4 + $0x2a0] sm:$0xff]  ;;  %v6022_v19 = vld [vmem:[#allocation17_spill] sm:$0xff] }
 0x281   :  { %v1722_v41 = vpop.f32.mrf.mxu2  ;;  %v1307_v25 = vpop.f32.mrf.mxu0 }
 0x282   :  { %v1723_v58 = vadd.f32 %v1722_v41, %v1514_v10  ;;  %v1308_v59 = vadd.f32 %v1307_v25, %v6020_v47  ;;  %v181_v10 = vld [vmem:[#allocation4 + $0x2b0] sm:$0xff]  ;;  %v182_v47 = vld [vmem:[#allocation4 + $0x2b8] sm:$0xff] }
 0x283   :  { %v1931_v15 = vpop.f32.mrf.mxu3 }
 0x284   :  { %v5090_v45 = vadd.f32 %v1931_v15, %v1723_v58  ;;  %1998 = vmatmul.f32.gmra.mxu0 %v171_v57  ;;  %v180_v57 = vld [vmem:[#allocation4 + $0x2a8] sm:$0xff] }
 0x285   :  { %v1516_v9 = vpop.f32.mrf.mxu1  ;;  %2416 = vmatmul.f32.gmra.mxu2 %v173_v56 }
 0x286   :  { %6021 = vst [vmem:[#allocation28_spill] sm:$0xff] %v5090_v45  ;;  %v1517_v1 = vadd.f32 %v1516_v9, %v1308_v59  ;;  %v332_v45 = vld [vmem:[#allocation4 + $0x768] sm:$0xff] }
 0x288   :  { %2207 = vmatmul.f32.gmra.mxu1 %v172_v46  ;;  %2625 = vmatmul.f32.gmra.mxu3 %v174_v49  ;;  %v187_v46 = vld [vmem:[#allocation4 + $0x2e0] sm:$0xff]  ;;  %v6024_v49 = vld [vmem:[#allocation21_spill] sm:$0xff] }
 0x289   :  { %v1725_v61 = vpop.f32.mrf.mxu2  ;;  %v1310_v43 = vpop.f32.mrf.mxu0 }
 0x28a   :  { %v1726_v2 = vadd.f32 %v1725_v61, %v1517_v1  ;;  %v1311_v41 = vadd.f32 %v1310_v43, %v6022_v19  ;;  %v189_v1 = vld [vmem:[#allocation4 + $0x2f0] sm:$0xff] }
 0x28b   :  { %v1934_v28 = vpop.f32.mrf.mxu3 }
 0x28c   :  { %v5093_v25 = vadd.f32 %v1934_v28, %v1726_v2  ;;  %2001 = vmatmul.f32.gmra.mxu0 %v179_v38  ;;  %v188_v2 = vld [vmem:[#allocation4 + $0x2e8] sm:$0xff] }
 0x28d   :  { %v1519_v58 = vpop.f32.mrf.mxu1  ;;  %2419 = vmatmul.f32.gmra.mxu2 %v181_v10  ;;  %v190_v10 = vld [vmem:[#allocation4 + $0x2f8] sm:$0xff] }
 0x28e   :  { %6023 = vst [vmem:[#allocation17_spill] sm:$0xff] %v5093_v25  ;;  %v1520_v56 = vadd.f32 %v1519_v58, %v1311_v41  ;;  %v318_v25 = vld [vmem:[#allocation4 + $0x6f8] sm:$0xff] }
 0x290   :  { %2210 = vmatmul.f32.gmra.mxu1 %v180_v57  ;;  %2628 = vmatmul.f32.gmra.mxu3 %v182_v47  ;;  %v195_v57 = vld [vmem:[#allocation4 + $0x320] sm:$0xff]  ;;  %v6026_v47 = vld [vmem:[#allocation18_spill] sm:$0xff] }
 0x291   :  { %v1728_v59 = vpop.f32.mrf.mxu2  ;;  %v1313_v9 = vpop.f32.mrf.mxu0 }
 0x292   :  { %v1729_v15 = vadd.f32 %v1728_v59, %v1520_v56  ;;  %v1314_v61 = vadd.f32 %v1313_v9, %v6024_v49  ;;  %v197_v56 = vld [vmem:[#allocation4 + $0x330] sm:$0xff] }
 0x293   :  { %v1937_v33 = vpop.f32.mrf.mxu3 }
 0x294   :  { %v5096_v43 = vadd.f32 %v1937_v33, %v1729_v15  ;;  %2004 = vmatmul.f32.gmra.mxu0 %v187_v46  ;;  %v196_v15 = vld [vmem:[#allocation4 + $0x328] sm:$0xff] }
 0x295   :  { %v1522_v28 = vpop.f32.mrf.mxu1  ;;  %2422 = vmatmul.f32.gmra.mxu2 %v189_v1  ;;  %v198_v1 = vld [vmem:[#allocation4 + $0x338] sm:$0xff] }
 0x296   :  { %6025 = vst [vmem:[#allocation21_spill] sm:$0xff] %v5096_v43  ;;  %v1523_v38 = vadd.f32 %v1522_v28, %v1314_v61 }
 0x298   :  { %2213 = vmatmul.f32.gmra.mxu1 %v188_v2  ;;  %2631 = vmatmul.f32.gmra.mxu3 %v190_v10  ;;  %v203_v2 = vld [vmem:[#allocation4 + $0x360] sm:$0xff]  ;;  %v6028_v10 = vld [vmem:[#allocation14_spill] sm:$0xff] }
 0x299   :  { %v1731_v19 = vpop.f32.mrf.mxu2  ;;  %v1316_v58 = vpop.f32.mrf.mxu0 }
 0x29a   :  { %v1732_v41 = vadd.f32 %v1731_v19, %v1523_v38  ;;  %v1317_v59 = vadd.f32 %v1316_v58, %v6026_v47  ;;  %v205_v38 = vld [vmem:[#allocation4 + $0x370] sm:$0xff] }
 0x29b   :  { %v1940_v14 = vpop.f32.mrf.mxu3 }
 0x29c   :  { %v5099_v9 = vadd.f32 %v1940_v14, %v1732_v41  ;;  %2007 = vmatmul.f32.gmra.mxu0 %v195_v57  ;;  %v204_v41 = vld [vmem:[#allocation4 + $0x368] sm:$0xff] }
 0x29d   :  { %v1525_v33 = vpop.f32.mrf.mxu1  ;;  %2425 = vmatmul.f32.gmra.mxu2 %v197_v56  ;;  %v206_v56 = vld [vmem:[#allocation4 + $0x378] sm:$0xff] }
 0x29e   :  { %6027 = vst [vmem:[#allocation18_spill] sm:$0xff] %v5099_v9  ;;  %v1526_v46 = vadd.f32 %v1525_v33, %v1317_v59 }
 0x2a0   :  { %2216 = vmatmul.f32.gmra.mxu1 %v196_v15  ;;  %2634 = vmatmul.f32.gmra.mxu3 %v198_v1  ;;  %v211_v15 = vld [vmem:[#allocation4 + $0x3a0] sm:$0xff] }
 0x2a1   :  { %v1734_v49 = vpop.f32.mrf.mxu2  ;;  %v1319_v28 = vpop.f32.mrf.mxu0  ;;  %v6030_v1 = vld [vmem:[#allocation16_spill] sm:$0xff] }
 0x2a2   :  { %v1735_v61 = vadd.f32 %v1734_v49, %v1526_v46  ;;  %v1320_v19 = vadd.f32 %v1319_v28, %v6028_v10  ;;  %v213_v46 = vld [vmem:[#allocation4 + $0x3b0] sm:$0xff] }
 0x2a3   :  { %v1943_v48 = vpop.f32.mrf.mxu3 }
 0x2a4   :  { %v5102_v58 = vadd.f32 %v1943_v48, %v1735_v61  ;;  %2010 = vmatmul.f32.gmra.mxu0 %v203_v2  ;;  %v212_v61 = vld [vmem:[#allocation4 + $0x3a8] sm:$0xff]  ;;  %v6032_v2 = vld [vmem:[#allocation19_spill] sm:$0xff] }
 0x2a5   :  { %v1528_v14 = vpop.f32.mrf.mxu1  ;;  %2428 = vmatmul.f32.gmra.mxu2 %v205_v38  ;;  %v1137_v38 = vadd.f32 %v6032_v2, %v4765_v27  ;;  %v220_v27 = vld [vmem:[#allocation4 + $0x3e8] sm:$0xff]  ;;  %v222_v2 = vld [vmem:[#allocation4 + $0x3f8] sm:$0xff] }
 0x2a6   :  { %6029 = vst [vmem:[#allocation14_spill] sm:$0xff] %v5102_v58  ;;  %v1529_v57 = vadd.f32 %v1528_v14, %v1320_v19  ;;  %v214_v19 = vld [vmem:[#allocation4 + $0x3b8] sm:$0xff]  ;;  %v324_v58 = vld [vmem:[#allocation4 + $0x728] sm:$0xff] }
 0x2a8   :  { %2219 = vmatmul.f32.gmra.mxu1 %v204_v41  ;;  %2637 = vmatmul.f32.gmra.mxu3 %v206_v56  ;;  %v6033_v41 = vld [vmem:[#allocation20_spill] sm:$0xff] }
 0x2a9   :  { %v1737_v47 = vpop.f32.mrf.mxu2  ;;  %v1322_v33 = vpop.f32.mrf.mxu0 }
 0x2aa   :  { %v1738_v59 = vadd.f32 %v1737_v47, %v1529_v57  ;;  %v1323_v49 = vadd.f32 %v1322_v33, %v6030_v1  ;;  %v1346_v57 = vadd.f32 %v6033_v41, %v1137_v38  ;;  %v219_v33 = vld [vmem:[#allocation4 + $0x3e0] sm:$0xff]  ;;  %v221_v1 = vld [vmem:[#allocation4 + $0x3f0] sm:$0xff] }
 0x2ab   :  { %v1946_v29 = vpop.f32.mrf.mxu3 }
 0x2ac   :  { %v5105_v28 = vadd.f32 %v1946_v29, %v1738_v59  ;;  %2013 = vmatmul.f32.gmra.mxu0 %v211_v15  ;;  %v6034_v29 = vld [vmem:[#allocation15_spill] sm:$0xff] }
 0x2ad   :  { %v1531_v48 = vpop.f32.mrf.mxu1  ;;  %2431 = vmatmul.f32.gmra.mxu2 %v213_v46 }
 0x2ae   :  { %6031 = vst [vmem:[#allocation16_spill] sm:$0xff] %v5105_v28  ;;  %v1532_v10 = vadd.f32 %v1531_v48, %v1323_v49  ;;  %v6036_v49 = vld [vmem:[#allocation22_spill] sm:$0xff]  ;;  %v326_v28 = vld [vmem:[#allocation4 + $0x738] sm:$0xff] }
 0x2af   :  { %v1555_v48 = vadd.f32 %v6036_v49, %v1346_v57  ;;  %v6039_v57 = vld [vmem:[#allocation24_spill] sm:$0xff] }
 0x2b0   :  { %2222 = vmatmul.f32.gmra.mxu1 %v212_v61  ;;  %2640 = vmatmul.f32.gmra.mxu3 %v214_v19  ;;  %v6037_v19 = vld [vmem:[#allocation23_spill] sm:$0xff] }
 0x2b1   :  { %v1740_v14 = vpop.f32.mrf.mxu2  ;;  %v1325_v47 = vpop.f32.mrf.mxu0 }
 0x2b2   :  { %v1741_v56 = vadd.f32 %v1740_v14, %v1532_v10  ;;  %v1326_v59 = vadd.f32 %v1325_v47, %v6034_v29  ;;  %v1764_v14 = vadd.f32 %v6037_v19, %v1555_v48  ;;  %v229_v47 = vld [vmem:[#allocation4 + $0x430] sm:$0xff]  ;;  %v6040_v48 = vld [vmem:[#allocation25_spill] sm:$0xff]  ;;  %v235_v19 = vld [vmem:[#allocation4 + $0x460] sm:$0xff] }
 0x2b3   :  { %v1949_v39 = vpop.f32.mrf.mxu3 }
 0x2b4   :  { %v5111_v15 = vadd.f32 %v1949_v39, %v1741_v56  ;;  %2016 = vmatmul.f32.gmra.mxu0 %v219_v33 }
 0x2b5   :  { %v1534_v46 = vpop.f32.mrf.mxu1  ;;  %2434 = vmatmul.f32.gmra.mxu2 %v221_v1  ;;  %v228_v1 = vld [vmem:[#allocation4 + $0x428] sm:$0xff] }
 0x2b6   :  { %6035 = vst [vmem:[#allocation19_spill] sm:$0xff] %v5111_v15  ;;  %v1535_v61 = vadd.f32 %v1534_v46, %v1326_v59  ;;  %v1143_v59 = vadd.f32 %v6039_v57, %v4754_v26  ;;  %v230_v46 = vld [vmem:[#allocation4 + $0x438] sm:$0xff]  ;;  %v236_v26 = vld [vmem:[#allocation4 + $0x468] sm:$0xff]  ;;  %v333_v15 = vld [vmem:[#allocation4 + $0x770] sm:$0xff] }
 0x2b8   :  { %2225 = vmatmul.f32.gmra.mxu1 %v220_v27  ;;  %2643 = vmatmul.f32.gmra.mxu3 %v222_v2 }
 0x2b9   :  { %v1743_v38 = vpop.f32.mrf.mxu2  ;;  %v1972_v41 = vpop.f32.mrf.mxu0 }
 0x2ba   :  { %v1744_v10 = vadd.f32 %v1743_v38, %v1535_v61  ;;  %v1973_v39 = vadd.f32 %v1972_v41, %v1764_v14  ;;  %v1352_v61 = vadd.f32 %v6040_v48, %v1143_v59  ;;  %v237_v14 = vld [vmem:[#allocation4 + $0x470] sm:$0xff]  ;;  %v243_v48 = vld [vmem:[#allocation4 + $0x4a0] sm:$0xff] }
 0x2bb   :  { %v1952_v29 = vpop.f32.mrf.mxu3 }
 0x2bc   :  { %v5115_v56 = vadd.f32 %v1952_v29, %v1744_v10  ;;  %2019 = vmatmul.f32.gmra.mxu0 %v227_v53  ;;  %v6041_v29 = vld [vmem:[#allocation26_spill] sm:$0xff] }
 0x2bd   :  { %v2181_v33 = vpop.f32.mrf.mxu1  ;;  %2437 = vmatmul.f32.gmra.mxu2 %v229_v47 }
 0x2be   :  { %6038 = vst [vmem:[#allocation20_spill] sm:$0xff] %v5115_v56  ;;  %v2182_v27 = vadd.f32 %v2181_v33, %v1973_v39  ;;  %v1561_v39 = vadd.f32 %v6041_v29, %v1352_v61  ;;  %v238_v33 = vld [vmem:[#allocation4 + $0x478] sm:$0xff]  ;;  %v331_v56 = vld [vmem:[#allocation4 + $0x760] sm:$0xff] }
 0x2bf   :  { %v246_v61 = vld [vmem:[#allocation4 + $0x4b8] sm:$0xff] }
 0x2c0   :  { %2228 = vmatmul.f32.gmra.mxu1 %v228_v1  ;;  %2646 = vmatmul.f32.gmra.mxu3 %v230_v46  ;;  %v6042_v46 = vld [vmem:[#allocation27_spill] sm:$0xff] }
 0x2c1   :  { %v2390_v49 = vpop.f32.mrf.mxu2  ;;  %v1975_v38 = vpop.f32.mrf.mxu0 }
 0x2c2   :  { %v2391_v2 = vadd.f32 %v2390_v49, %v2182_v27  ;;  %v1976_v10 = vadd.f32 %v1975_v38, %v4731_v44  ;;  %v1770_v27 = vadd.f32 %v6042_v46, %v1561_v39  ;;  %v245_v44 = vld [vmem:[#allocation4 + $0x4b0] sm:$0xff] }
 0x2c3   :  { %v2599_v41 = vpop.f32.mrf.mxu3  ;;  %v253_v39 = vld [vmem:[#allocation4 + $0x4f0] sm:$0xff] }
 0x2c4   :  { %v5121_v53 = vadd.f32 %v2599_v41, %v2391_v2  ;;  %2022 = vmatmul.f32.gmra.mxu0 %v235_v19 }
 0x2c5   :  { %v2184_v47 = vpop.f32.mrf.mxu1  ;;  %2440 = vmatmul.f32.gmra.mxu2 %v237_v14  ;;  %v244_v14 = vld [vmem:[#allocation4 + $0x4a8] sm:$0xff] }
 0x2c6   :  { %v2185_v1 = vadd.f32 %v2184_v47, %v1976_v10 }
 0x2c8   :  { %2231 = vmatmul.f32.gmra.mxu1 %v236_v26  ;;  %2649 = vmatmul.f32.gmra.mxu3 %v238_v33  ;;  %v251_v33 = vld [vmem:[#allocation4 + $0x4e0] sm:$0xff] }
 0x2c9   :  { %v2393_v57 = vpop.f32.mrf.mxu2  ;;  %v1978_v49 = vpop.f32.mrf.mxu0 }
 0x2ca   :  { %v2394_v59 = vadd.f32 %v2393_v57, %v2185_v1  ;;  %v1979_v38 = vadd.f32 %v1978_v49, %v1770_v27  ;;  %v252_v27 = vld [vmem:[#allocation4 + $0x4e8] sm:$0xff]  ;;  %v254_v49 = vld [vmem:[#allocation4 + $0x4f8] sm:$0xff] }
 0x2cb   :  { %v2602_v2 = vpop.f32.mrf.mxu3 }
 0x2cc   :  { %v5125_v41 = vadd.f32 %v2602_v2, %v2394_v59  ;;  %2025 = vmatmul.f32.gmra.mxu0 %v243_v48 }
 0x2cd   :  { %v2187_v19 = vpop.f32.mrf.mxu1  ;;  %2443 = vmatmul.f32.gmra.mxu2 %v245_v44 }
 0x2ce   :  { %v2188_v29 = vadd.f32 %v2187_v19, %v1979_v38  ;;  %v259_v19 = vld [vmem:[#allocation4 + $0x520] sm:$0xff] }
 0x2d0   :  { %2234 = vmatmul.f32.gmra.mxu1 %v244_v14  ;;  %2652 = vmatmul.f32.gmra.mxu3 %v246_v61  ;;  %v261_v14 = vld [vmem:[#allocation4 + $0x530] sm:$0xff]  ;;  %v6043_v61 = vld [vmem:[#allocation29_spill] sm:$0xff] }
 0x2d1   :  { %v2396_v10 = vpop.f32.mrf.mxu2  ;;  %v1981_v26 = vpop.f32.mrf.mxu0 }
 0x2d2   :  { %v2397_v47 = vadd.f32 %v2396_v10, %v2188_v29  ;;  %v1982_v1 = vadd.f32 %v1981_v26, %v4742_v4  ;;  %v260_v26 = vld [vmem:[#allocation4 + $0x528] sm:$0xff] }
 0x2d3   :  { %v2605_v57 = vpop.f32.mrf.mxu3 }
 0x2d4   :  { %v5128_v46 = vadd.f32 %v2605_v57, %v2397_v47  ;;  %2028 = vmatmul.f32.gmra.mxu0 %v251_v33  ;;  %v262_v33 = vld [vmem:[#allocation4 + $0x538] sm:$0xff] }
 0x2d5   :  { %v2190_v59 = vpop.f32.mrf.mxu1  ;;  %2446 = vmatmul.f32.gmra.mxu2 %v253_v39 }
 0x2d6   :  { %v2191_v48 = vadd.f32 %v2190_v59, %v1982_v1 }
 0x2d8   :  { %2237 = vmatmul.f32.gmra.mxu1 %v252_v27  ;;  %2655 = vmatmul.f32.gmra.mxu3 %v254_v49  ;;  %v267_v27 = vld [vmem:[#allocation4 + $0x560] sm:$0xff]  ;;  %v269_v49 = vld [vmem:[#allocation4 + $0x570] sm:$0xff] }
 0x2d9   :  { %v2399_v44 = vpop.f32.mrf.mxu2  ;;  %v1984_v2 = vpop.f32.mrf.mxu0 }
 0x2da   :  { %v2400_v38 = vadd.f32 %v2399_v44, %v2191_v48  ;;  %v1985_v29 = vadd.f32 %v1984_v2, %v6043_v61 }
 0x2db   :  { %v2608_v10 = vpop.f32.mrf.mxu3 }
 0x2dc   :  { %v5131_v4 = vadd.f32 %v2608_v10, %v2400_v38  ;;  %2031 = vmatmul.f32.gmra.mxu0 %v259_v19  ;;  %v268_v19 = vld [vmem:[#allocation4 + $0x568] sm:$0xff] }
 0x2dd   :  { %v2193_v47 = vpop.f32.mrf.mxu1  ;;  %2449 = vmatmul.f32.gmra.mxu2 %v261_v14  ;;  %v270_v14 = vld [vmem:[#allocation4 + $0x578] sm:$0xff] }
 0x2de   :  { %v2194_v39 = vadd.f32 %v2193_v47, %v1985_v29 }
 0x2e0   :  { %2240 = vmatmul.f32.gmra.mxu1 %v260_v26  ;;  %2658 = vmatmul.f32.gmra.mxu3 %v262_v33  ;;  %v275_v26 = vld [vmem:[#allocation4 + $0x5a0] sm:$0xff]  ;;  %v277_v33 = vld [vmem:[#allocation4 + $0x5b0] sm:$0xff] }
 0x2e1   :  { %v2402_v1 = vpop.f32.mrf.mxu2  ;;  %v1987_v59 = vpop.f32.mrf.mxu0 }
 0x2e2   :  { %v2403_v57 = vadd.f32 %v2402_v1, %v2194_v39  ;;  %v1988_v48 = vadd.f32 %v1987_v59, %v4711_v7  ;;  %v6044_v39 = vld [vmem:[#allocation30_spill] sm:$0xff]  ;;  %v276_v59 = vld [vmem:[#allocation4 + $0x5a8] sm:$0xff] }
 0x2e3   :  { %v2611_v44 = vpop.f32.mrf.mxu3 }
 0x2e4   :  { %v5134_v2 = vadd.f32 %v2611_v44, %v2403_v57  ;;  %2034 = vmatmul.f32.gmra.mxu0 %v267_v27  ;;  %v278_v27 = vld [vmem:[#allocation4 + $0x5b8] sm:$0xff] }
 0x2e5   :  { %v2196_v38 = vpop.f32.mrf.mxu1  ;;  %2452 = vmatmul.f32.gmra.mxu2 %v269_v49 }
 0x2e6   :  { %v2197_v61 = vadd.f32 %v2196_v38, %v1988_v48 }
 0x2e8   :  { %2243 = vmatmul.f32.gmra.mxu1 %v268_v19  ;;  %2661 = vmatmul.f32.gmra.mxu3 %v270_v14  ;;  %v283_v19 = vld [vmem:[#allocation4 + $0x5e0] sm:$0xff]  ;;  %v285_v14 = vld [vmem:[#allocation4 + $0x5f0] sm:$0xff] }
 0x2e9   :  { %v2405_v29 = vpop.f32.mrf.mxu2  ;;  %v1990_v47 = vpop.f32.mrf.mxu0 }
 0x2ea   :  { %v2406_v10 = vadd.f32 %v2405_v29, %v2197_v61  ;;  %v1991_v1 = vadd.f32 %v1990_v47, %v6044_v39 }
 0x2eb   :  { %v2614_v0 = vpop.f32.mrf.mxu3 }
 0x2ec   :  { %v5137_v7 = vadd.f32 %v2614_v0, %v2406_v10  ;;  %2037 = vmatmul.f32.gmra.mxu0 %v275_v26  ;;  %v284_v10 = vld [vmem:[#allocation4 + $0x5e8] sm:$0xff]  ;;  %v286_v26 = vld [vmem:[#allocation4 + $0x5f8] sm:$0xff] }
 0x2ed   :  { %v2199_v57 = vpop.f32.mrf.mxu1  ;;  %2455 = vmatmul.f32.gmra.mxu2 %v277_v33 }
 0x2ee   :  { %v2200_v49 = vadd.f32 %v2199_v57, %v1991_v1 }
 0x2f0   :  { %2246 = vmatmul.f32.gmra.mxu1 %v276_v59  ;;  %2664 = vmatmul.f32.gmra.mxu3 %v278_v27  ;;  %v291_v59 = vld [vmem:[#allocation4 + $0x620] sm:$0xff]  ;;  %v293_v27 = vld [vmem:[#allocation4 + $0x630] sm:$0xff] }
 0x2f1   :  { %v2408_v48 = vpop.f32.mrf.mxu2  ;;  %v1993_v38 = vpop.f32.mrf.mxu0 }
 0x2f2   :  { %v2409_v44 = vadd.f32 %v2408_v48, %v2200_v49  ;;  %v1994_v61 = vadd.f32 %v1993_v38, %v4709_v35  ;;  %v292_v38 = vld [vmem:[#allocation4 + $0x628] sm:$0xff] }
 0x2f3   :  { %v2617_v29 = vpop.f32.mrf.mxu3 }
 0x2f4   :  { %v5140_v47 = vadd.f32 %v2617_v29, %v2409_v44  ;;  %2040 = vmatmul.f32.gmra.mxu0 %v283_v19 }
 0x2f5   :  { %v2202_v0 = vpop.f32.mrf.mxu1  ;;  %2458 = vmatmul.f32.gmra.mxu2 %v285_v14  ;;  %v294_v14 = vld [vmem:[#allocation4 + $0x638] sm:$0xff] }
 0x2f6   :  { %v2203_v33 = vadd.f32 %v2202_v0, %v1994_v61 }
 0x2f8   :  { %2249 = vmatmul.f32.gmra.mxu1 %v284_v10  ;;  %2667 = vmatmul.f32.gmra.mxu3 %v286_v26  ;;  %v299_v10 = vld [vmem:[#allocation4 + $0x660] sm:$0xff]  ;;  %v301_v26 = vld [vmem:[#allocation4 + $0x670] sm:$0xff] }
 0x2f9   :  { %v2411_v39 = vpop.f32.mrf.mxu2  ;;  %v1996_v57 = vpop.f32.mrf.mxu0 }
 0x2fa   :  { %v2412_v1 = vadd.f32 %v2411_v39, %v2203_v33  ;;  %v1997_v49 = vadd.f32 %v1996_v57, %v4718_v18  ;;  %v302_v57 = vld [vmem:[#allocation4 + $0x678] sm:$0xff] }
 0x2fb   :  { %v2620_v48 = vpop.f32.mrf.mxu3 }
 0x2fc   :  { %v5143_v35 = vadd.f32 %v2620_v48, %v2412_v1  ;;  %2043 = vmatmul.f32.gmra.mxu0 %v291_v59  ;;  %v300_v1 = vld [vmem:[#allocation4 + $0x668] sm:$0xff]  ;;  %v309_v48 = vld [vmem:[#allocation4 + $0x6b0] sm:$0xff] }
 0x2fd   :  { %v2205_v44 = vpop.f32.mrf.mxu1  ;;  %2461 = vmatmul.f32.gmra.mxu2 %v293_v27 }
 0x2fe   :  { %v2206_v19 = vadd.f32 %v2205_v44, %v1997_v49  ;;  %v307_v49 = vld [vmem:[#allocation4 + $0x6a0] sm:$0xff] }
 0x300   :  { %2252 = vmatmul.f32.gmra.mxu1 %v292_v38  ;;  %2670 = vmatmul.f32.gmra.mxu3 %v294_v14  ;;  %v310_v14 = vld [vmem:[#allocation4 + $0x6b8] sm:$0xff] }
 0x301   :  { %v2414_v61 = vpop.f32.mrf.mxu2  ;;  %v5145_v0 = vpop.f32.mrf.mxu0 }
 0x302   :  { %v2415_v29 = vadd.f32 %v2414_v61, %v2206_v19  ;;  %v308_v19 = vld [vmem:[#allocation4 + $0x6a8] sm:$0xff] }
 0x303   :  { %v2623_v33 = vpop.f32.mrf.mxu3 }
 0x304   :  { %v5147_v39 = vadd.f32 %v2623_v33, %v2415_v29  ;;  %2046 = vmatmul.f32.gmra.mxu0 %v299_v10  ;;  %v315_v10 = vld [vmem:[#allocation4 + $0x6e0] sm:$0xff] }
 0x305   :  { %v5149_v18 = vpop.f32.mrf.mxu1  ;;  %2464 = vmatmul.f32.gmra.mxu2 %v301_v26  ;;  %v317_v26 = vld [vmem:[#allocation4 + $0x6f0] sm:$0xff] }
 0x308   :  { %2255 = vmatmul.f32.gmra.mxu1 %v300_v1  ;;  %2673 = vmatmul.f32.gmra.mxu3 %v302_v57  ;;  %v316_v57 = vld [vmem:[#allocation4 + $0x6e8] sm:$0xff] }
 0x309   :  { %v5151_v59 = vpop.f32.mrf.mxu2  ;;  %v5153_v27 = vpop.f32.mrf.mxu0 }
 0x30b   :  { %v5155_v44 = vpop.f32.mrf.mxu3 }
 0x30c   :  { %2049 = vmatmul.f32.gmra.mxu0 %v307_v49 }
 0x30d   :  { %v5157_v38 = vpop.f32.mrf.mxu1  ;;  %2467 = vmatmul.f32.gmra.mxu2 %v309_v48 }
 0x310   :  { %2258 = vmatmul.f32.gmra.mxu1 %v308_v19  ;;  %2676 = vmatmul.f32.gmra.mxu3 %v310_v14  ;;  %v323_v19 = vld [vmem:[#allocation4 + $0x720] sm:$0xff]  ;;  %v325_v14 = vld [vmem:[#allocation4 + $0x730] sm:$0xff] }
 0x311   :  { %v5159_v61 = vpop.f32.mrf.mxu2  ;;  %v2005_v29 = vpop.f32.mrf.mxu0 }
 0x313   :  { %v5161_v33 = vpop.f32.mrf.mxu3 }
 0x314   :  { %2052 = vmatmul.f32.gmra.mxu0 %v315_v10 }
 0x315   :  { %v5163_v1 = vpop.f32.mrf.mxu1  ;;  %2470 = vmatmul.f32.gmra.mxu2 %v317_v26 }
 0x318   :  { %2261 = vmatmul.f32.gmra.mxu1 %v316_v57  ;;  %2679 = vmatmul.f32.gmra.mxu3 %v318_v25 }
 0x319   :  { %v5165_v49 = vpop.f32.mrf.mxu2  ;;  %v2008_v48 = vpop.f32.mrf.mxu0 }
 0x31a   :  { %v2009_v32 = vadd.f32 %v2008_v48, %v6047_v52 }
 0x31b   :  { %v5167_v43 = vpop.f32.mrf.mxu3 }
 0x31c   :  { %2055 = vmatmul.f32.gmra.mxu0 %v323_v19 }
 0x31d   :  { %v2217_v9 = vpop.f32.mrf.mxu1  ;;  %2473 = vmatmul.f32.gmra.mxu2 %v325_v14  ;;  %v339_v14 = vld [vmem:[#allocation4 + $0x7a0] sm:$0xff] }
 0x320   :  { %2264 = vmatmul.f32.gmra.mxu1 %v324_v58  ;;  %2682 = vmatmul.f32.gmra.mxu3 %v326_v28  ;;  %v340_v28 = vld [vmem:[#allocation4 + $0x7a8] sm:$0xff] }
 0x321   :  { %v2426_v10 = vpop.f32.mrf.mxu2  ;;  %v2011_v26 = vpop.f32.mrf.mxu0 }
 0x322   :  { %v2012_v22 = vadd.f32 %v2011_v26, %v6046_v42  ;;  %v355_v26 = vld [vmem:[#allocation4 + $0x820] sm:$0xff] }
 0x323   :  { %v5169_v57 = vpop.f32.mrf.mxu3 }
 0x324   :  { %2058 = vmatmul.f32.gmra.mxu0 %v331_v56  ;;  %v347_v56 = vld [vmem:[#allocation4 + $0x7e0] sm:$0xff] }
 0x325   :  { %v2220_v25 = vpop.f32.mrf.mxu1  ;;  %2476 = vmatmul.f32.gmra.mxu2 %v333_v15  ;;  %v349_v15 = vld [vmem:[#allocation4 + $0x7f0] sm:$0xff] }
 0x326   :  { %v2221_v51 = vadd.f32 %v2220_v25, %v2012_v22  ;;  %v6050_v22 = vld [vmem:[#allocation31_spill] sm:$0xff] }
 0x328   :  { %2267 = vmatmul.f32.gmra.mxu1 %v332_v45  ;;  %2685 = vmatmul.f32.gmra.mxu3 %v334_v17 }
 0x329   :  { %v2429_v37 = vpop.f32.mrf.mxu2  ;;  %v2014_v19 = vpop.f32.mrf.mxu0 }
 0x32a   :  { %v2015_v5 = vadd.f32 %v2014_v19, %v6045_v21  ;;  %v357_v19 = vld [vmem:[#allocation4 + $0x830] sm:$0xff] }
 0x32b   :  { %v2638_v20 = vpop.f32.mrf.mxu3 }
 0x32c   :  { %2061 = vmatmul.f32.gmra.mxu0 %v339_v14  ;;  %v348_v14 = vld [vmem:[#allocation4 + $0x7e8] sm:$0xff] }
 0x32d   :  { %v2223_v58 = vpop.f32.mrf.mxu1  ;;  %2479 = vmatmul.f32.gmra.mxu2 %v341_v24  ;;  %v350_v24 = vld [vmem:[#allocation4 + $0x7f8] sm:$0xff] }
 0x330   :  { %2270 = vmatmul.f32.gmra.mxu1 %v340_v28  ;;  %2688 = vmatmul.f32.gmra.mxu3 %v342_v36  ;;  %v2224_v28 = vadd.f32 %v2223_v58, %v2015_v5  ;;  %v6048_v36 = vld [vmem:[#allocation33_spill] sm:$0xff]  ;;  %v2218_v5 = vadd.f32 %v2217_v9, %v2009_v32 }
 0x331   :  { %v2432_v55 = vpop.f32.mrf.mxu2  ;;  %v2017_v11 = vpop.f32.mrf.mxu0  ;;  %v2006_v63 = vadd.f32 %v2005_v29, %v6048_v36  ;;  %v2430_v29 = vadd.f32 %v2429_v37, %v2221_v51  ;;  %v356_v32 = vld [vmem:[#allocation4 + $0x828] sm:$0xff]  ;;  %v358_v51 = vld [vmem:[#allocation4 + $0x838] sm:$0xff] }
 0x332   :  { %v2018_v17 = vadd.f32 %v2017_v11, %v4772_v30  ;;  %v2433_v6 = vadd.f32 %v2432_v55, %v2224_v28  ;;  %v3126_v30 = vld [vmem:[%s5962_s4 + $0x78] sm:$0xff]  ;;  %v2000_v55 = vadd.f32 %v5145_v0, %v6050_v22  ;;  %v2427_v58 = vadd.f32 %v2426_v10, %v2218_v5 }
 0x333   :  { %v2641_v45 = vpop.f32.mrf.mxu3  ;;  %3220 = vperm.xlu1 %4030, %v3126_v30   ;;  %v2215_v48 = vadd.f32 %v5163_v1, %v2006_v63 }
 0x334   :  { %2064 = vmatmul.f32.gmra.mxu0 %v347_v56  ;;  %v6049_v56 = vld [vmem:[#allocation32_spill] sm:$0xff] }
 0x335   :  { %v2226_v23 = vpop.f32.mrf.mxu1  ;;  %2482 = vmatmul.f32.gmra.mxu2 %v349_v15  ;;  %v2003_v52 = vadd.f32 %v5153_v27, %v6049_v56  ;;  %v2642_v15 = vadd.f32 %v2641_v45, %v2433_v6  ;;  %v2424_v9 = vadd.f32 %v5165_v49, %v2215_v48  ;;  %v2639_v27 = vadd.f32 %v2638_v20, %v2430_v29  ;;  %v365_v20 = vld [vmem:[#allocation4 + $0x870] sm:$0xff] }
 0x336   :  { %v2227_v50 = vadd.f32 %v2226_v23, %v2018_v17  ;;  %v3125_v23 = vld [vmem:[%s5962_s4 + $0x70] sm:$0xff]  ;;  %v2636_v6 = vadd.f32 %v5169_v57, %v2427_v58  ;;  %v3140_v57 = vld [vmem:[%s5962_s4 + $0xe8] sm:$0xff] }
 0x337   :  { %3215 = vperm.xlu0 %4029, %v3125_v23   ;;  %v2212_v37 = vadd.f32 %v5157_v38, %v2003_v52  ;;  %v2805_v1 = vmax.f32 %v2642_v15, 0.0  ;;  %v3141_v38 = vld [vmem:[%s5962_s4 + $0xf0] sm:$0xff]  ;;  %v2804_v36 = vmax.f32 %v2639_v27, 0.0  ;;  %v2799_v15 = vmax.f32 %v5147_v39, 0.0  ;;  %v3138_v39 = vld [vmem:[%s5962_s4 + $0xd8] sm:$0xff] }
 0x338   :  { %2273 = vmatmul.f32.gmra.mxu1 %v348_v14  ;;  %2691 = vmatmul.f32.gmra.mxu3 %v350_v24  ;;  %v2797_v27 = vmax.f32 %v5140_v47, 0.0  ;;  %v379_v47 = vld [vmem:[#allocation4 + $0x8e0] sm:$0xff] }
 0x339   :  { %v2435_v21 = vpop.f32.mrf.mxu2  ;;  %v2020_v11 = vpop.f32.mrf.mxu0  ;;  %v2421_v63 = vadd.f32 %v5159_v61, %v2212_v37  ;;  %v363_v61 = vld [vmem:[#allocation4 + $0x860] sm:$0xff]  ;;  %v2798_v37 = vmax.f32 %v5143_v35, 0.0  ;;  %v2796_v35 = vmax.f32 %v5137_v7, 0.0  ;;  %v382_v7 = vld [vmem:[#allocation4 + $0x8f8] sm:$0xff] }
 0x33a   :  { %v2436_v42 = vadd.f32 %v2435_v21, %v2227_v50  ;;  %v2021_v50 = vadd.f32 %v2020_v11, %v4774_v8  ;;  %v2209_v8 = vadd.f32 %v5149_v18, %v2000_v55  ;;  %v2633_v18 = vadd.f32 %v5167_v43, %v2424_v9  ;;  %v364_v43 = vld [vmem:[#allocation4 + $0x868] sm:$0xff]  ;;  %v373_v55 = vld [vmem:[#allocation4 + $0x8b0] sm:$0xff] }
 0x33b   :  { %v2644_v25 = vpop.f32.mrf.mxu3  ;;  %3295 = vperm.xlu1 %4030, %v3141_v38   ;;  %v2803_v11 = vmax.f32 %v2636_v6, 0.0  ;;  %v3137_v6 = vld [vmem:[%s5962_s4 + $0xd0] sm:$0xff]  ;;  %v2795_v38 = vmax.f32 %v5134_v2, 0.0  ;;  %v3120_v2 = vld [vmem:[%s5962_s4 + $0x48] sm:$0xff] }
 0x33c   :  { %v2645_v17 = vadd.f32 %v2644_v25, %v2436_v42  ;;  %2067 = vmatmul.f32.gmra.mxu0 %v355_v26  ;;  %v2418_v28 = vadd.f32 %v5151_v59, %v2209_v8  ;;  %v2630_v42 = vadd.f32 %v5161_v33, %v2421_v63  ;;  %v2802_v52 = vmax.f32 %v2633_v18, 0.0  ;;  %v3123_v33 = vld [vmem:[%s5962_s4 + $0x60] sm:$0xff]  ;;  %v381_v63 = vld [vmem:[#allocation4 + $0x8f0] sm:$0xff] }
 0x33d   :  { %v2229_v14 = vpop.f32.mrf.mxu1  ;;  %2485 = vmatmul.f32.gmra.mxu2 %v357_v19  ;;  %v366_v19 = vld [vmem:[#allocation4 + $0x878] sm:$0xff] }
 0x33e   :  { %v2806_v0 = vmax.f32 %v2645_v17, 0.0  ;;  %v2230_v24 = vadd.f32 %v2229_v14, %v2021_v50  ;;  %v2627_v56 = vadd.f32 %v5155_v44, %v2418_v28  ;;  %v371_v50 = vld [vmem:[#allocation4 + $0x8a0] sm:$0xff]  ;;  %v3122_v44 = vld [vmem:[%s5962_s4 + $0x58] sm:$0xff]  ;;  %v2794_v28 = vmax.f32 %v5131_v4, 0.0 }
 0x33f   :  { %3290 = vperm.xlu0 %4029, %v3140_v57   ;;  %v2792_v4 = vmax.f32 %v5125_v41, 0.0  ;;  %v390_v41 = vld [vmem:[#allocation4 + $0x938] sm:$0xff] }
 0x340   :  { %2276 = vmatmul.f32.gmra.mxu1 %v356_v32  ;;  %2694 = vmatmul.f32.gmra.mxu3 %v358_v51  ;;  %v2800_v48 = vmax.f32 %v2627_v56, 0.0  ;;  %v372_v32 = vld [vmem:[#allocation4 + $0x8a8] sm:$0xff]  ;;  %v374_v51 = vld [vmem:[#allocation4 + $0x8b8] sm:$0xff] }
 0x341   :  { %3303 = vmatpush.msra.mxu0 %v2806_v0  ;;  %v2438_v10 = vpop.f32.mrf.mxu2  ;;  %v2023_v49 = vpop.f32.mrf.mxu0  ;;  %v3142_v0 = vld [vmem:[%s5962_s4 + $0xf8] sm:$0xff] }
 0x342   :  { %v2439_v45 = vadd.f32 %v2438_v10, %v2230_v24  ;;  %v2024_v21 = vadd.f32 %v2023_v49, %v4777_v16  ;;  %v2801_v16 = vmax.f32 %v2630_v42, 0.0  ;;  %3300 = vperm.xlu2 %4031, %v3142_v0   ;;  %v3119_v42 = vld [vmem:[%s5962_s4 + $0x40] sm:$0xff] }
 0x343   :  { %3304 = vmatpush.msra.mxu0 %v2805_v1  ;;  %v2647_v30 = vpop.f32.mrf.mxu3  ;;  %3205 = vperm.xlu1 %4030, %v3123_v33  }
 0x344   :  { %v5203_v26 = vadd.f32 %v2647_v30, %v2439_v45  ;;  %2070 = vmatmul.f32.gmra.mxu0 %v363_v61  ;;  %v3124_v61 = vld [vmem:[%s5962_s4 + $0x68] sm:$0xff]  ;;  %v389_v30 = vld [vmem:[#allocation4 + $0x930] sm:$0xff] }
 0x345   :  { %3305 = vmatpush.msra.mxu0 %v2804_v36  ;;  %v2232_v59 = vpop.f32.mrf.mxu1  ;;  %2488 = vmatmul.f32.gmra.mxu2 %v365_v20  ;;  %v380_v20 = vld [vmem:[#allocation4 + $0x8e8] sm:$0xff]  ;;  %v2793_v36 = vmax.f32 %v5128_v46, 0.0  ;;  %v387_v46 = vld [vmem:[#allocation4 + $0x920] sm:$0xff] }
 0x346   :  { %v2233_v5 = vadd.f32 %v2232_v59, %v2024_v21 }
 0x347   :  { %3306 = vmatpush.msra.mxu0 %v2803_v11  ;;  %3200 = vperm.xlu0 %4029, %v3122_v44  }
 0x348   :  { %2279 = vmatmul.f32.gmra.mxu1 %v364_v43  ;;  %2697 = vmatmul.f32.gmra.mxu3 %v366_v19  ;;  %v2791_v43 = vmax.f32 %v5121_v53, 0.0  ;;  %v3139_v53 = vld [vmem:[%s5962_s4 + $0xe0] sm:$0xff] }
 0x349   :  { %3307 = vmatpush.msra.mxu0 %v2802_v52  ;;  %v2441_v29 = vpop.f32.mrf.mxu2  ;;  %v2026_v22 = vpop.f32.mrf.mxu0  ;;  %v388_v52 = vld [vmem:[#allocation4 + $0x928] sm:$0xff] }
 0x34a   :  { %v2442_v23 = vadd.f32 %v2441_v29, %v2233_v5  ;;  %v2027_v25 = vadd.f32 %v2026_v22, %v4780_v34  ;;  %3210 = vperm.xlu2 %4031, %v3124_v61   ;;  %v395_v22 = vld [vmem:[#allocation4 + $0x960] sm:$0xff]  ;;  %v412_v61 = vld [vmem:[#allocation4 + $0x9e8] sm:$0xff] }
 0x34b   :  { %3308 = vmatpush.msra.mxu0 %v2801_v16  ;;  %v2650_v58 = vpop.f32.mrf.mxu3  ;;  %3280 = vperm.xlu1 %4030, %v3138_v39   ;;  %v3116_v39 = vld [vmem:[%s5962_s4 + $0x28] sm:$0xff] }
 0x34c   :  { %v5214_v17 = vadd.f32 %v2650_v58, %v2442_v23  ;;  %2073 = vmatmul.f32.gmra.mxu0 %v371_v50  ;;  %v397_v23 = vld [vmem:[#allocation4 + $0x970] sm:$0xff]  ;;  %v396_v58 = vld [vmem:[#allocation4 + $0x968] sm:$0xff] }
 0x34d   :  { %3309 = vmatpush.msra.mxu0 %v2800_v48  ;;  %v2235_v14 = vpop.f32.mrf.mxu1  ;;  %2491 = vmatmul.f32.gmra.mxu2 %v373_v55  ;;  %v3134_v55 = vld [vmem:[%s5962_s4 + $0xb8] sm:$0xff] }
 0x34e   :  { %v2236_v9 = vadd.f32 %v2235_v14, %v2027_v25 }
 0x34f   :  { %3310 = vmatpush.msra.mxu0 %v2799_v15  ;;  %3275 = vperm.xlu0 %4029, %v3137_v6   ;;  %v398_v15 = vld [vmem:[#allocation4 + $0x978] sm:$0xff] }
 0x350   :  { %2282 = vmatmul.f32.gmra.mxu1 %v372_v32  ;;  %2700 = vmatmul.f32.gmra.mxu3 %v374_v51  ;;  %v3117_v51 = vld [vmem:[%s5962_s4 + $0x30] sm:$0xff] }
 0x351   :  { %3311 = vmatpush.msra.mxu0 %v2798_v37  ;;  %v2444_v34 = vpop.f32.mrf.mxu2  ;;  %v2029_v8 = vpop.f32.mrf.mxu0 }
 0x352   :  { %v2445_v24 = vadd.f32 %v2444_v34, %v2236_v9  ;;  %v2030_v1 = vadd.f32 %v2029_v8, %v4783_v62  ;;  %3285 = vperm.xlu2 %4031, %v3139_v53   ;;  %v403_v34 = vld [vmem:[#allocation4 + $0x9a0] sm:$0xff]  ;;  %v422_v53 = vld [vmem:[#allocation4 + $0xa38] sm:$0xff] }
 0x353   :  { %3312 = vmatpush.msra.mxu0 %v2797_v27  ;;  %v2653_v10 = vpop.f32.mrf.mxu3  ;;  %3190 = vperm.xlu1 %4030, %v3120_v2   ;;  %v405_v27 = vld [vmem:[#allocation4 + $0x9b0] sm:$0xff] }
 0x354   :  { %v5230_v45 = vadd.f32 %v2653_v10, %v2445_v24  ;;  %2076 = vmatmul.f32.gmra.mxu0 %v379_v47  ;;  %v406_v47 = vld [vmem:[#allocation4 + $0x9b8] sm:$0xff]  ;;  %v3132_v10 = vld [vmem:[%s5962_s4 + $0xa8] sm:$0xff] }
 0x355   :  { %3313 = vmatpush.msra.mxu0 %v2796_v35  ;;  %v2238_v49 = vpop.f32.mrf.mxu1  ;;  %2494 = vmatmul.f32.gmra.mxu2 %v381_v63  ;;  %v404_v35 = vld [vmem:[#allocation4 + $0x9a8] sm:$0xff] }
 0x356   :  { %v2239_v18 = vadd.f32 %v2238_v49, %v2030_v1 }
 0x357   :  { %3314 = vmatpush.msra.mxu0 %v2795_v38  ;;  %3185 = vperm.xlu0 %4029, %v3119_v42  }
 0x358   :  { %2285 = vmatmul.f32.gmra.mxu1 %v380_v20  ;;  %2703 = vmatmul.f32.gmra.mxu3 %v382_v7  ;;  %v413_v20 = vld [vmem:[#allocation4 + $0x9f0] sm:$0xff]  ;;  %v411_v7 = vld [vmem:[#allocation4 + $0x9e0] sm:$0xff] }
 0x359   :  { %3315 = vmatpush.msra.mxu0 %v2794_v28  ;;  %v2447_v62 = vpop.f32.mrf.mxu2  ;;  %v2032_v21 = vpop.f32.mrf.mxu0  ;;  %v3131_v28 = vld [vmem:[%s5962_s4 + $0xa0] sm:$0xff] }
 0x35a   :  { %v2448_v57 = vadd.f32 %v2447_v62, %v2239_v18  ;;  %v2033_v11 = vadd.f32 %v2032_v21, %v4786_v12  ;;  %v3135_v12 = vld [vmem:[%s5962_s4 + $0xc0] sm:$0xff] }
 0x35b   :  { %3316 = vmatpush.msra.mxu0 %v2793_v36  ;;  %v2656_v59 = vpop.f32.mrf.mxu3  ;;  %3265 = vperm.xlu1 %4030, %v3135_v12  }
 0x35c   :  { %v5246_v19 = vadd.f32 %v2656_v59, %v2448_v57  ;;  %2079 = vmatmul.f32.gmra.mxu0 %v387_v46  ;;  %v414_v57 = vld [vmem:[#allocation4 + $0x9f8] sm:$0xff] }
 0x35d   :  { %3317 = vmatpush.msra.mxu0 %v2792_v4  ;;  %v2241_v56 = vpop.f32.mrf.mxu1  ;;  %2497 = vmatmul.f32.gmra.mxu2 %v389_v30  ;;  %v3114_v4 = vld [vmem:[%s5962_s4 + $0x18] sm:$0xff] }
 0x35e   :  { %v2242_v5 = vadd.f32 %v2241_v56, %v2033_v11  ;;  %v421_v11 = vld [vmem:[#allocation4 + $0xa30] sm:$0xff] }
 0x35f   :  { %3318 = vmatpush.msra.mxu0 %v2791_v43  ;;  %3260 = vperm.xlu0 %4029, %v3134_v55   ;;  %v419_v43 = vld [vmem:[#allocation4 + $0xa20] sm:$0xff]  ;;  %v3113_v56 = vld [vmem:[%s5962_s4 + $0x10] sm:$0xff] }
 0x360   :  { %2288 = vmatmul.f32.gmra.mxu1 %v388_v52  ;;  %2706 = vmatmul.f32.gmra.mxu3 %v390_v41  ;;  %v429_v55 = vld [vmem:[#allocation4 + $0xa70] sm:$0xff] }
 0x361   :  { %v2450_v16 = vpop.f32.mrf.mxu2  ;;  %v2035_v33 = vpop.f32.mrf.mxu0 }
 0x362   :  { %v2451_v29 = vadd.f32 %v2450_v16, %v2242_v5  ;;  %v2036_v48 = vadd.f32 %v2035_v33, %v4789_v40  ;;  %v3121_v40 = vld [vmem:[%s5962_s4 + $0x50] sm:$0xff]  ;;  %v420_v16 = vld [vmem:[#allocation4 + $0xa28] sm:$0xff] }
 0x363   :  { %v2659_v50 = vpop.f32.mrf.mxu3  ;;  %3175 = vperm.xlu1 %4030, %v3117_v51   ;;  %3195 = vperm.xlu2 %4031, %v3121_v40   ;;  %v3133_v33 = vld [vmem:[%s5962_s4 + $0xb0] sm:$0xff]  ;;  %v3111_v40 = vld [vmem:[%s5962_s4] sm:$0xff] }
 0x364   :  { %v5258_v44 = vadd.f32 %v2659_v50, %v2451_v29  ;;  %2082 = vmatmul.f32.gmra.mxu0 %v395_v22  ;;  %v3128_v50 = vld [vmem:[%s5962_s4 + $0x88] sm:$0xff] }
 0x365   :  { %v2244_v25 = vpop.f32.mrf.mxu1  ;;  %2500 = vmatmul.f32.gmra.mxu2 %v397_v23 }
 0x366   :  { %v2245_v14 = vadd.f32 %v2244_v25, %v2036_v48  ;;  %v427_v48 = vld [vmem:[#allocation4 + $0xa60] sm:$0xff] }
 0x367   :  { %3170 = vperm.xlu0 %4029, %v3116_v39   ;;  %v3862_v39 = vld [vmem:[%s5964_s6 + $0x18] sm:$0xff] }
 0x368   :  { %2291 = vmatmul.f32.gmra.mxu1 %v396_v58  ;;  %2709 = vmatmul.f32.gmra.mxu3 %v398_v15 }
 0x369   :  { %v2453_v32 = vpop.f32.mrf.mxu2  ;;  %v2038_v9 = vpop.f32.mrf.mxu0 }
 0x36a   :  { %v2454_v37 = vadd.f32 %v2453_v32, %v2245_v14  ;;  %v2039_v0 = vadd.f32 %v2038_v9, %v4792_v54  ;;  %v3136_v54 = vld [vmem:[%s5962_s4 + $0xc8] sm:$0xff]  ;;  %v430_v32 = vld [vmem:[#allocation4 + $0xa78] sm:$0xff] }
 0x36b   :  { %v2662_v24 = vpop.f32.mrf.mxu3  ;;  %3250 = vperm.xlu1 %4030, %v3132_v10   ;;  %3270 = vperm.xlu2 %4031, %v3136_v54   ;;  %v428_v14 = vld [vmem:[#allocation4 + $0xa68] sm:$0xff]  ;;  %v445_v54 = vld [vmem:[#allocation4 + $0xaf0] sm:$0xff] }
 0x36c   :  { %v5270_v8 = vadd.f32 %v2662_v24, %v2454_v37  ;;  %2085 = vmatmul.f32.gmra.mxu0 %v403_v34  ;;  %v3115_v37 = vld [vmem:[%s5962_s4 + $0x20] sm:$0xff] }
 0x36d   :  { %v2247_v63 = vpop.f32.mrf.mxu1  ;;  %2503 = vmatmul.f32.gmra.mxu2 %v405_v27  ;;  %v437_v27 = vld [vmem:[#allocation4 + $0xab0] sm:$0xff]  ;;  %v435_v34 = vld [vmem:[#allocation4 + $0xaa0] sm:$0xff] }
 0x36e   :  { %v2248_v6 = vadd.f32 %v2247_v63, %v2039_v0  ;;  %v436_v63 = vld [vmem:[#allocation4 + $0xaa8] sm:$0xff] }
 0x36f   :  { %3245 = vperm.xlu0 %4029, %v3131_v28   ;;  %v444_v28 = vld [vmem:[#allocation4 + $0xae8] sm:$0xff] }
 0x370   :  { %2294 = vmatmul.f32.gmra.mxu1 %v404_v35  ;;  %2712 = vmatmul.f32.gmra.mxu3 %v406_v47  ;;  %v438_v35 = vld [vmem:[#allocation4 + $0xab8] sm:$0xff] }
 0x371   :  { %v2456_v1 = vpop.f32.mrf.mxu2  ;;  %v2041_v49 = vpop.f32.mrf.mxu0 }
 0x372   :  { %v2457_v38 = vadd.f32 %v2456_v1, %v2248_v6  ;;  %v2042_v18 = vadd.f32 %v2041_v49, %v4795_v31  ;;  %v3118_v31 = vld [vmem:[%s5962_s4 + $0x38] sm:$0xff]  ;;  %v3861_v6 = vld [vmem:[%s5964_s6 + $0x10] sm:$0xff]  ;;  %v3859_v49 = vld [vmem:[%s5964_s6] sm:$0xff] }
 0x373   :  { %v2665_v36 = vpop.f32.mrf.mxu3  ;;  %3160 = vperm.xlu1 %4030, %v3114_v4   ;;  %3180 = vperm.xlu2 %4031, %v3118_v31   ;;  %v3130_v1 = vld [vmem:[%s5962_s4 + $0x98] sm:$0xff] }
 0x374   :  { %v5282_v62 = vadd.f32 %v2665_v36, %v2457_v38  ;;  %2088 = vmatmul.f32.gmra.mxu0 %v411_v7  ;;  %v443_v38 = vld [vmem:[#allocation4 + $0xae0] sm:$0xff] }
 0x375   :  { %v2250_v2 = vpop.f32.mrf.mxu1  ;;  %2506 = vmatmul.f32.gmra.mxu2 %v413_v20 }
 0x376   :  { %v2251_v21 = vadd.f32 %v2250_v2, %v2042_v18  ;;  %v446_v18 = vld [vmem:[#allocation4 + $0xaf8] sm:$0xff]  ;;  %v3947_v2 = vld [vmem:[%s5966_s8] sm:$0xff] }
 0x377   :  { %3155 = vperm.xlu0 %4029, %v3113_v56   ;;  %v461_v56 = vld [vmem:[#allocation4 + $0xb70] sm:$0xff] }
 0x378   :  { %2297 = vmatmul.f32.gmra.mxu1 %v412_v61  ;;  %2715 = vmatmul.f32.gmra.mxu3 %v414_v57  ;;  %v3112_v61 = vld [vmem:[%s5962_s4 + $0x8] sm:$0xff] }
 0x379   :  { %v2459_v30 = vpop.f32.mrf.mxu2  ;;  %v2044_v42 = vpop.f32.mrf.mxu0 }
 0x37a   :  { %v2460_v46 = vadd.f32 %v2459_v30, %v2251_v21  ;;  %v2045_v59 = vadd.f32 %v2044_v42, %v4798_v3  ;;  %v3129_v3 = vld [vmem:[%s5962_s4 + $0x90] sm:$0xff]  ;;  %v451_v30 = vld [vmem:[#allocation4 + $0xb20] sm:$0xff]  ;;  %v454_v42 = vld [vmem:[#allocation4 + $0xb38] sm:$0xff] }
 0x37b   :  { %v2668_v52 = vpop.f32.mrf.mxu3  ;;  %3235 = vperm.xlu1 %4030, %v3129_v3   ;;  %3255 = vperm.xlu2 %4031, %v3133_v33   ;;  %v453_v21 = vld [vmem:[#allocation4 + $0xb30] sm:$0xff]  ;;  %v3860_v3 = vld [vmem:[%s5964_s6 + $0x8] sm:$0xff] }
 0x37c   :  { %v5294_v41 = vadd.f32 %v2668_v52, %v2460_v46  ;;  %2091 = vmatmul.f32.gmra.mxu0 %v419_v43  ;;  %v452_v46 = vld [vmem:[#allocation4 + $0xb28] sm:$0xff]  ;;  %v459_v52 = vld [vmem:[#allocation4 + $0xb60] sm:$0xff] }
 0x37d   :  { %v2253_v5 = vpop.f32.mrf.mxu1  ;;  %2509 = vmatmul.f32.gmra.mxu2 %v421_v11 }
 0x37e   :  { %v2254_v12 = vadd.f32 %v2253_v5, %v2045_v59  ;;  %v3127_v59 = vld [vmem:[%s5962_s4 + $0x80] sm:$0xff] }
 0x37f   :  { %3230 = vperm.xlu0 %4029, %v3128_v50  }
 0x380   :  { %2300 = vmatmul.f32.gmra.mxu1 %v420_v16  ;;  %2718 = vmatmul.f32.gmra.mxu3 %v422_v53  ;;  %v462_v53 = vld [vmem:[#allocation4 + $0xb78] sm:$0xff] }
 0x381   :  { %v2462_v29 = vpop.f32.mrf.mxu2  ;;  %v5302_v22 = vpop.f32.mrf.mxu0 }
 0x382   :  { %v2463_v23 = vadd.f32 %v2462_v29, %v2254_v12  ;;  %v460_v12 = vld [vmem:[#allocation4 + $0xb68] sm:$0xff] }
 0x383   :  { %v2671_v25 = vpop.f32.mrf.mxu3  ;;  %3145 = vperm.xlu1 %4030, %v3111_v40   ;;  %3165 = vperm.xlu2 %4031, %v3115_v37   ;;  %v3948_v40 = vld [vmem:[%s5966_s8 + $0x8] sm:$0x3] }
 0x384   :  { %v5307_v58 = vadd.f32 %v2671_v25, %v2463_v23  ;;  %2094 = vmatmul.f32.gmra.mxu0 %v427_v48  ;;  %v469_v23 = vld [vmem:[#allocation4 + $0xbb0] sm:$0xff]  ;;  %v468_v25 = vld [vmem:[#allocation4 + $0xba8] sm:$0xff] }
 0x385   :  { %v5309_v15 = vpop.f32.mrf.mxu1  ;;  %2512 = vmatmul.f32.gmra.mxu2 %v429_v55  ;;  %v467_v55 = vld [vmem:[#allocation4 + $0xba0] sm:$0xff] }
 0x387   :  { %3880 = vperm.xlu0 %4029, %v3862_v39   ;;  %v475_v39 = vld [vmem:[#allocation4 + $0xbe0] sm:$0xff] }
 0x388   :  { %2303 = vmatmul.f32.gmra.mxu1 %v428_v14  ;;  %2721 = vmatmul.f32.gmra.mxu3 %v430_v32  ;;  %v470_v14 = vld [vmem:[#allocation4 + $0xbb8] sm:$0xff] }
 0x389   :  { %v5311_v51 = vpop.f32.mrf.mxu2  ;;  %v5319_v9 = vpop.f32.mrf.mxu0 }
 0x38b   :  { %v5324_v0 = vpop.f32.mrf.mxu3  ;;  %3875 = vperm.xlu1 %4030, %v3861_v6   ;;  %3240 = vperm.xlu2 %4031, %v3130_v1   ;;  %v6051_v6 = vld [vmem:[#allocation41_spill] sm:$0xff] }
 0x38c   :  { %2097 = vmatmul.f32.gmra.mxu0 %v435_v34 }
 0x38d   :  { %v5326_v24 = vpop.f32.mrf.mxu1  ;;  %2515 = vmatmul.f32.gmra.mxu2 %v437_v27  ;;  %v477_v27 = vld [vmem:[#allocation4 + $0xbf0] sm:$0xff] }
 0x38f   :  { %3865 = vperm.xlu0 %4029, %v3859_v49   ;;  %v478_v49 = vld [vmem:[#allocation4 + $0xbf8] sm:$0xff] }
 0x390   :  { %2306 = vmatmul.f32.gmra.mxu1 %v436_v63  ;;  %2724 = vmatmul.f32.gmra.mxu3 %v438_v35 }
 0x391   :  { %v5328_v47 = vpop.f32.mrf.mxu2  ;;  %v5336_v10 = vpop.f32.mrf.mxu0 }
 0x393   :  { %v5341_v20 = vpop.f32.mrf.mxu3  ;;  %3951 = vperm.xlu1 %4030, %v3947_v2   ;;  %3150 = vperm.xlu2 %4031, %v3112_v61  }
 0x394   :  { %2100 = vmatmul.f32.gmra.mxu0 %v443_v38  ;;  %v476_v38 = vld [vmem:[#allocation4 + $0xbe8] sm:$0xff] }
 0x395   :  { %v5343_v7 = vpop.f32.mrf.mxu1  ;;  %2518 = vmatmul.f32.gmra.mxu2 %v445_v54 }
 0x398   :  { %2309 = vmatmul.f32.gmra.mxu1 %v444_v28  ;;  %2727 = vmatmul.f32.gmra.mxu3 %v446_v18  ;;  %v6052_v28 = vld [vmem:[#allocation40_spill] sm:$0xff] }
 0x399   :  { %v5345_v36 = vpop.f32.mrf.mxu2  ;;  %v2056_v57 = vpop.f32.mrf.mxu0 }
 0x39a   :  { %v2057_v18 = vadd.f32 %v2056_v57, %v6052_v28  ;;  %v483_v57 = vld [vmem:[#allocation4 + $0xc20] sm:$0xff] }
 0x39b   :  { %v5353_v4 = vpop.f32.mrf.mxu3  ;;  %3225 = vperm.xlu2 %4031, %v3127_v59  }
 0x39c   :  { %2103 = vmatmul.f32.gmra.mxu0 %v451_v30 }
 0x39d   :  { %v5355_v31 = vpop.f32.mrf.mxu1  ;;  %2521 = vmatmul.f32.gmra.mxu2 %v453_v21  ;;  %v6053_v21 = vld [vmem:[#allocation39_spill] sm:$0xff] }
 0x39e   :  { %v2054_v30 = vadd.f32 %v5336_v10, %v6053_v21 }
 0x3a0   :  { %2312 = vmatmul.f32.gmra.mxu1 %v452_v46  ;;  %2730 = vmatmul.f32.gmra.mxu3 %v454_v42 }
 0x3a1   :  { %v5357_v11 = vpop.f32.mrf.mxu2  ;;  %v2059_v43 = vpop.f32.mrf.mxu0 }
 0x3a2   :  { %v2060_v1 = vadd.f32 %v2059_v43, %v6051_v6  ;;  %v485_v43 = vld [vmem:[#allocation4 + $0xc30] sm:$0xff] }
 0x3a3   :  { %v5362_v5 = vpop.f32.mrf.mxu3  ;;  %3870 = vperm.xlu2 %4031, %v3860_v3   ;;  %v6055_v3 = vld [vmem:[#allocation37_spill] sm:$0xff]  ;;  %v493_v6 = vld [vmem:[#allocation4 + $0xc70] sm:$0xff] }
 0x3a4   :  { %2106 = vmatmul.f32.gmra.mxu0 %v459_v52 }
 0x3a5   :  { %v2268_v16 = vpop.f32.mrf.mxu1  ;;  %2524 = vmatmul.f32.gmra.mxu2 %v461_v56  ;;  %v6054_v56 = vld [vmem:[#allocation38_spill] sm:$0xff] }
 0x3a6   :  { %v2051_v52 = vadd.f32 %v5319_v9, %v6054_v56  ;;  %v486_v9 = vld [vmem:[#allocation4 + $0xc38] sm:$0xff] }
 0x3a8   :  { %2315 = vmatmul.f32.gmra.mxu1 %v460_v12  ;;  %2733 = vmatmul.f32.gmra.mxu3 %v462_v53  ;;  %v2266_v12 = vadd.f32 %v5355_v31, %v2057_v18  ;;  %v2260_v31 = vadd.f32 %v5326_v24, %v2051_v52 }
 0x3a9   :  { %v2477_v29 = vpop.f32.mrf.mxu2  ;;  %v2062_v33 = vpop.f32.mrf.mxu0 }
 0x3aa   :  { %v2063_v34 = vadd.f32 %v2062_v33, %v4816_v60  ;;  %v2269_v60 = vadd.f32 %v2268_v16, %v2060_v1  ;;  %v2048_v33 = vadd.f32 %v5302_v22, %v6055_v3  ;;  %v2263_v16 = vadd.f32 %v5343_v7, %v2054_v30  ;;  %v502_v3 = vld [vmem:[#allocation4 + $0xcb8] sm:$0xff] }
 0x3ab   :  { %v2686_v48 = vpop.f32.mrf.mxu3  ;;  %3956 = vperm.xlu2 %4031, %v3948_v40   ;;  %v484_v40 = vld [vmem:[#allocation4 + $0xc28] sm:$0xff]  ;;  %v2469_v7 = vadd.f32 %v5328_v47, %v2260_v31 }
 0x3ac   :  { %2109 = vmatmul.f32.gmra.mxu0 %v467_v55  ;;  %v2478_v53 = vadd.f32 %v2477_v29, %v2269_v60  ;;  %v2472_v29 = vadd.f32 %v5345_v36, %v2263_v16 }
 0x3ad   :  { %v2271_v50 = vpop.f32.mrf.mxu1  ;;  %2527 = vmatmul.f32.gmra.mxu2 %v469_v23  ;;  %v6056_v23 = vld [vmem:[#allocation42_spill] sm:$0xff]  ;;  %v2678_v47 = vadd.f32 %v5341_v20, %v2469_v7 }
 0x3ae   :  { %v2272_v2 = vadd.f32 %v2271_v50, %v2063_v34  ;;  %v2475_v50 = vadd.f32 %v5357_v11, %v2266_v12  ;;  %v2257_v34 = vadd.f32 %v5309_v15, %v2048_v33  ;;  %v2681_v36 = vadd.f32 %v5353_v4, %v2472_v29 }
 0x3af   :  { %v2817_v30 = vmax.f32 %v2678_v47, 0.0  ;;  %v2815_v12 = vmax.f32 %v5307_v58, 0.0  ;;  %v2814_v33 = vmax.f32 %v5294_v41, 0.0  ;;  %v509_v58 = vld [vmem:[#allocation4 + $0xcf0] sm:$0xff]  ;;  %v2811_v41 = vmax.f32 %v5258_v44, 0.0  ;;  %v523_v47 = vld [vmem:[#allocation4 + $0xd60] sm:$0xff] }
 0x3b0   :  { %2318 = vmatmul.f32.gmra.mxu1 %v468_v25  ;;  %2736 = vmatmul.f32.gmra.mxu3 %v470_v14  ;;  %v2684_v11 = vadd.f32 %v5362_v5, %v2475_v50  ;;  %v2466_v24 = vadd.f32 %v5311_v51, %v2257_v34  ;;  %v494_v51 = vld [vmem:[#allocation4 + $0xc78] sm:$0xff]  ;;  %v2812_v50 = vmax.f32 %v5270_v8, 0.0  ;;  %v517_v44 = vld [vmem:[#allocation4 + $0xd30] sm:$0xff] }
 0x3b1   :  { %v2480_v32 = vpop.f32.mrf.mxu2  ;;  %v2065_v37 = vpop.f32.mrf.mxu0 }
 0x3b2   :  { %v2066_v63 = vadd.f32 %v2065_v37, %v4822_v13  ;;  %v2481_v46 = vadd.f32 %v2480_v32, %v2272_v2  ;;  %v2687_v37 = vadd.f32 %v2686_v48, %v2478_v53  ;;  %v2819_v5 = vmax.f32 %v2684_v11, 0.0  ;;  %v492_v2 = vld [vmem:[#allocation4 + $0xc68] sm:$0xff] }
 0x3b3   :  { %v2689_v35 = vpop.f32.mrf.mxu3  ;;  %v2675_v4 = vadd.f32 %v5324_v0, %v2466_v24  ;;  %v2808_v11 = vmax.f32 %v5214_v17, 0.0 }
 0x3b4   :  { %2112 = vmatmul.f32.gmra.mxu0 %v475_v39  ;;  %v2690_v25 = vadd.f32 %v2689_v35, %v2481_v46  ;;  %v2820_v48 = vmax.f32 %v2687_v37, 0.0  ;;  %v501_v46 = vld [vmem:[#allocation4 + $0xcb0] sm:$0xff]  ;;  %v510_v37 = vld [vmem:[#allocation4 + $0xcf8] sm:$0xff] }
 0x3b5   :  { %v2274_v54 = vpop.f32.mrf.mxu1  ;;  %2530 = vmatmul.f32.gmra.mxu2 %v477_v27 }
 0x3b6   :  { %v2275_v61 = vadd.f32 %v2274_v54, %v2066_v63  ;;  %v2821_v39 = vmax.f32 %v2690_v25, 0.0  ;;  %v491_v54 = vld [vmem:[#allocation4 + $0xc60] sm:$0xff] }
 0x3b8   :  { %2321 = vmatmul.f32.gmra.mxu1 %v476_v38  ;;  %2739 = vmatmul.f32.gmra.mxu3 %v478_v49  ;;  %v6057_v38 = vld [vmem:[#allocation43_spill] sm:$0xff] }
 0x3b9   :  { %v2483_v13 = vpop.f32.mrf.mxu2  ;;  %v2068_v59 = vpop.f32.mrf.mxu0 }
 0x3ba   :  { %v2484_v42 = vadd.f32 %v2483_v13, %v2275_v61  ;;  %v2069_v55 = vadd.f32 %v2068_v59, %v6056_v23  ;;  %v2818_v61 = vmax.f32 %v2681_v36, 0.0  ;;  %v2816_v13 = vmax.f32 %v2675_v4, 0.0  ;;  %v499_v59 = vld [vmem:[#allocation4 + $0xca0] sm:$0xff]  ;;  %v524_v4 = vld [vmem:[#allocation4 + $0xd68] sm:$0xff] }
 0x3bb   :  { %v2692_v10 = vpop.f32.mrf.mxu3 }
 0x3bc   :  { %v2693_v14 = vadd.f32 %v2692_v10, %v2484_v42  ;;  %2115 = vmatmul.f32.gmra.mxu0 %v483_v57  ;;  %v500_v57 = vld [vmem:[#allocation4 + $0xca8] sm:$0xff] }
 0x3bd   :  { %v2277_v32 = vpop.f32.mrf.mxu1  ;;  %2533 = vmatmul.f32.gmra.mxu2 %v485_v43  ;;  %v6058_v43 = vld [vmem:[#allocation44_spill] sm:$0xff] }
 0x3be   :  { %v2822_v22 = vmax.f32 %v2693_v14, 0.0  ;;  %v2278_v27 = vadd.f32 %v2277_v32, %v2069_v55  ;;  %v2813_v55 = vmax.f32 %v5282_v62, 0.0  ;;  %v507_v14 = vld [vmem:[#allocation4 + $0xce0] sm:$0xff]  ;;  %v6059_v32 = vld [vmem:[#allocation45_spill] sm:$0xff] }
 0x3bf   :  { %v508_v62 = vld [vmem:[#allocation4 + $0xce8] sm:$0xff] }
 0x3c0   :  { %2324 = vmatmul.f32.gmra.mxu1 %v484_v40  ;;  %2742 = vmatmul.f32.gmra.mxu3 %v486_v9 }
 0x3c1   :  { %3416 = vmatpush.msra.mxu1 %v2822_v22  ;;  %v2486_v63 = vpop.f32.mrf.mxu2  ;;  %v2071_v1 = vpop.f32.mrf.mxu0  ;;  %v2810_v22 = vmax.f32 %v5246_v19, 0.0  ;;  %v2807_v19 = vmax.f32 %v5203_v26, 0.0 }
 0x3c2   :  { %v2487_v35 = vadd.f32 %v2486_v63, %v2278_v27  ;;  %v2072_v15 = vadd.f32 %v2071_v1, %v6057_v38  ;;  %v2809_v27 = vmax.f32 %v5230_v45, 0.0  ;;  %v515_v63 = vld [vmem:[#allocation4 + $0xd20] sm:$0xff]  ;;  %v516_v45 = vld [vmem:[#allocation4 + $0xd28] sm:$0xff]  ;;  %v518_v1 = vld [vmem:[#allocation4 + $0xd38] sm:$0xff] }
 0x3c3   :  { %3417 = vmatpush.msra.mxu1 %v2821_v39  ;;  %v2695_v49 = vpop.f32.mrf.mxu3 }
 0x3c4   :  { %v5393_v28 = vadd.f32 %v2695_v49, %v2487_v35  ;;  %2118 = vmatmul.f32.gmra.mxu0 %v491_v54  ;;  %v6060_v35 = vld [vmem:[#allocation46_spill] sm:$0xff] }
 0x3c5   :  { %3418 = vmatpush.msra.mxu1 %v2820_v48  ;;  %v2280_v18 = vpop.f32.mrf.mxu1  ;;  %2536 = vmatmul.f32.gmra.mxu2 %v493_v6 }
 0x3c6   :  { %v2281_v21 = vadd.f32 %v2280_v18, %v2072_v15  ;;  %v525_v15 = vld [vmem:[#allocation4 + $0xd70] sm:$0xff] }
 0x3c7   :  { %3419 = vmatpush.msra.mxu1 %v2819_v5  ;;  %v6061_v5 = vld [vmem:[#allocation47_spill] sm:$0xff] }
 0x3c8   :  { %2327 = vmatmul.f32.gmra.mxu1 %v492_v2  ;;  %2745 = vmatmul.f32.gmra.mxu3 %v494_v51 }
 0x3c9   :  { %3420 = vmatpush.msra.mxu1 %v2818_v61  ;;  %v2489_v60 = vpop.f32.mrf.mxu2  ;;  %v2074_v42 = vpop.f32.mrf.mxu0  ;;  %v526_v61 = vld [vmem:[#allocation4 + $0xd78] sm:$0xff] }
 0x3ca   :  { %v2490_v20 = vadd.f32 %v2489_v60, %v2281_v21  ;;  %v2075_v56 = vadd.f32 %v2074_v42, %v6058_v43  ;;  %v6062_v42 = vld [vmem:[#allocation48_spill] sm:$0xff] }
 0x3cb   :  { %3421 = vmatpush.msra.mxu1 %v2817_v30  ;;  %v2698_v52 = vpop.f32.mrf.mxu3 }
 0x3cc   :  { %v5398_v0 = vadd.f32 %v2698_v52, %v2490_v20  ;;  %2121 = vmatmul.f32.gmra.mxu0 %v499_v59  ;;  %v533_v20 = vld [vmem:[#allocation4 + $0xdb0] sm:$0xff] }
 0x3cd   :  { %3422 = vmatpush.msra.mxu1 %v2816_v13  ;;  %v2283_v53 = vpop.f32.mrf.mxu1  ;;  %2539 = vmatmul.f32.gmra.mxu2 %v501_v46  ;;  %v531_v13 = vld [vmem:[#allocation4 + $0xda0] sm:$0xff] }
 0x3ce   :  { %v2284_v23 = vadd.f32 %v2283_v53, %v2075_v56  ;;  %v534_v53 = vld [vmem:[#allocation4 + $0xdb8] sm:$0xff] }
 0x3cf   :  { %3423 = vmatpush.msra.mxu1 %v2815_v12  ;;  %v532_v12 = vld [vmem:[#allocation4 + $0xda8] sm:$0xff] }
 0x3d0   :  { %2330 = vmatmul.f32.gmra.mxu1 %v500_v57  ;;  %2748 = vmatmul.f32.gmra.mxu3 %v502_v3 }
 0x3d1   :  { %3424 = vmatpush.msra.mxu1 %v2814_v33  ;;  %v2492_v10 = vpop.f32.mrf.mxu2  ;;  %v2077_v25 = vpop.f32.mrf.mxu0 }
 0x3d2   :  { %v2493_v16 = vadd.f32 %v2492_v10, %v2284_v23  ;;  %v2078_v40 = vadd.f32 %v2077_v25, %v6059_v32  ;;  %v541_v23 = vld [vmem:[#allocation4 + $0xdf0] sm:$0xff]  ;;  %v539_v10 = vld [vmem:[#allocation4 + $0xde0] sm:$0xff]  ;;  %v540_v32 = vld [vmem:[#allocation4 + $0xde8] sm:$0xff] }
 0x3d3   :  { %3425 = vmatpush.msra.mxu1 %v2813_v55  ;;  %v2701_v9 = vpop.f32.mrf.mxu3 }
 0x3d4   :  { %v5405_v31 = vadd.f32 %v2701_v9, %v2493_v16  ;;  %2124 = vmatmul.f32.gmra.mxu0 %v507_v14  ;;  %v6063_v16 = vld [vmem:[#allocation49_spill] sm:$0xff] }
 0x3d5   :  { %3426 = vmatpush.msra.mxu1 %v2812_v50  ;;  %v2286_v29 = vpop.f32.mrf.mxu1  ;;  %2542 = vmatmul.f32.gmra.mxu2 %v509_v58 }
 0x3d6   :  { %v2287_v8 = vadd.f32 %v2286_v29, %v2078_v40  ;;  %v542_v40 = vld [vmem:[#allocation4 + $0xdf8] sm:$0xff] }
 0x3d7   :  { %3427 = vmatpush.msra.mxu1 %v2811_v41 }
 0x3d8   :  { %2333 = vmatmul.f32.gmra.mxu1 %v508_v62  ;;  %2751 = vmatmul.f32.gmra.mxu3 %v510_v37  ;;  %v549_v62 = vld [vmem:[#allocation4 + $0xe30] sm:$0xff] }
 0x3d9   :  { %3428 = vmatpush.msra.mxu1 %v2810_v22  ;;  %v2495_v34 = vpop.f32.mrf.mxu2  ;;  %v2080_v39 = vpop.f32.mrf.mxu0  ;;  %v547_v22 = vld [vmem:[#allocation4 + $0xe20] sm:$0xff] }
 0x3da   :  { %v2496_v7 = vadd.f32 %v2495_v34, %v2287_v8  ;;  %v2081_v6 = vadd.f32 %v2080_v39, %v6060_v35  ;;  %v6064_v8 = vld [vmem:[#allocation50_spill] sm:$0xff] }
 0x3db   :  { %3429 = vmatpush.msra.mxu1 %v2809_v27  ;;  %v2704_v24 = vpop.f32.mrf.mxu3 }
 0x3dc   :  { %v5412_v36 = vadd.f32 %v2704_v24, %v2496_v7  ;;  %2127 = vmatmul.f32.gmra.mxu0 %v515_v63  ;;  %v550_v63 = vld [vmem:[#allocation4 + $0xe38] sm:$0xff] }
 0x3dd   :  { %3430 = vmatpush.msra.mxu1 %v2808_v11  ;;  %v2289_v48 = vpop.f32.mrf.mxu1  ;;  %2545 = vmatmul.f32.gmra.mxu2 %v517_v44  ;;  %v548_v11 = vld [vmem:[#allocation4 + $0xe28] sm:$0xff] }
 0x3de   :  { %v2290_v54 = vadd.f32 %v2289_v48, %v2081_v6  ;;  %v557_v6 = vld [vmem:[#allocation4 + $0xe70] sm:$0xff] }
 0x3df   :  { %3431 = vmatpush.msra.mxu1 %v2807_v19  ;;  %v555_v19 = vld [vmem:[#allocation4 + $0xe60] sm:$0xff] }
 0x3e0   :  { %2336 = vmatmul.f32.gmra.mxu1 %v516_v45  ;;  %2754 = vmatmul.f32.gmra.mxu3 %v518_v1  ;;  %v556_v1 = vld [vmem:[#allocation4 + $0xe68] sm:$0xff] }
 0x3e1   :  { %v2498_v17 = vpop.f32.mrf.mxu2  ;;  %v2083_v49 = vpop.f32.mrf.mxu0 }
 0x3e2   :  { %v2499_v38 = vadd.f32 %v2498_v17, %v2290_v54  ;;  %v2084_v18 = vadd.f32 %v2083_v49, %v6061_v5  ;;  %v558_v54 = vld [vmem:[#allocation4 + $0xe78] sm:$0xff]  ;;  %v563_v49 = vld [vmem:[#allocation4 + $0xea0] sm:$0xff] }
 0x3e3   :  { %v2707_v26 = vpop.f32.mrf.mxu3 }
 0x3e4   :  { %v5415_v2 = vadd.f32 %v2707_v26, %v2499_v38  ;;  %2130 = vmatmul.f32.gmra.mxu0 %v523_v47  ;;  %v565_v38 = vld [vmem:[#allocation4 + $0xeb0] sm:$0xff]  ;;  %v566_v26 = vld [vmem:[#allocation4 + $0xeb8] sm:$0xff] }
 0x3e5   :  { %v2292_v51 = vpop.f32.mrf.mxu1  ;;  %2548 = vmatmul.f32.gmra.mxu2 %v525_v15 }
 0x3e6   :  { %v2293_v21 = vadd.f32 %v2292_v51, %v2084_v18  ;;  %v564_v18 = vld [vmem:[#allocation4 + $0xea8] sm:$0xff] }
 0x3e8   :  { %2339 = vmatmul.f32.gmra.mxu1 %v524_v4  ;;  %2757 = vmatmul.f32.gmra.mxu3 %v526_v61  ;;  %v573_v4 = vld [vmem:[#allocation4 + $0xef0] sm:$0xff] }
 0x3e9   :  { %v2501_v30 = vpop.f32.mrf.mxu2  ;;  %v2086_v46 = vpop.f32.mrf.mxu0 }
 0x3ea   :  { %v2502_v60 = vadd.f32 %v2501_v30, %v2293_v21  ;;  %v2087_v59 = vadd.f32 %v2086_v46, %v6062_v42  ;;  %v571_v21 = vld [vmem:[#allocation4 + $0xee0] sm:$0xff]  ;;  %v574_v46 = vld [vmem:[#allocation4 + $0xef8] sm:$0xff]  ;;  %v581_v42 = vld [vmem:[#allocation4 + $0xf30] sm:$0xff] }
 0x3eb   :  { %v2710_v43 = vpop.f32.mrf.mxu3 }
 0x3ec   :  { %v5418_v56 = vadd.f32 %v2710_v43, %v2502_v60  ;;  %2133 = vmatmul.f32.gmra.mxu0 %v531_v13  ;;  %v579_v43 = vld [vmem:[#allocation4 + $0xf20] sm:$0xff] }
 0x3ed   :  { %v2295_v52 = vpop.f32.mrf.mxu1  ;;  %2551 = vmatmul.f32.gmra.mxu2 %v533_v20  ;;  %v572_v20 = vld [vmem:[#allocation4 + $0xee8] sm:$0xff] }
 0x3ee   :  { %v2296_v57 = vadd.f32 %v2295_v52, %v2087_v59 }
 0x3f0   :  { %2342 = vmatmul.f32.gmra.mxu1 %v532_v12  ;;  %2760 = vmatmul.f32.gmra.mxu3 %v534_v53  ;;  %v580_v53 = vld [vmem:[#allocation4 + $0xf28] sm:$0xff] }
 0x3f1   :  { %v2504_v3 = vpop.f32.mrf.mxu2  ;;  %v2089_v55 = vpop.f32.mrf.mxu0 }
 0x3f2   :  { %v2505_v33 = vadd.f32 %v2504_v3, %v2296_v57  ;;  %v2090_v58 = vadd.f32 %v2089_v55, %v6063_v16  ;;  %v582_v57 = vld [vmem:[#allocation4 + $0xf38] sm:$0xff]  ;;  %v587_v55 = vld [vmem:[#allocation4 + $0xf60] sm:$0xff] }
 0x3f3   :  { %v2713_v50 = vpop.f32.mrf.mxu3 }
 0x3f4   :  { %v5421_v25 = vadd.f32 %v2713_v50, %v2505_v33  ;;  %2136 = vmatmul.f32.gmra.mxu0 %v539_v10  ;;  %v589_v33 = vld [vmem:[#allocation4 + $0xf70] sm:$0xff]  ;;  %v590_v50 = vld [vmem:[#allocation4 + $0xf78] sm:$0xff] }
 0x3f5   :  { %v2298_v14 = vpop.f32.mrf.mxu1  ;;  %2554 = vmatmul.f32.gmra.mxu2 %v541_v23 }
 0x3f6   :  { %v2299_v9 = vadd.f32 %v2298_v14, %v2090_v58  ;;  %v588_v58 = vld [vmem:[#allocation4 + $0xf68] sm:$0xff] }
 0x3f8   :  { %2345 = vmatmul.f32.gmra.mxu1 %v540_v32  ;;  %2763 = vmatmul.f32.gmra.mxu3 %v542_v40  ;;  %v597_v32 = vld [vmem:[#allocation4 + $0xfb0] sm:$0xff] }
 0x3f9   :  { %v2507_v41 = vpop.f32.mrf.mxu2  ;;  %v2092_v37 = vpop.f32.mrf.mxu0 }
 0x3fa   :  { %v2508_v29 = vadd.f32 %v2507_v41, %v2299_v9  ;;  %v2093_v27 = vadd.f32 %v2092_v37, %v6064_v8  ;;  %v595_v9 = vld [vmem:[#allocation4 + $0xfa0] sm:$0xff]  ;;  %v598_v37 = vld [vmem:[#allocation4 + $0xfb8] sm:$0xff]  ;;  %v605_v8 = vld [vmem:[#allocation4 + $0xff0] sm:$0xff] }
 0x3fb   :  { %v2716_v34 = vpop.f32.mrf.mxu3 }
 0x3fc   :  { %v5424_v7 = vadd.f32 %v2716_v34, %v2508_v29  ;;  %2139 = vmatmul.f32.gmra.mxu0 %v547_v22 }
 0x3fd   :  { %v2301_v44 = vpop.f32.mrf.mxu1  ;;  %2557 = vmatmul.f32.gmra.mxu2 %v549_v62  ;;  %v596_v62 = vld [vmem:[#allocation4 + $0xfa8] sm:$0xff] }
 0x3fe   :  { %v5426_v39 = vadd.f32 %v2301_v44, %v2093_v27  ;;  %v6065_v27 = vld [vmem:[#allocation56_spill] sm:$0xff] }
 0x400   :  { %2348 = vmatmul.f32.gmra.mxu1 %v548_v11  ;;  %2766 = vmatmul.f32.gmra.mxu3 %v550_v63  ;;  %v603_v11 = vld [vmem:[#allocation4 + $0xfe0] sm:$0xff]  ;;  %v6066_v63 = vld [vmem:[#allocation57_spill] sm:$0xff] }
 0x401   :  { %v5428_v35 = vpop.f32.mrf.mxu2  ;;  %v5430_v24 = vpop.f32.mrf.mxu0 }
 0x403   :  { %v5432_v48 = vpop.f32.mrf.mxu3 }
 0x404   :  { %2142 = vmatmul.f32.gmra.mxu0 %v555_v19 }
 0x405   :  { %v5434_v45 = vpop.f32.mrf.mxu1  ;;  %2560 = vmatmul.f32.gmra.mxu2 %v557_v6 }
 0x408   :  { %2351 = vmatmul.f32.gmra.mxu1 %v556_v1  ;;  %2769 = vmatmul.f32.gmra.mxu3 %v558_v54  ;;  %v6067_v1 = vld [vmem:[#allocation55_spill] sm:$0xff] }
 0x409   :  { %v5436_v17 = vpop.f32.mrf.mxu2  ;;  %v5438_v15 = vpop.f32.mrf.mxu0 }
 0x40b   :  { %v5440_v47 = vpop.f32.mrf.mxu3 }
 0x40c   :  { %2145 = vmatmul.f32.gmra.mxu0 %v563_v49  ;;  %v604_v49 = vld [vmem:[#allocation4 + $0xfe8] sm:$0xff] }
 0x40d   :  { %v5442_v5 = vpop.f32.mrf.mxu1  ;;  %2563 = vmatmul.f32.gmra.mxu2 %v565_v38 }
 0x410   :  { %2354 = vmatmul.f32.gmra.mxu1 %v564_v18  ;;  %2772 = vmatmul.f32.gmra.mxu3 %v566_v26  ;;  %v606_v18 = vld [vmem:[#allocation4 + $0xff8] sm:$0xff]  ;;  %v6068_v26 = vld [vmem:[#allocation54_spill] sm:$0xff] }
 0x411   :  { %v5444_v51 = vpop.f32.mrf.mxu2  ;;  %v5446_v61 = vpop.f32.mrf.mxu0 }
 0x413   :  { %v5448_v30 = vpop.f32.mrf.mxu3 }
 0x414   :  { %2148 = vmatmul.f32.gmra.mxu0 %v571_v21 }
 0x415   :  { %v5450_v60 = vpop.f32.mrf.mxu1  ;;  %2566 = vmatmul.f32.gmra.mxu2 %v573_v4 }
 0x418   :  { %2357 = vmatmul.f32.gmra.mxu1 %v572_v20  ;;  %2775 = vmatmul.f32.gmra.mxu3 %v574_v46  ;;  %v6069_v46 = vld [vmem:[#allocation53_spill] sm:$0xff] }
 0x419   :  { %v5452_v13 = vpop.f32.mrf.mxu2  ;;  %v2104_v59 = vpop.f32.mrf.mxu0 }
 0x41a   :  { %v2105_v4 = vadd.f32 %v2104_v59, %v6068_v26  ;;  %v6072_v59 = vld [vmem:[#allocation51_spill] sm:$0xff] }
 0x41b   :  { %v5454_v52 = vpop.f32.mrf.mxu3 }
 0x41c   :  { %2151 = vmatmul.f32.gmra.mxu0 %v579_v43 }
 0x41d   :  { %v2313_v12 = vpop.f32.mrf.mxu1  ;;  %2569 = vmatmul.f32.gmra.mxu2 %v581_v42  ;;  %v2102_v42 = vadd.f32 %v5446_v61, %v6069_v46  ;;  %v2828_v46 = vmax.f32 %v5418_v56, 0.0 }
 0x420   :  { %2360 = vmatmul.f32.gmra.mxu1 %v580_v53  ;;  %2778 = vmatmul.f32.gmra.mxu3 %v582_v57 }
 0x421   :  { %v2522_v3 = vpop.f32.mrf.mxu2  ;;  %v2107_v23 = vpop.f32.mrf.mxu0 }
 0x422   :  { %v2108_v54 = vadd.f32 %v2107_v23, %v6067_v1  ;;  %v2924_v1 = vld [vmem:[#allocation6 + $0x28] sm:$0xff] }
 0x423   :  { %v5456_v10 = vpop.f32.mrf.mxu3 }
 0x424   :  { %2154 = vmatmul.f32.gmra.mxu0 %v587_v55  ;;  %v6070_v55 = vld [vmem:[#allocation52_spill] sm:$0xff] }
 0x425   :  { %v2316_v16 = vpop.f32.mrf.mxu1  ;;  %2572 = vmatmul.f32.gmra.mxu2 %v589_v33  ;;  %v2099_v23 = vadd.f32 %v5438_v15, %v6070_v55  ;;  %v2825_v55 = vmax.f32 %v5405_v31, 0.0 }
 0x426   :  { %v2317_v43 = vadd.f32 %v2316_v16, %v2108_v54 }
 0x427   :  { %v2308_v15 = vadd.f32 %v5442_v5, %v2099_v23  ;;  %v2824_v23 = vmax.f32 %v5398_v0, 0.0 }
 0x428   :  { %2363 = vmatmul.f32.gmra.mxu1 %v588_v58  ;;  %2781 = vmatmul.f32.gmra.mxu3 %v590_v50  ;;  %v2314_v58 = vadd.f32 %v2313_v12, %v2105_v4 }
 0x429   :  { %v2525_v14 = vpop.f32.mrf.mxu2  ;;  %v2110_v40 = vpop.f32.mrf.mxu0 }
 0x42a   :  { %v2111_v34 = vadd.f32 %v2110_v40, %v6065_v27  ;;  %v2526_v50 = vadd.f32 %v2525_v14, %v2317_v43  ;;  %v2919_v40 = vld [vmem:[#allocation6] sm:$0xff]  ;;  %v2523_v61 = vadd.f32 %v2522_v3, %v2314_v58 }
 0x42b   :  { %v2734_v41 = vpop.f32.mrf.mxu3  ;;  %v2931_v43 = vld [vmem:[#allocation6 + $0x60] sm:$0xff] }
 0x42c   :  { %2157 = vmatmul.f32.gmra.mxu0 %v595_v9  ;;  %v2096_v9 = vadd.f32 %v5430_v24, %v6072_v59  ;;  %v2735_v14 = vadd.f32 %v2734_v41, %v2526_v50  ;;  %v2517_v24 = vadd.f32 %v5444_v51, %v2308_v15  ;;  %v2923_v41 = vld [vmem:[#allocation6 + $0x20] sm:$0xff] }
 0x42d   :  { %v2319_v29 = vpop.f32.mrf.mxu1  ;;  %2575 = vmatmul.f32.gmra.mxu2 %v597_v32  ;;  %v2943_v15 = vld [vmem:[#allocation6 + $0xc0] sm:$0xff] }
 0x42e   :  { %v2320_v21 = vadd.f32 %v2319_v29, %v2111_v34  ;;  %v2305_v34 = vadd.f32 %v5434_v45, %v2096_v9  ;;  %v2836_v5 = vmax.f32 %v2735_v14, 0.0  ;;  %v2511_v45 = vadd.f32 %v5428_v35, %v5426_v39  ;;  %v2936_v9 = vld [vmem:[#allocation6 + $0x88] sm:$0xff] }
 0x42f   :  { %v2726_v51 = vadd.f32 %v5448_v30, %v2517_v24  ;;  %v2927_v30 = vld [vmem:[#allocation6 + $0x40] sm:$0xff] }
 0x430   :  { %2366 = vmatmul.f32.gmra.mxu1 %v596_v62  ;;  %2784 = vmatmul.f32.gmra.mxu3 %v598_v37  ;;  %v2311_v62 = vadd.f32 %v5450_v60, %v2102_v42  ;;  %v2732_v60 = vadd.f32 %v5456_v10, %v2523_v61  ;;  %v2720_v54 = vadd.f32 %v5432_v48, %v2511_v45  ;;  %v2829_v48 = vmax.f32 %v5421_v25, 0.0 }
 0x431   :  { %v2528_v22 = vpop.f32.mrf.mxu2  ;;  %v2113_v44 = vpop.f32.mrf.mxu0  ;;  %v2826_v25 = vmax.f32 %v5412_v36, 0.0  ;;  %v2921_v36 = vld [vmem:[#allocation6 + $0x10] sm:$0xff] }
 0x432   :  { %v2114_v6 = vadd.f32 %v2113_v44, %v6066_v63  ;;  %v2529_v53 = vadd.f32 %v2528_v22, %v2320_v21  ;;  %v2520_v12 = vadd.f32 %v5452_v13, %v2311_v62  ;;  %v2835_v10 = vmax.f32 %v2732_v60, 0.0 }
 0x433   :  { %v2737_v19 = vpop.f32.mrf.mxu3  ;;  %v2831_v26 = vmax.f32 %v2720_v54, 0.0  ;;  %v2830_v21 = vmax.f32 %v5424_v7, 0.0  ;;  %v2932_v7 = vld [vmem:[#allocation6 + $0x68] sm:$0xff] }
 0x434   :  { %2160 = vmatmul.f32.gmra.mxu0 %v603_v11  ;;  %v2738_v16 = vadd.f32 %v2737_v19, %v2529_v53  ;;  %v2514_v11 = vadd.f32 %v5436_v17, %v2305_v34  ;;  %v2729_v63 = vadd.f32 %v5454_v52, %v2520_v12  ;;  %v2944_v34 = vld [vmem:[#allocation6 + $0xc8] sm:$0xff] }
 0x435   :  { %v2322_v38 = vpop.f32.mrf.mxu1  ;;  %2578 = vmatmul.f32.gmra.mxu2 %v605_v8  ;;  %v2920_v8 = vld [vmem:[#allocation6 + $0x8] sm:$0xff] }
 0x436   :  { %v2323_v20 = vadd.f32 %v2322_v38, %v2114_v6  ;;  %v2837_v3 = vmax.f32 %v2738_v16, 0.0  ;;  %v2723_v17 = vadd.f32 %v5440_v47, %v2514_v11  ;;  %v2834_v52 = vmax.f32 %v2729_v63, 0.0  ;;  %v2928_v47 = vld [vmem:[#allocation6 + $0x48] sm:$0xff]  ;;  %v2925_v16 = vld [vmem:[#allocation6 + $0x30] sm:$0xff] }
 0x437   :  { %v2833_v38 = vmax.f32 %v2726_v51, 0.0 }
 0x438   :  { %2369 = vmatmul.f32.gmra.mxu1 %v604_v49  ;;  %2787 = vmatmul.f32.gmra.mxu3 %v606_v18  ;;  %v2832_v39 = vmax.f32 %v2723_v17, 0.0 }
 0x439   :  { %v2531_v57 = vpop.f32.mrf.mxu2  ;;  %v5466_v32 = vpop.f32.mrf.mxu0 }
 0x43a   :  { %v2532_v33 = vadd.f32 %v2531_v57, %v2323_v20  ;;  %6071 = vst [vmem:[#allocation15_spill] sm:$0xff] %v5466_v32  ;;  %v2827_v57 = vmax.f32 %v5415_v2, 0.0  ;;  %v2935_v2 = vld [vmem:[#allocation6 + $0x80] sm:$0xff] }
 0x43b   :  { %v2740_v29 = vpop.f32.mrf.mxu3 }
 0x43c   :  { %v2741_v37 = vadd.f32 %v2740_v29, %v2532_v33  ;;  %3319 = vmatmul.f32.vlgmr.msra.gmra.mxu0 %v2919_v40  ;;  %v2823_v40 = vmax.f32 %v5393_v28, 0.0  ;;  %v2939_v29 = vld [vmem:[#allocation6 + $0xa0] sm:$0xff]  ;;  %v2940_v28 = vld [vmem:[#allocation6 + $0xa8] sm:$0xff] }
 0x43d   :  { %v5471_v22 = vpop.f32.mrf.mxu1 }
 0x43e   :  { %6073 = vst [vmem:[#allocation22_spill] sm:$0xff] %v5471_v22  ;;  %v2838_v27 = vmax.f32 %v2741_v37, 0.0 }
 0x440   :  { %3432 = vmatmul.f32.vlgmr.msra.gmra.mxu1 %v2920_v8  ;;  %3529 = vmatpush.msra.mxu2 %v2838_v27  ;;  %v2929_v27 = vld [vmem:[#allocation6 + $0x50] sm:$0xff] }
 0x441   :  { %v5478_v44 = vpop.f32.mrf.mxu2  ;;  %v5482_v13 = vpop.f32.mrf.mxu0 }
 0x442   :  { %6074 = vst [vmem:[#allocation23_spill] sm:$0xff] %v5478_v44  ;;  %3530 = vmatpush.msra.mxu2 %v2837_v3  ;;  %v2947_v3 = vld [vmem:[#allocation6 + $0xe0] sm:$0xff] }
 0x443   :  { %v5484_v6 = vpop.f32.mrf.mxu3  ;;  %v2979_v44 = vld [vmem:[#allocation6 + $0x1e0] sm:$0xff] }
 0x444   :  { %6075 = vst [vmem:[#allocation24_spill] sm:$0xff] %v5484_v6  ;;  %3531 = vmatpush.msra.mxu2 %v2836_v5  ;;  %3322 = vmatmul.f32.gmra.mxu0 %v2923_v41  ;;  %v2933_v5 = vld [vmem:[#allocation6 + $0x70] sm:$0xff]  ;;  %v2948_v41 = vld [vmem:[#allocation6 + $0xe8] sm:$0xff] }
 0x445   :  { %v5489_v19 = vpop.f32.mrf.mxu1  ;;  %v2961_v6 = vld [vmem:[#allocation6 + $0x150] sm:$0xff] }
 0x446   :  { %6076 = vst [vmem:[#allocation25_spill] sm:$0xff] %v5489_v19  ;;  %3532 = vmatpush.msra.mxu2 %v2835_v10  ;;  %v2951_v10 = vld [vmem:[#allocation6 + $0x100] sm:$0xff]  ;;  %v6092_v19 = vld [vmem:[#allocation14_spill] sm:$0xff] }
 0x448   :  { %3435 = vmatmul.f32.gmra.mxu1 %v2924_v1  ;;  %3533 = vmatpush.msra.mxu2 %v2834_v52  ;;  %v6088_v1 = vld [vmem:[#allocation28_spill] sm:$0xff] }
 0x449   :  { %v5493_v49 = vpop.f32.mrf.mxu2  ;;  %v5495_v35 = vpop.f32.mrf.mxu0 }
 0x44a   :  { %6077 = vst [vmem:[#allocation26_spill] sm:$0xff] %v5493_v49  ;;  %3534 = vmatpush.msra.mxu2 %v2833_v38  ;;  %v2937_v38 = vld [vmem:[#allocation6 + $0x90] sm:$0xff] }
 0x44b   :  { %v5497_v18 = vpop.f32.mrf.mxu3 }
 0x44c   :  { %6078 = vst [vmem:[#allocation27_spill] sm:$0xff] %v5497_v18  ;;  %3535 = vmatpush.msra.mxu2 %v2832_v39  ;;  %3325 = vmatmul.f32.gmra.mxu0 %v2927_v30  ;;  %v2952_v39 = vld [vmem:[#allocation6 + $0x108] sm:$0xff] }
 0x44d   :  { %v5499_v4 = vpop.f32.mrf.mxu1  ;;  %v2976_v18 = vld [vmem:[#allocation6 + $0x1c8] sm:$0xff] }
 0x44e   :  { %6079 = vst [vmem:[#allocation29_spill] sm:$0xff] %v5499_v4  ;;  %3536 = vmatpush.msra.mxu2 %v2831_v26 }
 0x450   :  { %3438 = vmatmul.f32.gmra.mxu1 %v2928_v47  ;;  %3537 = vmatpush.msra.mxu2 %v2830_v21  ;;  %v2955_v21 = vld [vmem:[#allocation6 + $0x120] sm:$0xff] }
 0x451   :  { %v5503_v20 = vpop.f32.mrf.mxu2  ;;  %v5506_v42 = vpop.f32.mrf.mxu0 }
 0x452   :  { %6080 = vst [vmem:[#allocation30_spill] sm:$0xff] %v5503_v20  ;;  %3538 = vmatpush.msra.mxu2 %v2829_v48  ;;  %v2980_v20 = vld [vmem:[#allocation6 + $0x1e8] sm:$0xff] }
 0x453   :  { %v5508_v53 = vpop.f32.mrf.mxu3 }
 0x454   :  { %6081 = vst [vmem:[#allocation36_spill] sm:$0xff] %v5508_v53  ;;  %3539 = vmatpush.msra.mxu2 %v2828_v46  ;;  %3328 = vmatmul.f32.gmra.mxu0 %v2931_v43  ;;  %v2941_v43 = vld [vmem:[#allocation6 + $0xb0] sm:$0xff] }
 0x455   :  { %v5511_v33 = vpop.f32.mrf.mxu1 }
 0x456   :  { %3540 = vmatpush.msra.mxu2 %v2827_v57  ;;  %v2956_v57 = vld [vmem:[#allocation6 + $0x128] sm:$0xff] }
 0x458   :  { %3441 = vmatmul.f32.gmra.mxu1 %v2932_v7  ;;  %3541 = vmatpush.msra.mxu2 %v2826_v25 }
 0x459   :  { %v5515_v56 = vpop.f32.mrf.mxu2  ;;  %v5518_v58 = vpop.f32.mrf.mxu0 }
 0x45a   :  { %6082 = vst [vmem:[#allocation35_spill] sm:$0xff] %v5515_v56  ;;  %3542 = vmatpush.msra.mxu2 %v2825_v55  ;;  %v2959_v55 = vld [vmem:[#allocation6 + $0x140] sm:$0xff] }
 0x45b   :  { %v5520_v50 = vpop.f32.mrf.mxu3 }
 0x45c   :  { %6083 = vst [vmem:[#allocation34_spill] sm:$0xff] %v5520_v50  ;;  %3543 = vmatpush.msra.mxu2 %v2824_v23  ;;  %3331 = vmatmul.f32.gmra.mxu0 %v2935_v2  ;;  %v6090_v50 = vld [vmem:[#allocation20_spill] sm:$0xff] }
 0x45d   :  { %v5523_v59 = vpop.f32.mrf.mxu1 }
 0x45e   :  { %3544 = vmatpush.msra.mxu2 %v2823_v40  ;;  %v2945_v40 = vld [vmem:[#allocation6 + $0xd0] sm:$0xff] }
 0x45f   :  { %3545 = vmatmul.f32.vlgmr.msra.gmra.mxu2 %v2921_v36  ;;  %v2960_v36 = vld [vmem:[#allocation6 + $0x148] sm:$0xff] }
 0x460   :  { %3444 = vmatmul.f32.gmra.mxu1 %v2936_v9 }
 0x461   :  { %v5525_v31 = vpop.f32.mrf.mxu2  ;;  %v5527_v0 = vpop.f32.mrf.mxu0 }
 0x462   :  { %6084 = vst [vmem:[#allocation33_spill] sm:$0xff] %v5525_v31  ;;  %v6095_v31 = vld [vmem:[#allocation17_spill] sm:$0xff] }
 0x463   :  { %v5529_v62 = vpop.f32.mrf.mxu3 }
 0x464   :  { %6085 = vst [vmem:[#allocation32_spill] sm:$0xff] %v5529_v62  ;;  %3334 = vmatmul.f32.gmra.mxu0 %v2939_v29  ;;  %v2965_v62 = vld [vmem:[#allocation6 + $0x170] sm:$0xff] }
 0x465   :  { %v5531_v61 = vpop.f32.mrf.mxu1 }
 0x467   :  { %3548 = vmatmul.f32.gmra.mxu2 %v2925_v16  ;;  %v2963_v16 = vld [vmem:[#allocation6 + $0x160] sm:$0xff] }
 0x468   :  { %3447 = vmatmul.f32.gmra.mxu1 %v2940_v28 }
 0x469   :  { %v5533_v37 = vpop.f32.mrf.mxu2  ;;  %v5535_v8 = vpop.f32.mrf.mxu0 }
 0x46b   :  { %v5537_v12 = vpop.f32.mrf.mxu3 }
 0x46c   :  { %6086 = vst [vmem:[#allocation31_spill] sm:$0xff] %v5537_v12  ;;  %3337 = vmatmul.f32.gmra.mxu0 %v2943_v15 }
 0x46d   :  { %v5539_v14 = vpop.f32.mrf.mxu1 }
 0x46f   :  { %3551 = vmatmul.f32.gmra.mxu2 %v2929_v27  ;;  %v2949_v27 = vld [vmem:[#allocation6 + $0xf0] sm:$0xff] }
 0x470   :  { %3450 = vmatmul.f32.gmra.mxu1 %v2944_v34  ;;  %v2964_v34 = vld [vmem:[#allocation6 + $0x168] sm:$0xff] }
 0x471   :  { %v5541_v24 = vpop.f32.mrf.mxu2  ;;  %v5543_v60 = vpop.f32.mrf.mxu0 }
 0x473   :  { %v5545_v11 = vpop.f32.mrf.mxu3 }
 0x474   :  { %6087 = vst [vmem:[#allocation41_spill] sm:$0xff] %v5545_v11  ;;  %3340 = vmatmul.f32.gmra.mxu0 %v2947_v3 }
 0x475   :  { %v5547_v63 = vpop.f32.mrf.mxu1 }
 0x477   :  { %3554 = vmatmul.f32.gmra.mxu2 %v2933_v5 }
 0x478   :  { %3453 = vmatmul.f32.gmra.mxu1 %v2948_v41  ;;  %v2967_v41 = vld [vmem:[#allocation6 + $0x180] sm:$0xff] }
 0x479   :  { %v5549_v45 = vpop.f32.mrf.mxu2  ;;  %v2140_v51 = vpop.f32.mrf.mxu0 }
 0x47a   :  { %v2141_v17 = vadd.f32 %v2140_v51, %v6088_v1  ;;  %v2953_v1 = vld [vmem:[#allocation6 + $0x110] sm:$0xff] }
 0x47b   :  { %v5552_v52 = vpop.f32.mrf.mxu3 }
 0x47c   :  { %3343 = vmatmul.f32.gmra.mxu0 %v2951_v10 }
 0x47d   :  { %v2349_v54 = vpop.f32.mrf.mxu1 }
 0x47e   :  { %v5554_v30 = vadd.f32 %v2349_v54, %v2141_v17  ;;  %v2968_v17 = vld [vmem:[#allocation6 + $0x188] sm:$0xff] }
 0x47f   :  { %3557 = vmatmul.f32.gmra.mxu2 %v2937_v38 }
 0x480   :  { %3456 = vmatmul.f32.gmra.mxu1 %v2952_v39  ;;  %v2971_v39 = vld [vmem:[#allocation6 + $0x1a0] sm:$0xff] }
 0x481   :  { %v5556_v26 = vpop.f32.mrf.mxu2  ;;  %v5558_v47 = vpop.f32.mrf.mxu0 }
 0x483   :  { %v5560_v48 = vpop.f32.mrf.mxu3 }
 0x484   :  { %3346 = vmatmul.f32.gmra.mxu0 %v2955_v21 }
 0x485   :  { %v5562_v46 = vpop.f32.mrf.mxu1 }
 0x487   :  { %3560 = vmatmul.f32.gmra.mxu2 %v2941_v43 }
 0x488   :  { %3459 = vmatmul.f32.gmra.mxu1 %v2956_v57  ;;  %v2957_v57 = vld [vmem:[#allocation6 + $0x130] sm:$0xff] }
 0x489   :  { %v5564_v7 = vpop.f32.mrf.mxu2  ;;  %v5566_v25 = vpop.f32.mrf.mxu0 }
 0x48b   :  { %v5568_v23 = vpop.f32.mrf.mxu3 }
 0x48c   :  { %3349 = vmatmul.f32.gmra.mxu0 %v2959_v55  ;;  %v2972_v55 = vld [vmem:[#allocation6 + $0x1a8] sm:$0xff] }
 0x48d   :  { %v5570_v2 = vpop.f32.mrf.mxu1 }
 0x48f   :  { %3563 = vmatmul.f32.gmra.mxu2 %v2945_v40 }
 0x490   :  { %3462 = vmatmul.f32.gmra.mxu1 %v2960_v36 }
 0x491   :  { %v5572_v9 = vpop.f32.mrf.mxu2  ;;  %v2149_v29 = vpop.f32.mrf.mxu0 }
 0x493   :  { %v5574_v28 = vpop.f32.mrf.mxu3 }
 0x494   :  { %3352 = vmatmul.f32.gmra.mxu0 %v2963_v16  ;;  %v2975_v16 = vld [vmem:[#allocation6 + $0x1c0] sm:$0xff] }
 0x495   :  { %v5576_v15 = vpop.f32.mrf.mxu1 }
 0x497   :  { %3566 = vmatmul.f32.gmra.mxu2 %v2949_v27 }
 0x498   :  { %3465 = vmatmul.f32.gmra.mxu1 %v2964_v34 }
 0x499   :  { %v5578_v3 = vpop.f32.mrf.mxu2  ;;  %v2152_v5 = vpop.f32.mrf.mxu0 }
 0x49a   :  { %v2153_v12 = vadd.f32 %v2152_v5, %v6092_v19  ;;  %v2144_v19 = vadd.f32 %v5558_v47, %v6095_v31  ;;  %v2984_v5 = vld [vmem:[#allocation6 + $0x208] sm:$0xff] }
 0x49b   :  { %v5580_v51 = vpop.f32.mrf.mxu3 }
 0x49c   :  { %3355 = vmatmul.f32.gmra.mxu0 %v2967_v41  ;;  %v2353_v47 = vadd.f32 %v5562_v46, %v2144_v19  ;;  %v6102_v19 = vld [vmem:[#allocation59_spill] sm:$0xff] }
 0x49d   :  { %v2361_v10 = vpop.f32.mrf.mxu1 }
 0x49f   :  { %3569 = vmatmul.f32.gmra.mxu2 %v2953_v1  ;;  %v6089_v1 = vld [vmem:[#allocation19_spill] sm:$0xff] }
 0x4a0   :  { %3468 = vmatmul.f32.gmra.mxu1 %v2968_v17 }
 0x4a1   :  { %v2570_v54 = vpop.f32.mrf.mxu2  ;;  %v2155_v38 = vpop.f32.mrf.mxu0 }
 0x4a3   :  { %v2779_v21 = vpop.f32.mrf.mxu3 }
 0x4a4   :  { %3358 = vmatmul.f32.gmra.mxu0 %v2971_v39 }
 0x4a5   :  { %v2364_v43 = vpop.f32.mrf.mxu1 }
 0x4a7   :  { %3572 = vmatmul.f32.gmra.mxu2 %v2957_v57  ;;  %v6091_v57 = vld [vmem:[#allocation16_spill] sm:$0xff] }
 0x4a8   :  { %3471 = vmatmul.f32.gmra.mxu1 %v2972_v55  ;;  %v2156_v55 = vadd.f32 %v2155_v38, %v6091_v57  ;;  %v2362_v38 = vadd.f32 %v2361_v10, %v2153_v12 }
 0x4a9   :  { %v2573_v40 = vpop.f32.mrf.mxu2  ;;  %v2158_v36 = vpop.f32.mrf.mxu0 }
 0x4aa   :  { %v2159_v17 = vadd.f32 %v2158_v36, %v6089_v1  ;;  %v2365_v36 = vadd.f32 %v2364_v43, %v2156_v55 }
 0x4ab   :  { %v2782_v27 = vpop.f32.mrf.mxu3 }
 0x4ac   :  { %3361 = vmatmul.f32.gmra.mxu0 %v2975_v16  ;;  %v2574_v57 = vadd.f32 %v2573_v40, %v2365_v36  ;;  %v6096_v40 = vld [vmem:[#allocation65_spill] sm:$0xff] }
 0x4ad   :  { %v2367_v34 = vpop.f32.mrf.mxu1  ;;  %v2138_v31 = vadd.f32 %v5543_v60, %v6096_v40  ;;  %v2987_v60 = vld [vmem:[#allocation6 + $0x220] sm:$0xff] }
 0x4ae   :  { %v2368_v56 = vadd.f32 %v2367_v34, %v2159_v17  ;;  %v2783_v10 = vadd.f32 %v2782_v27, %v2574_v57  ;;  %v6097_v34 = vld [vmem:[#allocation64_spill] sm:$0xff] }
 0x4af   :  { %3575 = vmatmul.f32.gmra.mxu2 %v2961_v6  ;;  %v6093_v6 = vld [vmem:[#allocation18_spill] sm:$0xff] }
 0x4b0   :  { %3474 = vmatmul.f32.gmra.mxu1 %v2976_v18  ;;  %v2150_v18 = vadd.f32 %v2149_v29, %v6093_v6  ;;  %v2852_v27 = vmax.f32 %v2783_v10, 0.0  ;;  %v6099_v6 = vld [vmem:[#allocation62_spill] sm:$0xff]  ;;  %v6108_v10 = vld [vmem:[#allocation35_spill] sm:$0xff] }
 0x4b1   :  { %v2576_v41 = vpop.f32.mrf.mxu2  ;;  %v2161_v53 = vpop.f32.mrf.mxu0 }
 0x4b2   :  { %v2162_v49 = vadd.f32 %v2161_v53, %v6090_v50  ;;  %v2577_v1 = vadd.f32 %v2576_v41, %v2368_v56  ;;  %v6094_v53 = vld [vmem:[#allocation21_spill] sm:$0xff]  ;;  %v2135_v41 = vadd.f32 %v5535_v8, %v6097_v34 }
 0x4b3   :  { %v2785_v39 = vpop.f32.mrf.mxu3  ;;  %v2147_v50 = vadd.f32 %v5566_v25, %v6094_v53 }
 0x4b4   :  { %3364 = vmatmul.f32.gmra.mxu0 %v2979_v44  ;;  %v2983_v44 = vld [vmem:[#allocation6 + $0x200] sm:$0xff]  ;;  %v2344_v36 = vadd.f32 %v5539_v14, %v2135_v41 }
 0x4b5   :  { %v2370_v22 = vpop.f32.mrf.mxu1  ;;  %v2356_v12 = vadd.f32 %v5570_v2, %v2147_v50  ;;  %v2562_v2 = vadd.f32 %v5564_v7, %v2353_v47  ;;  %v6101_v14 = vld [vmem:[#allocation60_spill] sm:$0xff] }
 0x4b6   :  { %v2371_v16 = vadd.f32 %v2370_v22, %v2162_v49  ;;  %v2359_v49 = vadd.f32 %v5576_v15, %v2150_v18  ;;  %v2129_v18 = vadd.f32 %v5518_v58, %v6099_v6  ;;  %v2553_v53 = vadd.f32 %v5541_v24, %v2344_v36 }
 0x4b7   :  { %3578 = vmatmul.f32.gmra.mxu2 %v2965_v62  ;;  %v2786_v62 = vadd.f32 %v2785_v39, %v2577_v1  ;;  %v6098_v39 = vld [vmem:[#allocation63_spill] sm:$0xff]  ;;  %v2120_v24 = vadd.f32 %v5482_v13, %v6102_v19  ;;  %v3000_v19 = vld [vmem:[#allocation6 + $0x288] sm:$0xff] }
 0x4b8   :  { %3477 = vmatmul.f32.gmra.mxu1 %v2980_v20  ;;  %v2571_v20 = vadd.f32 %v2570_v54, %v2362_v38  ;;  %v2568_v25 = vadd.f32 %v5578_v3, %v2359_v49  ;;  %v2132_v46 = vadd.f32 %v5527_v0, %v6098_v39  ;;  %v6115_v39 = vld [vmem:[#allocation34_spill] sm:$0xff] }
 0x4b9   :  { %v2579_v4 = vpop.f32.mrf.mxu2  ;;  %v5589_v11 = vpop.f32.mrf.mxu0  ;;  %v2853_v54 = vmax.f32 %v2786_v62, 0.0 }
 0x4ba   :  { %v2580_v32 = vadd.f32 %v2579_v4, %v2371_v16  ;;  %v2969_v4 = vld [vmem:[#allocation6 + $0x190] sm:$0xff]  ;;  %v2780_v15 = vadd.f32 %v2779_v21, %v2571_v20  ;;  %v2777_v3 = vadd.f32 %v5580_v51, %v2568_v25  ;;  %v2559_v21 = vadd.f32 %v5556_v26, %v5554_v30  ;;  %v2988_v16 = vld [vmem:[#allocation6 + $0x228] sm:$0xff] }
 0x4bb   :  { %v2788_v22 = vpop.f32.mrf.mxu3  ;;  %v2973_v51 = vld [vmem:[#allocation6 + $0x1b0] sm:$0xff]  ;;  %v6100_v30 = vld [vmem:[#allocation61_spill] sm:$0xff] }
 0x4bc   :  { %v2789_v29 = vadd.f32 %v2788_v22, %v2580_v32  ;;  %3367 = vmatmul.f32.gmra.mxu0 %v2983_v44  ;;  %v2565_v32 = vadd.f32 %v5572_v9, %v2356_v12  ;;  %v2347_v9 = vadd.f32 %v5547_v63, %v2138_v31  ;;  %v2851_v8 = vmax.f32 %v2780_v15, 0.0  ;;  %v6103_v22 = vld [vmem:[#allocation33_spill] sm:$0xff] }
 0x4bd   :  { %v5594_v56 = vpop.f32.mrf.mxu1  ;;  %v2771_v63 = vadd.f32 %v5568_v23, %v2562_v2  ;;  %v2850_v1 = vmax.f32 %v2777_v3, 0.0  ;;  %v2126_v26 = vadd.f32 %v5506_v42, %v6100_v30  ;;  %v2768_v58 = vadd.f32 %v5560_v48, %v2559_v21  ;;  %v6104_v20 = vld [vmem:[#allocation41_spill] sm:$0xff]  ;;  %v6113_v2 = vld [vmem:[#allocation22_spill] sm:$0xff]  ;;  %v6119_v30 = vld [vmem:[#allocation27_spill] sm:$0xff] }
 0x4be   :  { %v2854_v43 = vmax.f32 %v2789_v29, 0.0  ;;  %v2774_v55 = vadd.f32 %v5574_v28, %v2565_v32  ;;  %v2556_v0 = vadd.f32 %v5549_v45, %v2347_v9  ;;  %v2341_v28 = vadd.f32 %v5531_v61, %v2132_v46  ;;  %v2991_v61 = vld [vmem:[#allocation6 + $0x240] sm:$0xff]  ;;  %v6105_v29 = vld [vmem:[#allocation58_spill] sm:$0xff]  ;;  %v6107_v12 = vld [vmem:[#allocation29_spill] sm:$0xff] }
 0x4bf   :  { %3581 = vmatmul.f32.gmra.mxu2 %v2969_v4  ;;  %v2123_v45 = vadd.f32 %v5495_v35, %v6101_v14  ;;  %v2338_v23 = vadd.f32 %v5523_v59, %v2129_v18  ;;  %v2848_v42 = vmax.f32 %v2771_v63, 0.0  ;;  %v2335_v48 = vadd.f32 %v5511_v33, %v2126_v26  ;;  %v6106_v4 = vld [vmem:[#allocation15_spill] sm:$0xff]  ;;  %v6110_v31 = vld [vmem:[#allocation25_spill] sm:$0xff]  ;;  %v6111_v32 = vld [vmem:[#allocation30_spill] sm:$0xff] }
 0x4c0   :  { %3480 = vmatmul.f32.gmra.mxu1 %v2984_v5  ;;  %3642 = vmatpush.msra.mxu3 %v2854_v43  ;;  %v2849_v50 = vmax.f32 %v2774_v55, 0.0  ;;  %v2550_v38 = vadd.f32 %v5533_v37, %v2341_v28  ;;  %v2765_v57 = vadd.f32 %v5552_v52, %v2556_v0  ;;  %v2762_v35 = vadd.f32 %v6104_v20, %v2553_v53  ;;  %v2977_v37 = vld [vmem:[#allocation6 + $0x1d0] sm:$0xff]  ;;  %v2992_v52 = vld [vmem:[#allocation6 + $0x248] sm:$0xff]  ;;  %v6109_v43 = vld [vmem:[#allocation31_spill] sm:$0xff] }
 0x4c1   :  { %v5606_v17 = vpop.f32.mrf.mxu0  ;;  %v2547_v49 = vadd.f32 %v6103_v22, %v2338_v23  ;;  %v2847_v62 = vmax.f32 %v2768_v58, 0.0  ;;  %v2117_v5 = vadd.f32 %v6106_v4, %v6105_v29  ;;  %v2332_v25 = vadd.f32 %v6107_v12, %v2123_v45  ;;  %v2995_v55 = vld [vmem:[#allocation6 + $0x260] sm:$0xff]  ;;  %v2981_v0 = vld [vmem:[#allocation6 + $0x1f0] sm:$0xff]  ;;  %v2996_v63 = vld [vmem:[#allocation6 + $0x268] sm:$0xff] }
 0x4c2   :  { %3643 = vmatpush.msra.mxu3 %v2853_v54  ;;  %v2544_v13 = vadd.f32 %v6108_v10, %v2335_v48  ;;  %v2759_v33 = vadd.f32 %v6109_v43, %v2550_v38  ;;  %v2846_v40 = vmax.f32 %v2765_v57, 0.0  ;;  %v2329_v47 = vadd.f32 %v6110_v31, %v2120_v24  ;;  %v6112_v54 = vld [vmem:[#allocation32_spill] sm:$0xff]  ;;  %v2993_v10 = vld [vmem:[#allocation6 + $0x250] sm:$0xff]  ;;  %v3008_v43 = vld [vmem:[#allocation6 + $0x2c8] sm:$0xff] }
 0x4c3   :  { %v2541_v15 = vadd.f32 %v6111_v32, %v2332_v25  ;;  %v2756_v34 = vadd.f32 %v6112_v54, %v2547_v49  ;;  %v2845_v41 = vmax.f32 %v2762_v35, 0.0  ;;  %v2326_v3 = vadd.f32 %v6113_v2, %v2117_v5  ;;  %v6120_v53 = vld [vmem:[#allocation24_spill] sm:$0xff]  ;;  %v2989_v35 = vld [vmem:[#allocation6 + $0x230] sm:$0xff]  ;;  %v3012_v2 = vld [vmem:[#allocation6 + $0x2e8] sm:$0xff] }
 0x4c4   :  { %3644 = vmatpush.msra.mxu3 %v2852_v27  ;;  %3370 = vmatmul.f32.gmra.mxu0 %v2987_v60  ;;  %v6114_v27 = vld [vmem:[#allocation26_spill] sm:$0xff]  ;;  %v2753_v46 = vadd.f32 %v6115_v39, %v2544_v13  ;;  %v2844_v9 = vmax.f32 %v2759_v33, 0.0  ;;  %v2999_v23 = vld [vmem:[#allocation6 + $0x280] sm:$0xff]  ;;  %v2930_v13 = vld [vmem:[#allocation6 + $0x58] sm:$0xff]  ;;  %v5683_v33 = vpop.permute.xlu1 %3220 }
 0x4c5   :  { %v5614_v7 = vpop.f32.mrf.mxu1  ;;  %v2538_v60 = vadd.f32 %v6114_v27, %v2329_v47  ;;  %v2843_v18 = vmax.f32 %v2756_v34, 0.0  ;;  %v3003_v49 = vld [vmem:[#allocation6 + $0x2a0] sm:$0xff]  ;;  %v2997_v34 = vld [vmem:[#allocation6 + $0x270] sm:$0xff] }
 0x4c6   :  { %3645 = vmatpush.msra.mxu3 %v2851_v8  ;;  %v6116_v8 = vld [vmem:[#allocation23_spill] sm:$0xff]  ;;  %v2842_v28 = vmax.f32 %v2753_v46, 0.0  ;;  %v3007_v12 = vld [vmem:[#allocation6 + $0x2c0] sm:$0xff] }
 0x4c7   :  { %3584 = vmatmul.f32.gmra.mxu2 %v2973_v51  ;;  %v2535_v51 = vadd.f32 %v6116_v8, %v2326_v3  ;;  %v2747_v26 = vadd.f32 %v6119_v30, %v2538_v60  ;;  %v3011_v32 = vld [vmem:[#allocation6 + $0x2e0] sm:$0xff]  ;;  %v2938_v8 = vld [vmem:[#allocation6 + $0x98] sm:$0xff] }
 0x4c8   :  { %3483 = vmatmul.f32.gmra.mxu1 %v2988_v16  ;;  %3646 = vmatpush.msra.mxu3 %v2850_v1  ;;  %v6117_v16 = vld [vmem:[#allocation36_spill] sm:$0xff]  ;;  %v5657_v1 = vpop.permute.xlu2 %3300 }
 0x4c9   :  { %v5631_v44 = vpop.f32.mrf.mxu0  ;;  %v2750_v6 = vadd.f32 %v6117_v16, %v2541_v15  ;;  %6118 = vst [vmem:[#allocation40_spill] sm:$0xff] %v5657_v1  ;;  %v2744_v58 = vadd.f32 %v6120_v53, %v2535_v51  ;;  %v2840_v14 = vmax.f32 %v2747_v26, 0.0  ;;  %v3015_v39 = vld [vmem:[#allocation6 + $0x300] sm:$0xff]  ;;  %v3016_v16 = vld [vmem:[#allocation6 + $0x308] sm:$0xff]  ;;  %v3005_v26 = vld [vmem:[#allocation6 + $0x2b0] sm:$0xff] }
 0x4ca   :  { %3647 = vmatpush.msra.mxu3 %v2849_v50  ;;  %v2962_v1 = vld [vmem:[#allocation6 + $0x158] sm:$0xff] }
 0x4cb   :  { %v2841_v50 = vmax.f32 %v2750_v6, 0.0  ;;  %v2839_v38 = vmax.f32 %v2744_v58, 0.0  ;;  %v3020_v58 = vld [vmem:[#allocation6 + $0x328] sm:$0xff] }
 0x4cc   :  { %3648 = vmatpush.msra.mxu3 %v2848_v42  ;;  %3373 = vmatmul.f32.gmra.mxu0 %v2991_v61  ;;  %v2985_v42 = vld [vmem:[#allocation6 + $0x210] sm:$0xff]  ;;  %v2922_v61 = vld [vmem:[#allocation6 + $0x18] sm:$0xff]  ;;  %v5695_v3 = vpop.permute.xlu1 %3295 }
 0x4cd   :  { %v5638_v59 = vpop.f32.mrf.mxu1  ;;  %6124 = vst [vmem:[#allocation42_spill] sm:$0xff] %v5695_v3 }
 0x4ce   :  { %3649 = vmatpush.msra.mxu3 %v2847_v62  ;;  %v2926_v62 = vld [vmem:[#allocation6 + $0x38] sm:$0xff] }
 0x4cf   :  { %3587 = vmatmul.f32.gmra.mxu2 %v2977_v37  ;;  %v3004_v37 = vld [vmem:[#allocation6 + $0x2a8] sm:$0xff] }
 0x4d0   :  { %3486 = vmatmul.f32.gmra.mxu1 %v2992_v52  ;;  %3650 = vmatpush.msra.mxu3 %v2846_v40  ;;  %v5665_v24 = vpop.permute.xlu2 %3210  ;;  %v5673_v52 = vpop.permute.xlu0 %3215 }
 0x4d1   :  { %v5651_v21 = vpop.f32.mrf.mxu0 }
 0x4d2   :  { %3651 = vmatpush.msra.mxu3 %v2845_v41  ;;  %v2934_v41 = vld [vmem:[#allocation6 + $0x78] sm:$0xff] }
 0x4d4   :  { %3652 = vmatpush.msra.mxu3 %v2844_v9  ;;  %3376 = vmatmul.f32.gmra.mxu0 %v2995_v55  ;;  %v3001_v55 = vld [vmem:[#allocation6 + $0x290] sm:$0xff] }
 0x4d5   :  { %v5655_v36 = vpop.f32.mrf.mxu1 }
 0x4d6   :  { %3653 = vmatpush.msra.mxu3 %v2843_v18 }
 0x4d7   :  { %3590 = vmatmul.f32.gmra.mxu2 %v2981_v0  ;;  %v3019_v0 = vld [vmem:[#allocation6 + $0x320] sm:$0xff] }
 0x4d8   :  { %3489 = vmatmul.f32.gmra.mxu1 %v2996_v63  ;;  %3654 = vmatpush.msra.mxu3 %v2842_v28  ;;  %v5675_v29 = vpop.permute.xlu2 %3285  ;;  %v5685_v40 = vpop.permute.xlu0 %3290  ;;  %v2942_v28 = vld [vmem:[#allocation6 + $0xb8] sm:$0xff] }
 0x4d9   :  { %v5661_v45 = vpop.f32.mrf.mxu0  ;;  %6121 = vst [vmem:[#allocation39_spill] sm:$0xff] %v5675_v29  ;;  %v5711_v63 = vpop.permute.xlu1 %3205 }
 0x4da   :  { %3655 = vmatpush.msra.mxu3 %v2841_v50  ;;  %6122 = vst [vmem:[#allocation38_spill] sm:$0xff] %v5685_v40  ;;  %v3025_v40 = vld [vmem:[#allocation6 + $0x350] sm:$0xff] }
 0x4dc   :  { %3656 = vmatpush.msra.mxu3 %v2840_v14  ;;  %3379 = vmatmul.f32.gmra.mxu0 %v2999_v23 }
 0x4dd   :  { %v5663_v57 = vpop.f32.mrf.mxu1 }
 0x4de   :  { %3657 = vmatpush.msra.mxu3 %v2839_v38  ;;  %v3023_v38 = vld [vmem:[#allocation6 + $0x340] sm:$0xff] }
 0x4df   :  { %3593 = vmatmul.f32.gmra.mxu2 %v2985_v42  ;;  %3658 = vmatmul.f32.vlgmr.msra.gmra.mxu3 %v2922_v61  ;;  %v3009_v61 = vld [vmem:[#allocation6 + $0x2d0] sm:$0xff] }
 0x4e0   :  { %3492 = vmatmul.f32.gmra.mxu1 %v3000_v19  ;;  %v5691_v15 = vpop.permute.xlu2 %3195  ;;  %v5701_v46 = vpop.permute.xlu0 %3200  ;;  %v2946_v19 = vld [vmem:[#allocation6 + $0xd8] sm:$0xff] }
 0x4e1   :  { %v5669_v22 = vpop.f32.mrf.mxu0  ;;  %6123 = vst [vmem:[#allocation37_spill] sm:$0xff] %v5691_v15 }
 0x4e2   :  { %v5667_v48 = vpop.f32.mrf.mxu2  ;;  %6126 = vst [vmem:[#allocation44_spill] sm:$0xff] %v5701_v46  ;;  %v3041_v46 = vld [vmem:[#allocation6 + $0x3d0] sm:$0xff] }
 0x4e4   :  { %3382 = vmatmul.f32.gmra.mxu0 %v3003_v49  ;;  %v5725_v49 = vpop.permute.xlu1 %3280 }
 0x4e5   :  { %v5671_v20 = vpop.f32.mrf.mxu1  ;;  %6134 = vst [vmem:[#allocation57_spill] sm:$0xff] %v5725_v49 }
 0x4e7   :  { %3596 = vmatmul.f32.gmra.mxu2 %v2989_v35  ;;  %3661 = vmatmul.f32.gmra.mxu3 %v2926_v62  ;;  %v3024_v35 = vld [vmem:[#allocation6 + $0x348] sm:$0xff] }
 0x4e8   :  { %3495 = vmatmul.f32.gmra.mxu1 %v3004_v37  ;;  %v5705_v51 = vpop.permute.xlu2 %3270  ;;  %v5715_v53 = vpop.permute.xlu0 %3275 }
 0x4e9   :  { %v5679_v5 = vpop.f32.mrf.mxu0  ;;  %6128 = vst [vmem:[#allocation46_spill] sm:$0xff] %v5705_v51  ;;  %v2958_v51 = vld [vmem:[#allocation6 + $0x138] sm:$0xff] }
 0x4ea   :  { %v5677_v4 = vpop.f32.mrf.mxu2  ;;  %6131 = vst [vmem:[#allocation49_spill] sm:$0xff] %v5715_v53 }
 0x4ec   :  { %3385 = vmatmul.f32.gmra.mxu0 %v3007_v12 }
 0x4ed   :  { %v5681_v25 = vpop.f32.mrf.mxu1 }
 0x4ef   :  { %3599 = vmatmul.f32.gmra.mxu2 %v2993_v10  ;;  %3664 = vmatmul.f32.gmra.mxu3 %v2930_v13  ;;  %v3027_v13 = vld [vmem:[#allocation6 + $0x360] sm:$0xff] }
 0x4f0   :  { %3498 = vmatmul.f32.gmra.mxu1 %v3008_v43  ;;  %v5717_v50 = vpop.permute.xlu2 %3180  ;;  %v5727_v62 = vpop.permute.xlu0 %3185 }
 0x4f1   :  { %v5689_v47 = vpop.f32.mrf.mxu0  ;;  %6135 = vst [vmem:[#allocation55_spill] sm:$0xff] %v5727_v62 }
 0x4f2   :  { %v5687_v31 = vpop.f32.mrf.mxu2 }
 0x4f4   :  { %3388 = vmatmul.f32.gmra.mxu0 %v3011_v32  ;;  %v3013_v32 = vld [vmem:[#allocation6 + $0x2f0] sm:$0xff] }
 0x4f5   :  { %v5693_v54 = vpop.f32.mrf.mxu1 }
 0x4f7   :  { %3602 = vmatmul.f32.gmra.mxu2 %v2997_v34  ;;  %3667 = vmatmul.f32.gmra.mxu3 %v2934_v41  ;;  %v2950_v34 = vld [vmem:[#allocation6 + $0xf8] sm:$0xff]  ;;  %v3028_v41 = vld [vmem:[#allocation6 + $0x368] sm:$0xff] }
 0x4f8   :  { %3501 = vmatmul.f32.gmra.mxu1 %v3012_v2  ;;  %v5729_v37 = vpop.permute.xlu2 %3255  ;;  %v5737_v2 = vpop.permute.xlu1 %3190 }
 0x4f9   :  { %v5699_v60 = vpop.f32.mrf.mxu0  ;;  %6138 = vst [vmem:[#allocation52_spill] sm:$0xff] %v5737_v2 }
 0x4fa   :  { %v5697_v27 = vpop.f32.mrf.mxu2  ;;  %6125 = vst [vmem:[#allocation43_spill] sm:$0xff] %v5699_v60  ;;  %v3044_v60 = vld [vmem:[#allocation6 + $0x3e8] sm:$0xff] }
 0x4fc   :  { %3391 = vmatmul.f32.gmra.mxu0 %v3015_v39  ;;  %v5739_v39 = vpop.permute.xlu0 %3260 }
 0x4fd   :  { %v5703_v9 = vpop.f32.mrf.mxu1 }
 0x4fe   :  { %6127 = vst [vmem:[#allocation45_spill] sm:$0xff] %v5703_v9  ;;  %v3029_v9 = vld [vmem:[#allocation6 + $0x370] sm:$0xff] }
 0x4ff   :  { %3605 = vmatmul.f32.gmra.mxu2 %v3001_v55  ;;  %3670 = vmatmul.f32.gmra.mxu3 %v2938_v8 }
 0x500   :  { %3504 = vmatmul.f32.gmra.mxu1 %v3016_v16  ;;  %v3031_v16 = vld [vmem:[#allocation6 + $0x380] sm:$0xff] }
 0x501   :  { %v5709_v18 = vpop.f32.mrf.mxu0 }
 0x502   :  { %v5707_v6 = vpop.f32.mrf.mxu2  ;;  %6129 = vst [vmem:[#allocation47_spill] sm:$0xff] %v5709_v18  ;;  %v2970_v18 = vld [vmem:[#allocation6 + $0x198] sm:$0xff] }
 0x504   :  { %3394 = vmatmul.f32.gmra.mxu0 %v3019_v0  ;;  %v5745_v0 = vpop.permute.xlu2 %3165 }
 0x505   :  { %v5713_v30 = vpop.f32.mrf.mxu1 }
 0x506   :  { %6130 = vst [vmem:[#allocation48_spill] sm:$0xff] %v5713_v30  ;;  %v2966_v30 = vld [vmem:[#allocation6 + $0x178] sm:$0xff] }
 0x507   :  { %3608 = vmatmul.f32.gmra.mxu2 %v3005_v26  ;;  %3673 = vmatmul.f32.gmra.mxu3 %v2942_v28  ;;  %v3017_v28 = vld [vmem:[#allocation6 + $0x310] sm:$0xff] }
 0x508   :  { %3507 = vmatmul.f32.gmra.mxu1 %v3020_v58  ;;  %v2954_v58 = vld [vmem:[#allocation6 + $0x118] sm:$0xff] }
 0x509   :  { %v5721_v23 = vpop.f32.mrf.mxu0 }
 0x50a   :  { %v5719_v14 = vpop.f32.mrf.mxu2  ;;  %6132 = vst [vmem:[#allocation50_spill] sm:$0xff] %v5721_v23 }
 0x50c   :  { %3397 = vmatmul.f32.gmra.mxu0 %v3023_v38  ;;  %v3032_v38 = vld [vmem:[#allocation6 + $0x388] sm:$0xff]  ;;  %v5759_v53 = vpop.permute.xlu2 %3240 }
 0x50d   :  { %v5723_v42 = vpop.f32.mrf.mxu1 }
 0x50e   :  { %6133 = vst [vmem:[#allocation56_spill] sm:$0xff] %v5723_v42 }
 0x50f   :  { %3611 = vmatmul.f32.gmra.mxu2 %v3009_v61  ;;  %3676 = vmatmul.f32.gmra.mxu3 %v2946_v19  ;;  %v5749_v61 = vpop.permute.xlu1 %3265 }
 0x510   :  { %3510 = vmatmul.f32.gmra.mxu1 %v3024_v35 }
 0x511   :  { %v5733_v10 = vpop.f32.mrf.mxu0 }
 0x512   :  { %v5731_v12 = vpop.f32.mrf.mxu2  ;;  %6136 = vst [vmem:[#allocation54_spill] sm:$0xff] %v5733_v10 }
 0x514   :  { %3400 = vmatmul.f32.gmra.mxu0 %v3027_v13  ;;  %v3035_v13 = vld [vmem:[#allocation6 + $0x3a0] sm:$0xff] }
 0x515   :  { %v5735_v43 = vpop.f32.mrf.mxu1 }
 0x516   :  { %6137 = vst [vmem:[#allocation53_spill] sm:$0xff] %v5735_v43  ;;  %v3033_v43 = vld [vmem:[#allocation6 + $0x390] sm:$0xff] }
 0x517   :  { %3614 = vmatmul.f32.gmra.mxu2 %v3013_v32  ;;  %3679 = vmatmul.f32.gmra.mxu3 %v2950_v34  ;;  %v5755_v32 = vpop.permute.xlu0 %3170  ;;  %v5765_v49 = vpop.permute.xlu1 %3175 }
 0x518   :  { %3513 = vmatmul.f32.gmra.mxu1 %v3028_v41  ;;  %v3021_v41 = vld [vmem:[#allocation6 + $0x330] sm:$0xff] }
 0x519   :  { %v5743_v8 = vpop.f32.mrf.mxu0 }
 0x51a   :  { %v5741_v55 = vpop.f32.mrf.mxu2 }
 0x51c   :  { %3403 = vmatmul.f32.gmra.mxu0 %v3031_v16  ;;  %v3036_v16 = vld [vmem:[#allocation6 + $0x3a8] sm:$0xff] }
 0x51d   :  { %v5747_v26 = vpop.f32.mrf.mxu1 }
 0x51e   :  { %6139 = vst [vmem:[#allocation51_spill] sm:$0xff] %v5747_v26 }
 0x51f   :  { %3617 = vmatmul.f32.gmra.mxu2 %v3017_v28  ;;  %3682 = vmatmul.f32.gmra.mxu3 %v2954_v58  ;;  %v5769_v3 = vpop.permute.xlu0 %3245  ;;  %v5779_v42 = vpop.permute.xlu1 %3250 }
 0x520   :  { %3516 = vmatmul.f32.gmra.mxu1 %v3032_v38  ;;  %v3039_v38 = vld [vmem:[#allocation6 + $0x3c0] sm:$0xff] }
 0x521   :  { %v5753_v35 = vpop.f32.mrf.mxu0 }
 0x522   :  { %v5751_v19 = vpop.f32.mrf.mxu2 }
 0x523   :  { %6140 = vst [vmem:[#allocation28_spill] sm:$0xff] %v5751_v19  ;;  %v3040_v19 = vld [vmem:[#allocation6 + $0x3c8] sm:$0xff] }
 0x524   :  { %3406 = vmatmul.f32.gmra.mxu0 %v3035_v13  ;;  %v5771_v13 = vpop.permute.xlu2 %3150 }
 0x525   :  { %v5757_v34 = vpop.f32.mrf.mxu1 }
 0x526   :  { %6141 = vst [vmem:[#allocation19_spill] sm:$0xff] %v5757_v34  ;;  %v2974_v34 = vld [vmem:[#allocation6 + $0x1b8] sm:$0xff] }
 0x527   :  { %3620 = vmatmul.f32.gmra.mxu2 %v3021_v41  ;;  %3685 = vmatmul.f32.gmra.mxu3 %v2958_v51  ;;  %v5785_v26 = vpop.permute.xlu1 %3160 }
 0x528   :  { %3519 = vmatmul.f32.gmra.mxu1 %v3036_v16  ;;  %v3043_v16 = vld [vmem:[#allocation6 + $0x3e0] sm:$0xff] }
 0x529   :  { %v5763_v58 = vpop.f32.mrf.mxu0 }
 0x52a   :  { %v5761_v28 = vpop.f32.mrf.mxu2 }
 0x52b   :  { %6142 = vst [vmem:[#allocation20_spill] sm:$0xff] %v5761_v28 }
 0x52c   :  { %3409 = vmatmul.f32.gmra.mxu0 %v3039_v38  ;;  %v5781_v38 = vpop.permute.xlu0 %3155 }
 0x52d   :  { %v5767_v29 = vpop.f32.mrf.mxu1 }
 0x52f   :  { %3623 = vmatmul.f32.gmra.mxu2 %v3025_v40  ;;  %3688 = vmatmul.f32.gmra.mxu3 %v2962_v1  ;;  %v3226_v1 = vpop.permute.xlu2 %3225 }
 0x530   :  { %3522 = vmatmul.f32.gmra.mxu1 %v3040_v19 }
 0x531   :  { %v5775_v41 = vpop.f32.mrf.mxu0 }
 0x532   :  { %v5773_v51 = vpop.f32.mrf.mxu2 }
 0x533   :  { %6143 = vst [vmem:[#allocation16_spill] sm:$0xff] %v5773_v51 }
 0x534   :  { %3412 = vmatmul.f32.gmra.mxu0 %v3043_v16  ;;  %v3231_v16 = vpop.permute.xlu0 %3230 }
 0x535   :  { %v5777_v28 = vpop.f32.mrf.mxu1 }
 0x536   :  { %6144 = vst [vmem:[#allocation14_spill] sm:$0xff] %v5777_v28 }
 0x537   :  { %3626 = vmatmul.f32.gmra.mxu2 %v3029_v9  ;;  %3691 = vmatmul.f32.gmra.mxu3 %v2966_v30 }
 0x538   :  { %3525 = vmatmul.f32.gmra.mxu1 %v3044_v60  ;;  %v3037_v60 = vld [vmem:[#allocation6 + $0x3b0] sm:$0xff] }
 0x539   :  { %v3368_v19 = vpop.f32.mrf.mxu0 }
 0x53a   :  { %v5783_v40 = vpop.f32.mrf.mxu2  ;;  %v3369_v51 = vadd.f32 %v3368_v19, %v3226_v1  ;;  %v3236_v1 = vpop.permute.xlu1 %3235 }
 0x53b   :  { %6145 = vst [vmem:[#allocation18_spill] sm:$0xff] %v5783_v40 }
 0x53d   :  { %v3481_v62 = vpop.f32.mrf.mxu1 }
 0x53e   :  { %v3482_v2 = vadd.f32 %v3481_v62, %v3369_v51 }
 0x53f   :  { %3629 = vmatmul.f32.gmra.mxu2 %v3033_v43  ;;  %3694 = vmatmul.f32.gmra.mxu3 %v2970_v18  ;;  %v2978_v43 = vld [vmem:[#allocation6 + $0x1d8] sm:$0xff] }
 0x541   :  { %v3371_v15 = vpop.f32.mrf.mxu0 }
 0x542   :  { %v5787_v23 = vpop.f32.mrf.mxu2  ;;  %v3372_v9 = vadd.f32 %v3371_v15, %v3231_v16 }
 0x543   :  { %6146 = vst [vmem:[#allocation21_spill] sm:$0xff] %v5787_v23 }
 0x545   :  { %v3484_v30 = vpop.f32.mrf.mxu1 }
 0x546   :  { %v3485_v10 = vadd.f32 %v3484_v30, %v3372_v9  ;;  %v3045_v9 = vld [vmem:[#allocation6 + $0x3f0] sm:$0xff]  ;;  %v2982_v30 = vld [vmem:[#allocation6 + $0x1f8] sm:$0xff] }
 0x547   :  { %3632 = vmatmul.f32.gmra.mxu2 %v3037_v60  ;;  %3697 = vmatmul.f32.gmra.mxu3 %v2974_v34  ;;  %v3146_v60 = vpop.permute.xlu1 %3145 }
 0x549   :  { %v3374_v40 = vpop.f32.mrf.mxu0 }
 0x54a   :  { %v5789_v19 = vpop.f32.mrf.mxu2  ;;  %v3375_v62 = vadd.f32 %v3374_v40, %v3236_v1  ;;  %v3321_v1 = vadd.f32 %v5589_v11, %v3146_v60  ;;  %v2990_v60 = vld [vmem:[#allocation6 + $0x238] sm:$0xff] }
 0x54b   :  { %6147 = vst [vmem:[#allocation17_spill] sm:$0xff] %v5789_v19 }
 0x54d   :  { %v3487_v51 = vpop.f32.mrf.mxu1 }
 0x54e   :  { %v3488_v18 = vadd.f32 %v3487_v51, %v3375_v62  ;;  %v2986_v62 = vld [vmem:[#allocation6 + $0x218] sm:$0xff] }
 0x54f   :  { %3635 = vmatmul.f32.gmra.mxu2 %v3041_v46  ;;  %3700 = vmatmul.f32.gmra.mxu3 %v2978_v43 }
 0x551   :  { %v3377_v15 = vpop.f32.mrf.mxu0 }
 0x552   :  { %v5791_v23 = vpop.f32.mrf.mxu2  ;;  %v3378_v16 = vadd.f32 %v3377_v15, %v5759_v53 }
 0x553   :  { %6148 = vst [vmem:[#allocation65_spill] sm:$0xff] %v5791_v23  ;;  %v3434_v23 = vadd.f32 %v5594_v56, %v3321_v1 }
 0x555   :  { %v3490_v28 = vpop.f32.mrf.mxu1  ;;  %v3547_v53 = vadd.f32 %v5667_v48, %v3434_v23 }
 0x556   :  { %v3491_v34 = vadd.f32 %v3490_v28, %v3378_v16  ;;  %v3324_v16 = vadd.f32 %v5606_v17, %v5771_v13  ;;  %v3327_v17 = vadd.f32 %v5631_v44, %v5781_v38  ;;  %v3330_v44 = vadd.f32 %v5651_v21, %v5785_v26 }
 0x557   :  { %3638 = vmatmul.f32.gmra.mxu2 %v3045_v9  ;;  %3703 = vmatmul.f32.gmra.mxu3 %v2982_v30  ;;  %v3333_v21 = vadd.f32 %v5661_v45, %v5745_v0  ;;  %v3336_v45 = vadd.f32 %v5669_v22, %v5755_v32  ;;  %v3010_v22 = vld [vmem:[#allocation6 + $0x2d8] sm:$0xff] }
 0x558   :  { %v3437_v56 = vadd.f32 %v5614_v7, %v3324_v16  ;;  %v3440_v7 = vadd.f32 %v5638_v59, %v3327_v17  ;;  %v3443_v59 = vadd.f32 %v5655_v36, %v3330_v44 }
 0x559   :  { %v3380_v40 = vpop.f32.mrf.mxu0  ;;  %v3446_v36 = vadd.f32 %v5663_v57, %v3333_v21 }
 0x55a   :  { %v5794_v19 = vpop.f32.mrf.mxu2  ;;  %v3381_v46 = vadd.f32 %v3380_v40, %v5769_v3  ;;  %v3550_v48 = vadd.f32 %v5677_v4, %v3437_v56  ;;  %v3553_v4 = vadd.f32 %v5687_v31, %v3440_v7  ;;  %v3556_v31 = vadd.f32 %v5697_v27, %v3443_v59  ;;  %v3018_v59 = vld [vmem:[#allocation6 + $0x318] sm:$0xff] }
 0x55b   :  { %v3559_v27 = vadd.f32 %v5707_v6, %v3446_v36  ;;  %v3339_v6 = vadd.f32 %v5679_v5, %v5765_v49  ;;  %v3014_v5 = vld [vmem:[#allocation6 + $0x2f8] sm:$0xff] }
 0x55d   :  { %v3493_v51 = vpop.f32.mrf.mxu1  ;;  %v3452_v32 = vadd.f32 %v5681_v25, %v3339_v6 }
 0x55e   :  { %v3494_v43 = vadd.f32 %v3493_v51, %v3381_v46  ;;  %v2994_v51 = vld [vmem:[#allocation6 + $0x258] sm:$0xff] }
 0x55f   :  { %3706 = vmatmul.f32.gmra.mxu3 %v2986_v62 }
 0x561   :  { %v3383_v11 = vpop.f32.mrf.mxu0 }
 0x562   :  { %v3594_v15 = vpop.f32.mrf.mxu2  ;;  %v3659_v28 = vpop.f32.mrf.mxu3  ;;  %v3384_v3 = vadd.f32 %v3383_v11, %v5779_v42 }
 0x563   :  { %v5802_v9 = vadd.f32 %v3594_v15, %v3482_v2  ;;  %v5804_v30 = vadd.f32 %v3659_v28, %v3547_v53 }
 0x565   :  { %v3496_v40 = vpop.f32.mrf.mxu1 }
 0x566   :  { %v3497_v46 = vadd.f32 %v3496_v40, %v3384_v3  ;;  %v2998_v3 = vld [vmem:[#allocation6 + $0x278] sm:$0xff] }
 0x567   :  { %3709 = vmatmul.f32.gmra.mxu3 %v2990_v60 }
 0x569   :  { %v3386_v62 = vpop.f32.mrf.mxu0 }
 0x56a   :  { %v3597_v23 = vpop.f32.mrf.mxu2  ;;  %v3662_v1 = vpop.f32.mrf.mxu3  ;;  %v3387_v42 = vadd.f32 %v3386_v62, %v5729_v37 }
 0x56b   :  { %v5811_v2 = vadd.f32 %v3597_v23, %v3485_v10  ;;  %v5813_v13 = vadd.f32 %v3662_v1, %v3550_v48  ;;  %v3002_v1 = vld [vmem:[#allocation6 + $0x298] sm:$0xff] }
 0x56d   :  { %v3499_v53 = vpop.f32.mrf.mxu1 }
 0x56e   :  { %v3500_v15 = vadd.f32 %v3499_v53, %v3387_v42  ;;  %v3006_v53 = vld [vmem:[#allocation6 + $0x2b8] sm:$0xff] }
 0x56f   :  { %3712 = vmatmul.f32.gmra.mxu3 %v2994_v51 }
 0x571   :  { %v3389_v11 = vpop.f32.mrf.mxu0 }
 0x572   :  { %v3600_v28 = vpop.f32.mrf.mxu2  ;;  %v3665_v16 = vpop.f32.mrf.mxu3  ;;  %v3390_v37 = vadd.f32 %v3389_v11, %v5739_v39 }
 0x573   :  { %v5820_v10 = vadd.f32 %v3600_v28, %v3488_v18  ;;  %v5822_v38 = vadd.f32 %v3665_v16, %v3553_v4 }
 0x575   :  { %v3502_v60 = vpop.f32.mrf.mxu1 }
 0x576   :  { %v3503_v40 = vadd.f32 %v3502_v60, %v3390_v37 }
 0x577   :  { %3715 = vmatmul.f32.gmra.mxu3 %v2998_v3 }
 0x579   :  { %v3392_v23 = vpop.f32.mrf.mxu0 }
 0x57a   :  { %v3603_v56 = vpop.f32.mrf.mxu2  ;;  %v3668_v48 = vpop.f32.mrf.mxu3  ;;  %v3393_v39 = vadd.f32 %v3392_v23, %v5749_v61  ;;  %v3449_v61 = vadd.f32 %v5671_v20, %v3336_v45  ;;  %v3357_v45 = vadd.f32 %v5743_v8, %v5711_v63  ;;  %v6157_v8 = vld [vmem:[#allocation17_spill] sm:$0xff] }
 0x57b   :  { %v5829_v26 = vadd.f32 %v3603_v56, %v3491_v34  ;;  %v5831_v18 = vadd.f32 %v3668_v48, %v3556_v31 }
 0x57c   :  { %v3562_v7 = vadd.f32 %v5719_v14, %v3449_v61  ;;  %v3342_v14 = vadd.f32 %v5689_v47, %v5717_v50  ;;  %v6149_v61 = vld [vmem:[#allocation14_spill] sm:$0xff] }
 0x57d   :  { %v3505_v17 = vpop.f32.mrf.mxu1 }
 0x57e   :  { %v3506_v62 = vadd.f32 %v3505_v17, %v3393_v39  ;;  %v3455_v49 = vadd.f32 %v5693_v54, %v3342_v14  ;;  %v3026_v54 = vld [vmem:[#allocation6 + $0x358] sm:$0xff] }
 0x57f   :  { %3718 = vmatmul.f32.gmra.mxu3 %v3002_v1  ;;  %v3038_v39 = vld [vmem:[#allocation6 + $0x3b8] sm:$0xff] }
 0x580   :  { %v3042_v17 = vld [vmem:[#allocation6 + $0x3d8] sm:$0xff] }
 0x582   :  { %v3606_v42 = vpop.f32.mrf.mxu2  ;;  %v3671_v51 = vpop.f32.mrf.mxu3 }
 0x583   :  { %v5838_v0 = vadd.f32 %v3606_v42, %v3494_v43  ;;  %v5840_v34 = vadd.f32 %v3671_v51, %v3559_v27  ;;  %v3565_v43 = vadd.f32 %v5731_v12, %v3452_v32  ;;  %v3366_v27 = vadd.f32 %v5775_v41, %v5683_v33  ;;  %v3046_v42 = vld [vmem:[#allocation6 + $0x3f8] sm:$0xff]  ;;  %v6154_v41 = vld [vmem:[#allocation37_spill] sm:$0xff] }
 0x584   :  { %v3360_v51 = vadd.f32 %v5753_v35, %v5665_v24 }
 0x587   :  { %3721 = vmatmul.f32.gmra.mxu3 %v3006_v53 }
 0x58a   :  { %v3609_v4 = vpop.f32.mrf.mxu2  ;;  %v3674_v57 = vpop.f32.mrf.mxu3 }
 0x58b   :  { %v5846_v28 = vadd.f32 %v3609_v4, %v3497_v46  ;;  %v5848_v16 = vadd.f32 %v3674_v57, %v3562_v7  ;;  %v3568_v46 = vadd.f32 %v5741_v55, %v3455_v49  ;;  %v3030_v55 = vld [vmem:[#allocation6 + $0x378] sm:$0xff]  ;;  %v3479_v7 = vadd.f32 %v6149_v61, %v3366_v27  ;;  %v6150_v4 = vld [vmem:[#allocation44_spill] sm:$0xff]  ;;  %v6151_v57 = vld [vmem:[#allocation54_spill] sm:$0xff] }
 0x58c   :  { %v3354_v6 = vadd.f32 %v6151_v57, %v6150_v4  ;;  %v6159_v49 = vld [vmem:[#allocation47_spill] sm:$0xff] }
 0x58d   :  { %v3592_v33 = vadd.f32 %v5794_v19, %v3479_v7  ;;  %v6162_v19 = vld [vmem:[#allocation55_spill] sm:$0xff] }
 0x58f   :  { %3724 = vmatmul.f32.gmra.mxu3 %v3010_v22  ;;  %v6152_v22 = vld [vmem:[#allocation19_spill] sm:$0xff] }
 0x592   :  { %v3612_v44 = vpop.f32.mrf.mxu2  ;;  %v3677_v20 = vpop.f32.mrf.mxu3 }
 0x593   :  { %v5854_v11 = vadd.f32 %v3612_v44, %v3500_v15  ;;  %v5856_v37 = vadd.f32 %v3677_v20, %v3565_v43  ;;  %v3022_v15 = vld [vmem:[#allocation6 + $0x338] sm:$0xff]  ;;  %v6155_v43 = vld [vmem:[#allocation50_spill] sm:$0xff] }
 0x594   :  { %v3351_v24 = vadd.f32 %v6155_v43, %v6154_v41  ;;  %v6156_v44 = vld [vmem:[#allocation51_spill] sm:$0xff] }
 0x595   :  { %v3470_v63 = vadd.f32 %v6156_v44, %v3357_v45 }
 0x597   :  { %3727 = vmatmul.f32.gmra.mxu3 %v3014_v5  ;;  %v6158_v5 = vld [vmem:[#allocation52_spill] sm:$0xff] }
 0x59a   :  { %v3615_v3 = vpop.f32.mrf.mxu2  ;;  %v3680_v25 = vpop.f32.mrf.mxu3 }
 0x59b   :  { %v5860_v60 = vadd.f32 %v3615_v3, %v3503_v40  ;;  %v5862_v12 = vadd.f32 %v3680_v25, %v3568_v46  ;;  %v3034_v40 = vld [vmem:[#allocation6 + $0x398] sm:$0xff]  ;;  %v3348_v46 = vadd.f32 %v6159_v49, %v6158_v5  ;;  %v6160_v3 = vld [vmem:[#allocation53_spill] sm:$0xff]  ;;  %v3819_v5 = vld [vmem:[#allocation8] sm:$0xff] }
 0x59c   :  { %v3467_v25 = vadd.f32 %v6160_v3, %v3354_v6 }
 0x59f   :  { %3730 = vmatmul.f32.gmra.mxu3 %v3018_v59  ;;  %v6161_v59 = vld [vmem:[#allocation21_spill] sm:$0xff] }
 0x5a2   :  { %v3618_v31 = vpop.f32.mrf.mxu2  ;;  %v5864_v47 = vpop.f32.mrf.mxu3 }
 0x5a3   :  { %v5866_v50 = vadd.f32 %v3618_v31, %v3506_v62  ;;  %v3363_v62 = vadd.f32 %v5763_v58, %v5673_v52  ;;  %v3473_v52 = vadd.f32 %v6152_v22, %v3360_v51  ;;  %v6153_v58 = vld [vmem:[#allocation65_spill] sm:$0xff]  ;;  %v3583_v31 = vadd.f32 %v6161_v59, %v3470_v63  ;;  %v6169_v22 = vld [vmem:[#allocation20_spill] sm:$0xff]  ;;  %v3395_v59 = vpop.f32.mrf.mxu0 }
 0x5a5   :  { %v3476_v53 = vadd.f32 %v5767_v29, %v3363_v62  ;;  %v3586_v29 = vadd.f32 %v6157_v8, %v3473_v52  ;;  %v6165_v62 = vld [vmem:[#allocation18_spill] sm:$0xff]  ;;  %v3761_v8 = vmax.f32 %v5856_v37, 0.0  ;;  %v3757_v37 = vmax.f32 %v5822_v38, 0.0 }
 0x5a6   :  { %v3580_v27 = vadd.f32 %v6165_v62, %v3467_v25 }
 0x5a7   :  { %3733 = vmatmul.f32.gmra.mxu3 %v3022_v15  ;;  %v3589_v32 = vadd.f32 %v6153_v58, %v3476_v53  ;;  %v6167_v53 = vld [vmem:[#allocation16_spill] sm:$0xff] }
 0x5aa   :  { %v3686_v56 = vpop.f32.mrf.mxu3 }
 0x5af   :  { %3736 = vmatmul.f32.gmra.mxu3 %v3026_v54 }
 0x5b2   :  { %v3689_v48 = vpop.f32.mrf.mxu3 }
 0x5b7   :  { %3739 = vmatmul.f32.gmra.mxu3 %v3030_v55  ;;  %v6163_v55 = vld [vmem:[#allocation43_spill] sm:$0xff] }
 0x5ba   :  { %v3692_v21 = vpop.f32.mrf.mxu3 }
 0x5bb   :  { %v3693_v7 = vadd.f32 %v3692_v21, %v3580_v27 }
 0x5bf   :  { %3742 = vmatmul.f32.gmra.mxu3 %v3034_v40  ;;  %v3345_v40 = vadd.f32 %v6163_v55, %v6162_v19 }
 0x5c2   :  { %v3695_v23 = vpop.f32.mrf.mxu3 }
 0x5c7   :  { %3745 = vmatmul.f32.gmra.mxu3 %v3038_v39  ;;  %v6164_v39 = vld [vmem:[#allocation56_spill] sm:$0xff] }
 0x5ca   :  { %v3698_v1 = vpop.f32.mrf.mxu3 }
 0x5cb   :  { %v3699_v15 = vadd.f32 %v3698_v1, %v3586_v29  ;;  %v6168_v1 = vld [vmem:[#allocation45_spill] sm:$0xff] }
 0x5cc   :  { %v3458_v57 = vadd.f32 %v6168_v1, %v3345_v40 }
 0x5cd   :  { %v3768_v4 = vmax.f32 %v3699_v15, 0.0  ;;  %v3621_v15 = vpop.f32.mrf.mxu2 }
 0x5cf   :  { %3748 = vmatmul.f32.gmra.mxu3 %v3042_v17  ;;  %v3464_v17 = vadd.f32 %v6164_v39, %v3351_v24  ;;  %v3766_v24 = vmax.f32 %v3693_v7, 0.0 }
 0x5d1   :  { %v3577_v61 = vadd.f32 %v6167_v53, %v3464_v17 }
 0x5d2   :  { %v3701_v36 = vpop.f32.mrf.mxu3 }
 0x5d3   :  { %v3702_v20 = vadd.f32 %v3701_v36, %v3589_v32  ;;  %v6166_v36 = vld [vmem:[#allocation48_spill] sm:$0xff]  ;;  %v3690_v58 = vadd.f32 %v3689_v48, %v3577_v61 }
 0x5d4   :  { %v3461_v45 = vadd.f32 %v6166_v36, %v3348_v46 }
 0x5d5   :  { %v3769_v51 = vmax.f32 %v3702_v20, 0.0  ;;  %v3759_v20 = vmax.f32 %v5840_v34, 0.0  ;;  %v3755_v34 = vmax.f32 %v5804_v30, 0.0 }
 0x5d6   :  { %v3574_v52 = vadd.f32 %v6169_v22, %v3461_v45 }
 0x5d7   :  { %3751 = vmatmul.f32.gmra.mxu3 %v3046_v42  ;;  %v3696_v42 = vadd.f32 %v3695_v23, %v3583_v31  ;;  %v3508_v31 = vpop.f32.mrf.mxu1 }
 0x5d8   :  { %v3687_v43 = vadd.f32 %v3686_v56, %v3574_v52  ;;  %v3762_v56 = vmax.f32 %v5862_v12, 0.0  ;;  %v3758_v12 = vmax.f32 %v5831_v18, 0.0  ;;  %v3821_v18 = vld [vmem:[#allocation8 + $0x10] sm:$0xff] }
 0x5d9   :  { %v3767_v32 = vmax.f32 %v3696_v42, 0.0 }
 0x5da   :  { %v3704_v35 = vpop.f32.mrf.mxu3  ;;  %v3764_v44 = vmax.f32 %v3687_v43, 0.0 }
 0x5db   :  { %v3705_v14 = vadd.f32 %v3704_v35, %v3592_v33  ;;  %v6170_v33 = vld [vmem:[#allocation28_spill] sm:$0xff]  ;;  %v3765_v35 = vmax.f32 %v3690_v58, 0.0  ;;  %v6171_v58 = vld [vmem:[#allocation42_spill] sm:$0xff] }
 0x5dc   :  { %v3571_v41 = vadd.f32 %v6170_v33, %v3458_v57  ;;  %v6172_v33 = vld [vmem:[#allocation40_spill] sm:$0xff] }
 0x5dd   :  { %v3770_v54 = vmax.f32 %v3705_v14, 0.0 }
 0x5de   :  { %v3684_v21 = vadd.f32 %v5864_v47, %v3571_v41  ;;  %v3760_v47 = vmax.f32 %v5848_v16, 0.0  ;;  %v3756_v16 = vmax.f32 %v5813_v13, 0.0  ;;  %v3823_v13 = vld [vmem:[#allocation8 + $0x20] sm:$0xff] }
 0x5df   :  { %3883 = vmatpush.msrb.mxu0 %v3770_v54  ;;  %4000 = vmatpush.msrb.mxu3 %v3770_v54  ;;  %v3511_v55 = vpop.f32.mrf.mxu1 }
 0x5e0   :  { %v3763_v63 = vmax.f32 %v3684_v21, 0.0 }
 0x5e1   :  { %3884 = vmatpush.msrb.mxu0 %v3769_v51  ;;  %4001 = vmatpush.msrb.mxu3 %v3769_v51 }
 0x5e2   :  { %v3707_v6 = vpop.f32.mrf.mxu3 }
 0x5e3   :  { %v5900_v23 = vadd.f32 %v3707_v6, %v5802_v9  ;;  %3885 = vmatpush.msrb.mxu0 %v3768_v4  ;;  %4002 = vmatpush.msrb.mxu3 %v3768_v4 }
 0x5e5   :  { %3886 = vmatpush.msrb.mxu0 %v3767_v32  ;;  %4003 = vmatpush.msrb.mxu3 %v3767_v32 }
 0x5e7   :  { %3887 = vmatpush.msrb.mxu0 %v3766_v24  ;;  %4004 = vmatpush.msrb.mxu3 %v3766_v24  ;;  %v3514_v27 = vpop.f32.mrf.mxu1  ;;  %v6173_v24 = vld [vmem:[#allocation38_spill] sm:$0xff] }
 0x5e9   :  { %3888 = vmatpush.msrb.mxu0 %v3765_v35  ;;  %4005 = vmatpush.msrb.mxu3 %v3765_v35 }
 0x5ea   :  { %v3710_v48 = vpop.f32.mrf.mxu3 }
 0x5eb   :  { %v5905_v9 = vadd.f32 %v3710_v48, %v5811_v2  ;;  %3889 = vmatpush.msrb.mxu0 %v3764_v44  ;;  %4006 = vmatpush.msrb.mxu3 %v3764_v44  ;;  %v6174_v44 = vld [vmem:[#allocation39_spill] sm:$0xff] }
 0x5ed   :  { %3890 = vmatpush.msrb.mxu0 %v3763_v63  ;;  %4007 = vmatpush.msrb.mxu3 %v3763_v63 }
 0x5ef   :  { %3891 = vmatpush.msrb.mxu0 %v3762_v56  ;;  %4008 = vmatpush.msrb.mxu3 %v3762_v56  ;;  %v3517_v36 = vpop.f32.mrf.mxu1 }
 0x5f1   :  { %3892 = vmatpush.msrb.mxu0 %v3761_v8  ;;  %4009 = vmatpush.msrb.mxu3 %v3761_v8  ;;  %v6175_v8 = vld [vmem:[#allocation57_spill] sm:$0xff] }
 0x5f2   :  { %v3713_v29 = vpop.f32.mrf.mxu3 }
 0x5f3   :  { %v5912_v2 = vadd.f32 %v3713_v29, %v5820_v10  ;;  %3893 = vmatpush.msrb.mxu0 %v3760_v47  ;;  %4010 = vmatpush.msrb.mxu3 %v3760_v47 }
 0x5f5   :  { %3894 = vmatpush.msrb.mxu0 %v3759_v20  ;;  %4011 = vmatpush.msrb.mxu3 %v3759_v20 }
 0x5f7   :  { %3895 = vmatpush.msrb.mxu0 %v3758_v12  ;;  %4012 = vmatpush.msrb.mxu3 %v3758_v12  ;;  %v3520_v7 = vpop.f32.mrf.mxu1 }
 0x5f9   :  { %3896 = vmatpush.msrb.mxu0 %v3757_v37  ;;  %4013 = vmatpush.msrb.mxu3 %v3757_v37  ;;  %v6176_v37 = vld [vmem:[#allocation49_spill] sm:$0xff] }
 0x5fa   :  { %v3716_v14 = vpop.f32.mrf.mxu3 }
 0x5fb   :  { %v5919_v10 = vadd.f32 %v3716_v14, %v5829_v26  ;;  %3897 = vmatpush.msrb.mxu0 %v3756_v16  ;;  %4014 = vmatpush.msrb.mxu3 %v3756_v16  ;;  %v3825_v26 = vld [vmem:[#allocation8 + $0x30] sm:$0xff] }
 0x5fd   :  { %3898 = vmatpush.msrb.mxu0 %v3755_v34  ;;  %4015 = vmatpush.msrb.mxu3 %v3755_v34 }
 0x5fe   :  { %3899 = vmatmul.f32.vlgmr.msrb.gmra.mxu0 %v3819_v5  ;;  %3902 = vmatmul.f32.vlgmr.msrb.gmra.mxu3 %v3821_v18 }
 0x5ff   :  { %v3523_v57 = vpop.f32.mrf.mxu1 }
 0x602   :  { %v3719_v38 = vpop.f32.mrf.mxu3 }
 0x603   :  { %v5922_v49 = vadd.f32 %v3719_v38, %v5838_v0  ;;  %v3398_v0 = vpop.f32.mrf.mxu0 }
 0x604   :  { %v3399_v16 = vadd.f32 %v3398_v0, %v6176_v37 }
 0x606   :  { %3905 = vmatmul.f32.gmra.mxu3 %v3823_v13  ;;  %v6177_v13 = vld [vmem:[#allocation46_spill] sm:$0xff] }
 0x607   :  { %v3526_v43 = vpop.f32.mrf.mxu1 }
 0x60a   :  { %v3722_v46 = vpop.f32.mrf.mxu3 }
 0x60b   :  { %v5925_v30 = vadd.f32 %v3722_v46, %v5846_v28  ;;  %v3624_v28 = vpop.f32.mrf.mxu2  ;;  %v3401_v17 = vpop.f32.mrf.mxu0  ;;  %v3396_v46 = vadd.f32 %v3395_v59, %v6177_v13 }
 0x60c   :  { %v3402_v47 = vadd.f32 %v3401_v17, %v6175_v8 }
 0x60e   :  { %3908 = vmatmul.f32.gmra.mxu3 %v3825_v26  ;;  %v3515_v26 = vadd.f32 %v3514_v27, %v3402_v47 }
 0x612   :  { %v3725_v3 = vpop.f32.mrf.mxu3 }
 0x613   :  { %v5928_v25 = vadd.f32 %v3725_v3, %v5854_v11  ;;  %v3627_v42 = vpop.f32.mrf.mxu2  ;;  %v3404_v11 = vpop.f32.mrf.mxu0 }
 0x614   :  { %v3405_v48 = vadd.f32 %v3404_v11, %v6174_v44  ;;  %v3512_v11 = vadd.f32 %v3511_v55, %v3399_v16  ;;  %v3945_v16 = vld [vmem:[#allocation9] sm:$0xff] }
 0x616   :  { %v3518_v34 = vadd.f32 %v3517_v36, %v3405_v48 }
 0x61a   :  { %v3728_v54 = vpop.f32.mrf.mxu3 }
 0x61b   :  { %v5931_v19 = vadd.f32 %v3728_v54, %v5860_v60  ;;  %v3630_v45 = vpop.f32.mrf.mxu2  ;;  %v3407_v61 = vpop.f32.mrf.mxu0 }
 0x61c   :  { %v3408_v21 = vadd.f32 %v3407_v61, %v6173_v24  ;;  %v3631_v3 = vadd.f32 %v3630_v45, %v3518_v34  ;;  %v3628_v61 = vadd.f32 %v3627_v42, %v3515_v26  ;;  %v3774_v42 = vmax.f32 %v5919_v10, 0.0 }
 0x61e   :  { %v3521_v29 = vadd.f32 %v3520_v7, %v3408_v21  ;;  %v3509_v7 = vadd.f32 %v3508_v31, %v3396_v46  ;;  %v3778_v31 = vmax.f32 %v5931_v19, 0.0  ;;  %v3771_v19 = vmax.f32 %v5900_v23, 0.0 }
 0x620   :  { %v3622_v36 = vadd.f32 %v3621_v15, %v3509_v7  ;;  %v3776_v15 = vmax.f32 %v5925_v30, 0.0  ;;  %v3822_v30 = vld [vmem:[#allocation8 + $0x18] sm:$0xff] }
 0x622   :  { %v3731_v40 = vpop.f32.mrf.mxu3 }
 0x623   :  { %v5934_v39 = vadd.f32 %v3731_v40, %v5866_v50  ;;  %v3633_v60 = vpop.f32.mrf.mxu2  ;;  %v3410_v1 = vpop.f32.mrf.mxu0 }
 0x624   :  { %v3411_v32 = vadd.f32 %v3410_v1, %v6171_v58  ;;  %v3634_v5 = vadd.f32 %v3633_v60, %v3521_v29  ;;  %v3881_v58 = vpop.permute.xlu0 %3880 }
 0x625   :  { %v3779_v55 = vmax.f32 %v5934_v39, 0.0  ;;  %v3772_v39 = vmax.f32 %v5905_v9, 0.0 }
 0x626   :  { %v3524_v63 = vadd.f32 %v3523_v57, %v3411_v32  ;;  %v3625_v57 = vadd.f32 %v3624_v28, %v3512_v11  ;;  %v3777_v28 = vmax.f32 %v5928_v25, 0.0  ;;  %v3820_v25 = vld [vmem:[#allocation8 + $0x8] sm:$0xff] }
 0x62a   :  { %v3734_v62 = vpop.f32.mrf.mxu3 }
 0x62b   :  { %v3636_v22 = vpop.f32.mrf.mxu2  ;;  %v3413_v50 = vpop.f32.mrf.mxu0 }
 0x62c   :  { %v3414_v41 = vadd.f32 %v3413_v50, %v6172_v33  ;;  %v3637_v20 = vadd.f32 %v3636_v22, %v3524_v63  ;;  %v3876_v33 = vpop.permute.xlu1 %3875  ;;  %v3866_v63 = vpop.permute.xlu0 %3865 }
 0x62e   :  { %v3527_v56 = vadd.f32 %v3526_v43, %v3414_v41  ;;  %v3871_v41 = vpop.permute.xlu2 %3870 }
 0x632   :  { %v3737_v51 = vpop.f32.mrf.mxu3 }
 0x633   :  { %v3639_v35 = vpop.f32.mrf.mxu2  ;;  %v3738_v60 = vadd.f32 %v3737_v51, %v3625_v57  ;;  %v3773_v51 = vmax.f32 %v5912_v2, 0.0 }
 0x634   :  { %v3640_v12 = vadd.f32 %v3639_v35, %v3527_v56  ;;  %v3952_v34 = vpop.permute.xlu1 %3951 }
 0x635   :  { %v3781_v27 = vmax.f32 %v3738_v60, 0.0 }
 0x63a   :  { %v3740_v53 = vpop.f32.mrf.mxu3 }
 0x63b   :  { %v3741_v22 = vadd.f32 %v3740_v53, %v3628_v61  ;;  %v3824_v53 = vld [vmem:[#allocation8 + $0x28] sm:$0xff] }
 0x63d   :  { %v3782_v59 = vmax.f32 %v3741_v22, 0.0 }
 0x642   :  { %v3743_v4 = vpop.f32.mrf.mxu3 }
 0x643   :  { %v3744_v1 = vadd.f32 %v3743_v4, %v3631_v3 }
 0x645   :  { %v3783_v50 = vmax.f32 %v3744_v1, 0.0 }
 0x64a   :  { %v3746_v6 = vpop.f32.mrf.mxu3 }
 0x64b   :  { %v3747_v54 = vadd.f32 %v3746_v6, %v3634_v5 }
 0x64d   :  { %v3784_v0 = vmax.f32 %v3747_v54, 0.0 }
 0x652   :  { %v3749_v52 = vpop.f32.mrf.mxu3 }
 0x653   :  { %v3750_v18 = vadd.f32 %v3749_v52, %v3637_v20  ;;  %v3735_v52 = vadd.f32 %v3734_v62, %v3622_v36  ;;  %v3775_v62 = vmax.f32 %v5922_v49, 0.0  ;;  %v3826_v49 = vld [vmem:[#allocation8 + $0x38] sm:$0xff] }
 0x655   :  { %v3785_v17 = vmax.f32 %v3750_v18, 0.0  ;;  %v3780_v45 = vmax.f32 %v3735_v52, 0.0 }
 0x65a   :  { %v3752_v14 = vpop.f32.mrf.mxu3 }
 0x65b   :  { %v3753_v38 = vadd.f32 %v3752_v14, %v3640_v12  ;;  %v3946_v14 = vld [vmem:[#allocation9 + $0x8] sm:$0x3] }
 0x65d   :  { %v3786_v40 = vmax.f32 %v3753_v38, 0.0  ;;  %v3957_v38 = vpop.permute.xlu2 %3956 }
 0x65f   :  { %3912 = vmatpush.msrb.mxu1 %v3786_v40 }
 0x661   :  { %3913 = vmatpush.msrb.mxu1 %v3785_v17 }
 0x663   :  { %3914 = vmatpush.msrb.mxu1 %v3784_v0 }
 0x665   :  { %3915 = vmatpush.msrb.mxu1 %v3783_v50 }
 0x667   :  { %3916 = vmatpush.msrb.mxu1 %v3782_v59 }
 0x669   :  { %3917 = vmatpush.msrb.mxu1 %v3781_v27 }
 0x66b   :  { %3918 = vmatpush.msrb.mxu1 %v3780_v45 }
 0x66d   :  { %3919 = vmatpush.msrb.mxu1 %v3779_v55 }
 0x66f   :  { %3920 = vmatpush.msrb.mxu1 %v3778_v31 }
 0x671   :  { %3921 = vmatpush.msrb.mxu1 %v3777_v28 }
 0x673   :  { %3922 = vmatpush.msrb.mxu1 %v3776_v15 }
 0x675   :  { %3923 = vmatpush.msrb.mxu1 %v3775_v62 }
 0x677   :  { %3924 = vmatpush.msrb.mxu1 %v3774_v42 }
 0x679   :  { %3925 = vmatpush.msrb.mxu1 %v3773_v51 }
 0x67b   :  { %3926 = vmatpush.msrb.mxu1 %v3772_v39  ;;  %v3900_v24 = vpop.f32.mrf.mxu0 }
 0x67c   :  { %v3901_v56 = vadd.f32 %v3900_v24, %v3866_v63 }
 0x67d   :  { %3927 = vmatpush.msrb.mxu1 %v3771_v19 }
 0x67e   :  { %3928 = vmatmul.f32.vlgmr.msrb.gmra.mxu1 %v3820_v25 }
 0x681   :  { %v3903_v10 = vpop.f32.mrf.mxu3 }
 0x682   :  { %v3904_v35 = vadd.f32 %v3903_v10, %v3871_v41 }
 0x686   :  { %3931 = vmatmul.f32.gmra.mxu1 %v3822_v30 }
 0x689   :  { %v3906_v2 = vpop.f32.mrf.mxu3 }
 0x68a   :  { %v3907_v23 = vadd.f32 %v3906_v2, %v3876_v33 }
 0x68e   :  { %3934 = vmatmul.f32.gmra.mxu1 %v3824_v53 }
 0x691   :  { %v3909_v9 = vpop.f32.mrf.mxu3 }
 0x692   :  { %v3910_v43 = vadd.f32 %v3909_v9, %v3881_v58 }
 0x696   :  { %3937 = vmatmul.f32.gmra.mxu1 %v3826_v49 }
 0x6fb   :  { %v3929_v4 = vpop.f32.mrf.mxu1 }
 0x6fc   :  { %v3930_v29 = vadd.f32 %v3929_v4, %v3901_v56 }
 0x6fe   :  { %v3941_v37 = vmax.f32 %v3930_v29, 0.0 }
 0x703   :  { %v3932_v6 = vpop.f32.mrf.mxu1 }
 0x704   :  { %v3933_v8 = vadd.f32 %v3932_v6, %v3904_v35 }
 0x706   :  { %v3942_v12 = vmax.f32 %v3933_v8, 0.0 }
 0x70b   :  { %v3935_v32 = vpop.f32.mrf.mxu1 }
 0x70c   :  { %v3936_v44 = vadd.f32 %v3935_v32, %v3907_v23 }
 0x70e   :  { %v3943_v20 = vmax.f32 %v3936_v44, 0.0 }
 0x713   :  { %v3938_v21 = vpop.f32.mrf.mxu1 }
 0x714   :  { %v3939_v48 = vadd.f32 %v3938_v21, %v3910_v43 }
 0x716   :  { %v3944_v47 = vmax.f32 %v3939_v48, 0.0 }
 0x718   :  { %3978 = vmatpush.msrb.mxu2 %v3944_v47 }
 0x71a   :  { %3979 = vmatpush.msrb.mxu2 %v3943_v20 }
 0x71c   :  { %3980 = vmatpush.msrb.mxu2 %v3942_v12 }
 0x71e   :  { %3981 = vmatpush.msrb.mxu2 %v3941_v37 }
 0x71f   :  { %3998 = vmatmul.msk.f32.vlgmr.msrb.gmra.mxu2 %vm3959_vm0, %v3945_v16 }
 0x727   :  { %3999 = vmatmul.msk.f32.gmra.mxu2 %vm3959_vm0, %v3946_v14 }
 0x7a2   :  { %v3983_v5 = vpop.f32.mrf.mxu2 }
 0x7a3   :  { %v3984_v18 = vadd.f32 %v3983_v5, %v3952_v34 }
 0x7a5   :  { %3989 = vst [vmem:[%s5967_s9] sm:$0xff] %v3984_v18 }
 0x7aa   :  { %v3986_v13 = vpop.f32.mrf.mxu2 }
 0x7ab   :  { %v3987_v46 = vadd.f32 %v3986_v13, %v3957_v38 }
 0x7ad   :  { %3990 = vst [vmem:[%s5967_s9 + $0x8] sm:$0x3] %v3987_v46 }
 0x7ae   :  { %3995 = vsyncpa [#allocation5], 1 }
 0x7af   :  { %3996 = vsyncpa [#allocation7], 1 }
 0x7b0   :  { %3997 = vsyncpa [#allocation10], 1 }

</bundles_post_ra>
